<compile_context>
chip_gen: v6e
topology: v6e:2x2x1
jax: 0.10.0
libtpu: 0.0.40
codegen_flags: <defaults>
</compile_context>

<pallas_src>
import functools

import jax
import jax.numpy as jnp
from jax import lax
from jax.experimental import pallas as pl
from jax.experimental.pallas import tpu as pltpu


def _mlp_kernel(num_hidden, x_ref, *refs):
    """Fused MLP over one row-tile of x.

    refs = (w0, b0, ..., w_{H-1}, b_{H-1}, w_last_row, b_last, out_ref)
      w_l        : [in_l, out_l] bfloat16   (hidden layers)
      b_l        : [1, out_l]    float32
      w_last_row : [1, in_last]  bfloat16   (final linear layer, row layout)
      b_last     : [1, 1]        float32
      out_ref    : [1, tm]       float32
    """
    out_ref = refs[-1]
    w_last_ref = refs[-3]
    b_last_ref = refs[-2]
    hidden_refs = refs[:-3]

    # bf16 operands for the MXU (f32 accumulation below).
    h = x_ref[...].astype(jnp.bfloat16)
    for l in range(num_hidden):
        w = hidden_refs[2 * l][...]        # bf16 [in, out]
        b = hidden_refs[2 * l + 1][...]    # f32  [1, out]
        # MXU matmul (bf16 operands, f32 accumulate) + f32 bias broadcast (VPU).
        z = jnp.dot(h, w, preferred_element_type=jnp.float32) + b
        # sigmoid(x) == 0.5 * (tanh(x / 2) + 1): tanh lives on the EUP slot,
        # avoiding exp + a full-precision VALU divide.
        z = 0.5 * (jnp.tanh(0.5 * z) + 1.0)
        h = z.astype(jnp.bfloat16)

    # Final linear layer: contract w_row [1, K] with h [tm, K] on the MXU
    # (A @ B^T form) so the result is produced directly as a lane-dense [1, tm].
    y = lax.dot_general(
        w_last_ref[...], h,
        dimension_numbers=(((1,), (1,)), ((), ())),
        preferred_element_type=jnp.float32,
    )                                      # [1, tm]
    out_ref[...] = (y + b_last_ref[...]).astype(out_ref.dtype)


def nnemb_forward(x, weights, biases, *, tm=1024):
    """Forward pass of NeuralNetworkEmbeddingPotential.

    x:       [N, descriptor_dim] float32
    weights: list of [in_dim, out_dim] float32 (last out_dim == 1)
    biases:  list of [1, out_dim] float32
    returns: [N, 1] float32
    """
    N, D = x.shape
    num_layers = len(weights)
    num_hidden = num_layers - 1

    # Clamp the tile for small N (avoid over-padding), keep it a multiple of
    # 128 so the output slab stays lane-dense (unmasked vector stores).
    tm = min(tm, max(128, ((N + 127) // 128) * 128))
    n_pad = ((N + tm - 1) // tm) * tm
    if n_pad != N:
        x = jnp.pad(x, ((0, n_pad - N), (0, 0)))
    grid = (n_pad // tm,)

    args = [x]
    in_specs = [pl.BlockSpec((tm, D), lambda i: (i, 0))]
    # Hidden-layer params: tiny, full-extent blocks, constant index_map ->
    # resident in VMEM across the whole grid.
    for l in range(num_hidden):
        w = weights[l].astype(jnp.bfloat16)
        b = biases[l].astype(jnp.float32)
        args += [w, b]
        in_specs += [
            pl.BlockSpec(w.shape, lambda i: (0, 0)),
            pl.BlockSpec(b.shape, lambda i: (0, 0)),
        ]
    # Final layer: weight as a bf16 row vector [1, in_last], scalar bias [1, 1].
    w_last = weights[-1].T.astype(jnp.bfloat16)
    b_last = biases[-1].astype(jnp.float32)
    args += [w_last, b_last]
    in_specs += [
        pl.BlockSpec(w_last.shape, lambda i: (0, 0)),
        pl.BlockSpec(b_last.shape, lambda i: (0, 0)),
    ]

    out = pl.pallas_call(
        functools.partial(_mlp_kernel, num_hidden),
        out_shape=jax.ShapeDtypeStruct((1, n_pad), jnp.float32),
        grid_spec=pltpu.PrefetchScalarGridSpec(
            num_scalar_prefetch=0,
            grid=grid,
            in_specs=in_specs,
            # Lane-dense output: one [1, tm] slab per grid step.
            out_specs=pl.BlockSpec((1, tm), lambda i: (0, i)),
        ),
        compiler_params=pltpu.CompilerParams(
            dimension_semantics=("parallel",)),
    )(*args)

    return out.reshape(n_pad, 1)[:N]


def init_params(key, descriptor_dim, fc_dims):
    """Deterministic init matching nn.Linear's shapes (uniform +-1/sqrt(fan_in))."""
    input_dims = [descriptor_dim] + list(fc_dims)
    output_dims = list(fc_dims) + [1]
    weights, biases = [], []
    for in_dim, out_dim in zip(input_dims, output_dims):
        key, kw, kb = jax.random.split(key, 3)
        bound = 1.0 / (in_dim ** 0.5)
        # stored already transposed: [in_dim, out_dim]
        w = jax.random.uniform(kw, (in_dim, out_dim), jnp.float32, -bound, bound)
        b = jax.random.uniform(kb, (1, out_dim), jnp.float32, -bound, bound)
        weights.append(w)
        biases.append(b)
    return weights, biases


def reference_forward(x, weights, biases):
    h = x
    for l, (w, b) in enumerate(zip(weights, biases)):
        h = h @ w + b
        if l < len(weights) - 1:
            h = jax.nn.sigmoid(h)
    return h


if __name__ == "__main__":
    descriptor_dim = 32
    fc_dims = [32, 16]
    N = 1000  # deliberately not a multiple of the tile -> exercises padding path

    key = jax.random.PRNGKey(0)
    key, kx = jax.random.split(key)
    x = jax.random.normal(kx, (N, descriptor_dim), jnp.float32)
    weights, biases = init_params(key, descriptor_dim, fc_dims)

    out = nnemb_forward(x, weights, biases)
    out = jax.block_until_ready(out)

    ref = reference_forward(x, weights, biases)
    assert out.shape == (N, 1)
    # bf16 MXU operands (f32 accumulation) -> slightly looser tolerance vs f32 ref.
    assert jnp.allclose(out, ref, atol=2e-2, rtol=2e-2), "mismatch vs reference"

    print("KERNEL_OK")
</pallas_src>

<mosaic_0001>
module attributes {stable_mosaic.version = 11 : i64} {
  func.func @_mlp_kernel(%arg0: i32, %arg1: memref<1024x32xf32, #tpu.memory_space<vmem>>, %arg2: memref<32x32xbf16, #tpu.memory_space<vmem>>, %arg3: memref<1x32xf32, #tpu.memory_space<vmem>>, %arg4: memref<32x16xbf16, #tpu.memory_space<vmem>>, %arg5: memref<1x16xf32, #tpu.memory_space<vmem>>, %arg6: memref<1x16xbf16, #tpu.memory_space<vmem>>, %arg7: memref<1x1xf32, #tpu.memory_space<vmem>>, %arg8: memref<1x1024xf32, #tpu.memory_space<vmem>>) attributes {dimension_semantics = [#tpu.dimension_semantics<parallel>], iteration_bounds = array<i64: 1>, scalar_prefetch = 0 : i64, scratch_operands = 0 : i64, tpu.core_type = #tpu.core_type<tc>, window_params = [{transform_indices = @transform_0, window_bounds = array<i64: 1024, 32>}, {pipeline_mode = #tpu.pipeline_mode<synchronous>, transform_indices = @transform_1, window_bounds = array<i64: 32, 32>}, {pipeline_mode = #tpu.pipeline_mode<synchronous>, transform_indices = @transform_2, window_bounds = array<i64: 1, 32>}, {pipeline_mode = #tpu.pipeline_mode<synchronous>, transform_indices = @transform_3, window_bounds = array<i64: 32, 16>}, {pipeline_mode = #tpu.pipeline_mode<synchronous>, transform_indices = @transform_4, window_bounds = array<i64: 1, 16>}, {pipeline_mode = #tpu.pipeline_mode<synchronous>, transform_indices = @transform_5, window_bounds = array<i64: 1, 16>}, {pipeline_mode = #tpu.pipeline_mode<synchronous>, transform_indices = @transform_6, window_bounds = array<i64: 1, 1>}, {transform_indices = @transform_7, window_bounds = array<i64: 1, 1024>}]} {
    %c0 = arith.constant 0 : index
    %c0_0 = arith.constant 0 : index
    %0 = vector.load %arg1[%c0, %c0_0] : memref<1024x32xf32, #tpu.memory_space<vmem>>, vector<1024x32xf32>
    %1 = arith.truncf %0 : vector<1024x32xf32> to vector<1024x32xbf16>
    %c0_1 = arith.constant 0 : index
    %c0_2 = arith.constant 0 : index
    %2 = vector.load %arg2[%c0_1, %c0_2] : memref<32x32xbf16, #tpu.memory_space<vmem>>, vector<32x32xbf16>
    %c0_3 = arith.constant 0 : index
    %c0_4 = arith.constant 0 : index
    %3 = vector.load %arg3[%c0_3, %c0_4] : memref<1x32xf32, #tpu.memory_space<vmem>>, vector<1x32xf32>
    %cst = arith.constant dense<0.000000e+00> : vector<1024x32xf32>
    %4 = tpu.matmul %1, %2, %cst {dimension_numbers = #tpu.dot_dimension_numbers<[1], [0], [0], [1], [0, 0, 1, 1], [], []>} : vector<1024x32xbf16>, vector<32x32xbf16>, vector<1024x32xf32> -> vector<1024x32xf32>
    %5 = vector.broadcast %3 : vector<1x32xf32> to vector<1024x32xf32>
    %6 = arith.addf %4, %5 : vector<1024x32xf32>
    %cst_5 = arith.constant 5.000000e-01 : f32
    %7 = vector.broadcast %cst_5 : f32 to vector<1024x32xf32>
    %8 = arith.mulf %7, %6 : vector<1024x32xf32>
    %9 = math.tanh %8 : vector<1024x32xf32>
    %cst_6 = arith.constant 1.000000e+00 : f32
    %10 = vector.broadcast %cst_6 : f32 to vector<1024x32xf32>
    %11 = arith.addf %9, %10 : vector<1024x32xf32>
    %cst_7 = arith.constant 5.000000e-01 : f32
    %12 = vector.broadcast %cst_7 : f32 to vector<1024x32xf32>
    %13 = arith.mulf %12, %11 : vector<1024x32xf32>
    %14 = arith.truncf %13 : vector<1024x32xf32> to vector<1024x32xbf16>
    %c0_8 = arith.constant 0 : index
    %c0_9 = arith.constant 0 : index
    %15 = vector.load %arg4[%c0_8, %c0_9] : memref<32x16xbf16, #tpu.memory_space<vmem>>, vector<32x16xbf16>
    %c0_10 = arith.constant 0 : index
    %c0_11 = arith.constant 0 : index
    %16 = vector.load %arg5[%c0_10, %c0_11] : memref<1x16xf32, #tpu.memory_space<vmem>>, vector<1x16xf32>
    %cst_12 = arith.constant dense<0.000000e+00> : vector<1024x16xf32>
    %17 = tpu.matmul %14, %15, %cst_12 {dimension_numbers = #tpu.dot_dimension_numbers<[1], [0], [0], [1], [0, 0, 1, 1], [], []>} : vector<1024x32xbf16>, vector<32x16xbf16>, vector<1024x16xf32> -> vector<1024x16xf32>
    %18 = vector.broadcast %16 : vector<1x16xf32> to vector<1024x16xf32>
    %19 = arith.addf %17, %18 : vector<1024x16xf32>
    %cst_13 = arith.constant 5.000000e-01 : f32
    %20 = vector.broadcast %cst_13 : f32 to vector<1024x16xf32>
    %21 = arith.mulf %20, %19 : vector<1024x16xf32>
    %22 = math.tanh %21 : vector<1024x16xf32>
    %cst_14 = arith.constant 1.000000e+00 : f32
    %23 = vector.broadcast %cst_14 : f32 to vector<1024x16xf32>
    %24 = arith.addf %22, %23 : vector<1024x16xf32>
    %cst_15 = arith.constant 5.000000e-01 : f32
    %25 = vector.broadcast %cst_15 : f32 to vector<1024x16xf32>
    %26 = arith.mulf %25, %24 : vector<1024x16xf32>
    %27 = arith.truncf %26 : vector<1024x16xf32> to vector<1024x16xbf16>
    %c0_16 = arith.constant 0 : index
    %c0_17 = arith.constant 0 : index
    %28 = vector.load %arg6[%c0_16, %c0_17] : memref<1x16xbf16, #tpu.memory_space<vmem>>, vector<1x16xbf16>
    %cst_18 = arith.constant dense<0.000000e+00> : vector<1x1024xf32>
    %29 = tpu.matmul %28, %27, %cst_18 {dimension_numbers = #tpu.dot_dimension_numbers<[1], [1], [0], [0], [0, 0, 1, 0], [], []>} : vector<1x16xbf16>, vector<1024x16xbf16>, vector<1x1024xf32> -> vector<1x1024xf32>
    %c0_19 = arith.constant 0 : index
    %c0_20 = arith.constant 0 : index
    %30 = vector.load %arg7[%c0_19, %c0_20] : memref<1x1xf32, #tpu.memory_space<vmem>>, vector<1x1xf32>
    %31 = vector.broadcast %30 : vector<1x1xf32> to vector<1x1024xf32>
    %32 = arith.addf %29, %31 : vector<1x1024xf32>
    %c0_21 = arith.constant 0 : index
    %c0_22 = arith.constant 0 : index
    %33 = vector.load %arg8[%c0_21, %c0_22] : memref<1x1024xf32, #tpu.memory_space<vmem>>, vector<1x1024xf32>
    tpu.vector_store %arg8[%c0_21, %c0_22], %32 {strides = array<i32>} : memref<1x1024xf32, #tpu.memory_space<vmem>>, vector<1x1024xf32>,
    return
  }
  func.func @transform_0(%arg0: i32) -> (i32, i32) {
    %c0_i32 = arith.constant 0 : i32
    %c0_i32_0 = arith.constant 0 : i32
    return %arg0, %c0_i32 : i32, i32
  }
  func.func @transform_1(%arg0: i32) -> (i32, i32) {
    %c0_i32 = arith.constant 0 : i32
    %c0_i32_0 = arith.constant 0 : i32
    %c0_i32_1 = arith.constant 0 : i32
    return %c0_i32, %c0_i32_0 : i32, i32
  }
  func.func @transform_2(%arg0: i32) -> (i32, i32) {
    %c0_i32 = arith.constant 0 : i32
    %c0_i32_0 = arith.constant 0 : i32
    %c0_i32_1 = arith.constant 0 : i32
    return %c0_i32, %c0_i32_0 : i32, i32
  }
  func.func @transform_3(%arg0: i32) -> (i32, i32) {
    %c0_i32 = arith.constant 0 : i32
    %c0_i32_0 = arith.constant 0 : i32
    %c0_i32_1 = arith.constant 0 : i32
    return %c0_i32, %c0_i32_0 : i32, i32
  }
  func.func @transform_4(%arg0: i32) -> (i32, i32) {
    %c0_i32 = arith.constant 0 : i32
    %c0_i32_0 = arith.constant 0 : i32
    %c0_i32_1 = arith.constant 0 : i32
    return %c0_i32, %c0_i32_0 : i32, i32
  }
  func.func @transform_5(%arg0: i32) -> (i32, i32) {
    %c0_i32 = arith.constant 0 : i32
    %c0_i32_0 = arith.constant 0 : i32
    %c0_i32_1 = arith.constant 0 : i32
    return %c0_i32, %c0_i32_0 : i32, i32
  }
  func.func @transform_6(%arg0: i32) -> (i32, i32) {
    %c0_i32 = arith.constant 0 : i32
    %c0_i32_0 = arith.constant 0 : i32
    %c0_i32_1 = arith.constant 0 : i32
    return %c0_i32, %c0_i32_0 : i32, i32
  }
  func.func @transform_7(%arg0: i32) -> (i32, i32) {
    %c0_i32 = arith.constant 0 : i32
    %c0_i32_0 = arith.constant 0 : i32
    return %c0_i32, %arg0 : i32, i32
  }
}

</mosaic_0001>

<bundles_post_ra>
// kernel: tpu_custom_call.1
= control target key start
LH: loop header
LB: loop body
LE: loop exit
PB: predicated region body
PF: predicated region fallthrough
CT: control target
= control target key end

     0   :  { %s5878_s0 = inlined_call_operand.vmem [shape: f32[1024,32], index: 0, kind: input, shape index: {}]   ;;  %s5879_s1 = inlined_call_operand.vmem [shape: bf16[32,32], index: 1, kind: input, shape index: {}]   ;;  %s5880_s2 = inlined_call_operand.vmem [shape: f32[1,32], index: 2, kind: input, shape index: {}]   ;;  %s5881_s3 = inlined_call_operand.vmem [shape: bf16[32,16], index: 3, kind: input, shape index: {}]   ;;  %s5882_s4 = inlined_call_operand.vmem [shape: f32[1,16], index: 4, kind: input, shape index: {}]   ;;  %s5883_s5 = inlined_call_operand.vmem [shape: bf16[1,16], index: 5, kind: input, shape index: {}]   ;;  %s5884_s6 = inlined_call_operand.<no memory space> [shape: f32[1,1], index: 6, kind: input, shape index: {}]   ;;  %s5885_s7 = inlined_call_operand.hbm [shape: f32[1,1024], index: 7, kind: output, shape index: {}]  }
   0x1   :  { %v12_v0 = vstv %s5884_s6 }
   0x2   :  { %13 = vst [vmem:[#allocation2] sm:$0x1] %v12_v0 }
   0x3   :  { %v3981_v1 = vld [vmem:[%s5879_s1 + $0x8] sm:$0xff]   ;;  %v3982_v2 = vld [vmem:[%s5879_s1] sm:$0xff]   ;;  %vm245_vm0 = vcmask 261120   ;;  %v32_v6 = vld [vmem:[%s5878_s0 + $0x10] sm:$0xff] }
   0x4   :  { %3681 = vmatprep.subr.bf16.mxu0 %v3981_v1  ;;  %v30_v3 = vld [vmem:[%s5878_s0] sm:$0xff]  ;;  %v31_v4 = vld [vmem:[%s5878_s0 + $0x8] sm:$0xff]  ;;  %v33_v7 = vld [vmem:[%s5878_s0 + $0x18] sm:$0xff] }
   0x5   :  { %3682 = vmatpush3.bf16.msra.mxu0 %v3981_v1  ;;  %v158_v5 = vpack.c.bf16 %v31_v4, %v30_v3  ;;  %v34_v8 = vld [vmem:[%s5878_s0 + $0x20] sm:$0xff]  ;;  %v35_v9 = vld [vmem:[%s5878_s0 + $0x28] sm:$0xff]  ;;  %v159_v10 = vpack.c.bf16 %v33_v7, %v32_v6  ;;  %v36_v12 = vld [vmem:[%s5878_s0 + $0x30] sm:$0xff] }
   0x6   :  { %3683 = vmatprep.subr.bf16.mxu0 %v3982_v2  ;;  %v160_v11 = vpack.c.bf16 %v35_v9, %v34_v8  ;;  %v37_v13 = vld [vmem:[%s5878_s0 + $0x38] sm:$0xff]  ;;  %v38_v14 = vld [vmem:[%s5878_s0 + $0x40] sm:$0xff]  ;;  %v39_v15 = vld [vmem:[%s5878_s0 + $0x48] sm:$0xff] }
   0x7   :  { %3685 = vmatprep.mubr.msk.bf16.mxu0 %vm245_vm0, %v158_v5  ;;  %v161_v16 = vpack.c.bf16 %v37_v13, %v36_v12  ;;  %v162_v17 = vpack.c.bf16 %v39_v15, %v38_v14  ;;  %v40_v18 = vld [vmem:[%s5878_s0 + $0x50] sm:$0xff]  ;;  %v41_v19 = vld [vmem:[%s5878_s0 + $0x58] sm:$0xff]  ;;  %v42_v20 = vld [vmem:[%s5878_s0 + $0x60] sm:$0xff] }
   0x8   :  { %v43_v21 = vld [vmem:[%s5878_s0 + $0x68] sm:$0xff]  ;;  %v163_v22 = vpack.c.bf16 %v41_v19, %v40_v18  ;;  %v44_v24 = vld [vmem:[%s5878_s0 + $0x70] sm:$0xff]  ;;  %v45_v25 = vld [vmem:[%s5878_s0 + $0x78] sm:$0xff] }
   0x9   :  { %3684 = vmatpush3.bf16.msra.mxu0 %v3982_v2  ;;  %v164_v23 = vpack.c.bf16 %v43_v21, %v42_v20  ;;  %v46_v26 = vld [vmem:[%s5878_s0 + $0x80] sm:$0xff]  ;;  %v47_v27 = vld [vmem:[%s5878_s0 + $0x88] sm:$0xff]  ;;  %v165_v28 = vpack.c.bf16 %v45_v25, %v44_v24 }
   0xc   :  { %3686 = vmatmul.mubr.msk.bf16.vlgmr.msra.gmra.mxu0 %vm245_vm0, %v159_v10 }
   0xd   :  { %3689 = vmatprep.mubr.msk.bf16.mxu0 %vm245_vm0, %v160_v11 }
  0x14   :  { %3690 = vmatmul.mubr.msk.bf16.gmra.mxu0 %vm245_vm0, %v161_v16 }
  0x15   :  { %3693 = vmatprep.mubr.msk.bf16.mxu0 %vm245_vm0, %v162_v17 }
  0x1c   :  { %3694 = vmatmul.mubr.msk.bf16.gmra.mxu0 %vm245_vm0, %v163_v22 }
  0x1d   :  { %3697 = vmatprep.mubr.msk.bf16.mxu0 %vm245_vm0, %v164_v23 }
  0x1e   :  { %14 = vsyncpa [#allocation4], 0  ;;  %v166_v29 = vpack.c.bf16 %v47_v27, %v46_v26  ;;  %v48_v30 = vld [vmem:[%s5878_s0 + $0x90] sm:$0xff]  ;;  %v49_v31 = vld [vmem:[%s5878_s0 + $0x98] sm:$0xff]  ;;  %vm2906_vm1 = vcmask 130048  }
  0x1f   :  { %v50_v32 = vld [vmem:[%s5878_s0 + $0xa0] sm:$0xff]  ;;  %v51_v33 = vld [vmem:[%s5878_s0 + $0xa8] sm:$0xff]  ;;  %v167_v34 = vpack.c.bf16 %v49_v31, %v48_v30  ;;  %v52_v36 = vld [vmem:[%s5878_s0 + $0xb0] sm:$0xff] }
  0x20   :  { %v168_v35 = vpack.c.bf16 %v51_v33, %v50_v32  ;;  %v53_v37 = vld [vmem:[%s5878_s0 + $0xb8] sm:$0xff]  ;;  %v54_v38 = vld [vmem:[%s5878_s0 + $0xc0] sm:$0xff]  ;;  %v55_v39 = vld [vmem:[%s5878_s0 + $0xc8] sm:$0xff] }
  0x21   :  { %v169_v40 = vpack.c.bf16 %v53_v37, %v52_v36  ;;  %v170_v41 = vpack.c.bf16 %v55_v39, %v54_v38  ;;  %v56_v42 = vld [vmem:[%s5878_s0 + $0xd0] sm:$0xff]  ;;  %v57_v43 = vld [vmem:[%s5878_s0 + $0xd8] sm:$0xff]  ;;  %v58_v44 = vld [vmem:[%s5878_s0 + $0xe0] sm:$0xff] }
  0x22   :  { %v59_v45 = vld [vmem:[%s5878_s0 + $0xe8] sm:$0xff]  ;;  %v171_v46 = vpack.c.bf16 %v57_v43, %v56_v42  ;;  %v60_v48 = vld [vmem:[%s5878_s0 + $0xf0] sm:$0xff]  ;;  %v61_v49 = vld [vmem:[%s5878_s0 + $0xf8] sm:$0xff] }
  0x23   :  { %v172_v47 = vpack.c.bf16 %v59_v45, %v58_v44  ;;  %v62_v50 = vld [vmem:[%s5878_s0 + $0x100] sm:$0xff]  ;;  %v63_v51 = vld [vmem:[%s5878_s0 + $0x108] sm:$0xff]  ;;  %v173_v52 = vpack.c.bf16 %v61_v49, %v60_v48  ;;  %v64_v54 = vld [vmem:[%s5878_s0 + $0x110] sm:$0xff] }
  0x24   :  { %3698 = vmatmul.mubr.msk.bf16.gmra.mxu0 %vm245_vm0, %v165_v28  ;;  %v174_v53 = vpack.c.bf16 %v63_v51, %v62_v50  ;;  %v65_v55 = vld [vmem:[%s5878_s0 + $0x118] sm:$0xff]  ;;  %v66_v56 = vld [vmem:[%s5878_s0 + $0x120] sm:$0xff]  ;;  %v67_v57 = vld [vmem:[%s5878_s0 + $0x128] sm:$0xff] }
  0x25   :  { %3701 = vmatprep.mubr.msk.bf16.mxu0 %vm245_vm0, %v166_v29  ;;  %v175_v58 = vpack.c.bf16 %v65_v55, %v64_v54  ;;  %v176_v59 = vpack.c.bf16 %v67_v57, %v66_v56  ;;  %v68_v60 = vld [vmem:[%s5878_s0 + $0x130] sm:$0xff]  ;;  %v69_v61 = vld [vmem:[%s5878_s0 + $0x138] sm:$0xff]  ;;  %v70_v62 = vld [vmem:[%s5878_s0 + $0x140] sm:$0xff] }
  0x26   :  { %v71_v63 = vld [vmem:[%s5878_s0 + $0x148] sm:$0xff]  ;;  %v177_v0 = vpack.c.bf16 %v69_v61, %v68_v60  ;;  %v72_v2 = vld [vmem:[%s5878_s0 + $0x150] sm:$0xff]  ;;  %v73_v3 = vld [vmem:[%s5878_s0 + $0x158] sm:$0xff] }
  0x27   :  { %v178_v1 = vpack.c.bf16 %v71_v63, %v70_v62  ;;  %v74_v4 = vld [vmem:[%s5878_s0 + $0x160] sm:$0xff]  ;;  %v75_v5 = vld [vmem:[%s5878_s0 + $0x168] sm:$0xff]  ;;  %v179_v6 = vpack.c.bf16 %v73_v3, %v72_v2  ;;  %v76_v8 = vld [vmem:[%s5878_s0 + $0x170] sm:$0xff] }
  0x28   :  { %v180_v7 = vpack.c.bf16 %v75_v5, %v74_v4  ;;  %v77_v9 = vld [vmem:[%s5878_s0 + $0x178] sm:$0xff]  ;;  %v78_v10 = vld [vmem:[%s5878_s0 + $0x180] sm:$0xff]  ;;  %v79_v11 = vld [vmem:[%s5878_s0 + $0x188] sm:$0xff] }
  0x29   :  { %v181_v12 = vpack.c.bf16 %v77_v9, %v76_v8  ;;  %v182_v13 = vpack.c.bf16 %v79_v11, %v78_v10  ;;  %v3983_v14 = vld [vmem:[%s5881_s3 + $0x8] sm:$0xff]   ;;  %v80_v15 = vld [vmem:[%s5878_s0 + $0x190] sm:$0xff]  ;;  %v81_v16 = vld [vmem:[%s5878_s0 + $0x198] sm:$0xff] }
  0x2a   :  { %3813 = vmatprep.subr.bf16.mxu1 %v3983_v14  ;;  %v82_v17 = vld [vmem:[%s5878_s0 + $0x1a0] sm:$0xff]  ;;  %v83_v18 = vld [vmem:[%s5878_s0 + $0x1a8] sm:$0xff]  ;;  %v183_v20 = vpack.c.bf16 %v81_v16, %v80_v15  ;;  %v84_v22 = vld [vmem:[%s5878_s0 + $0x1b0] sm:$0xff] }
  0x2b   :  { %3814 = vmatpush3.bf16.msra.mxu1 %v3983_v14  ;;  %v3984_v19 = vld [vmem:[%s5881_s3] sm:$0xff]   ;;  %v184_v21 = vpack.c.bf16 %v83_v18, %v82_v17  ;;  %v85_v23 = vld [vmem:[%s5878_s0 + $0x1b8] sm:$0xff]  ;;  %v87_v25 = vld [vmem:[%s5878_s0 + $0x1c8] sm:$0xff] }
  0x2c   :  { %3702 = vmatmul.mubr.msk.bf16.gmra.mxu0 %vm245_vm0, %v167_v34  ;;  %3815 = vmatprep.subr.bf16.mxu1 %v3984_v19  ;;  %v86_v24 = vld [vmem:[%s5878_s0 + $0x1c0] sm:$0xff]  ;;  %v185_v26 = vpack.c.bf16 %v85_v23, %v84_v22  ;;  %v88_v28 = vld [vmem:[%s5878_s0 + $0x1d0] sm:$0xff]  ;;  %v89_v29 = vld [vmem:[%s5878_s0 + $0x1d8] sm:$0xff] }
  0x2d   :  { %3705 = vmatprep.mubr.msk.bf16.mxu0 %vm245_vm0, %v168_v35  ;;  %v186_v27 = vpack.c.bf16 %v87_v25, %v86_v24  ;;  %v90_v30 = vld [vmem:[%s5878_s0 + $0x1e0] sm:$0xff]  ;;  %v91_v31 = vld [vmem:[%s5878_s0 + $0x1e8] sm:$0xff]  ;;  %v187_v32 = vpack.c.bf16 %v89_v29, %v88_v28  ;;  %v92_v34 = vld [vmem:[%s5878_s0 + $0x1f0] sm:$0xff] }
  0x2e   :  { %v188_v33 = vpack.c.bf16 %v91_v31, %v90_v30  ;;  %v93_v35 = vld [vmem:[%s5878_s0 + $0x1f8] sm:$0xff]  ;;  %v94_v36 = vld [vmem:[%s5878_s0 + $0x200] sm:$0xff]  ;;  %v95_v37 = vld [vmem:[%s5878_s0 + $0x208] sm:$0xff] }
  0x2f   :  { %3816 = vmatpush3.bf16.msra.mxu1 %v3984_v19  ;;  %v189_v38 = vpack.c.bf16 %v93_v35, %v92_v34  ;;  %v190_v39 = vpack.c.bf16 %v95_v37, %v94_v36  ;;  %v98_v42 = vld [vmem:[%s5878_s0 + $0x220] sm:$0xff]  ;;  %v99_v43 = vld [vmem:[%s5878_s0 + $0x228] sm:$0xff]  ;;  %v124_v18 = vld [vmem:[%s5878_s0 + $0x2f0] sm:$0xff] }
  0x30   :  { %v192_v45 = vpack.c.bf16 %v99_v43, %v98_v42  ;;  %v102_v48 = vld [vmem:[%s5878_s0 + $0x240] sm:$0xff]  ;;  %v103_v49 = vld [vmem:[%s5878_s0 + $0x248] sm:$0xff]  ;;  %v125_v19 = vld [vmem:[%s5878_s0 + $0x2f8] sm:$0xff] }
  0x31   :  { %v194_v51 = vpack.c.bf16 %v103_v49, %v102_v48  ;;  %v106_v54 = vld [vmem:[%s5878_s0 + $0x260] sm:$0xff]  ;;  %v107_v55 = vld [vmem:[%s5878_s0 + $0x268] sm:$0xff]  ;;  %v205_v22 = vpack.c.bf16 %v125_v19, %v124_v18  ;;  %v128_v24 = vld [vmem:[%s5878_s0 + $0x310] sm:$0xff] }
  0x32   :  { %v196_v57 = vpack.c.bf16 %v107_v55, %v106_v54  ;;  %v110_v60 = vld [vmem:[%s5878_s0 + $0x280] sm:$0xff]  ;;  %v111_v61 = vld [vmem:[%s5878_s0 + $0x288] sm:$0xff]  ;;  %v129_v25 = vld [vmem:[%s5878_s0 + $0x318] sm:$0xff] }
  0x33   :  { %v198_v63 = vpack.c.bf16 %v111_v61, %v110_v60  ;;  %v114_v2 = vld [vmem:[%s5878_s0 + $0x2a0] sm:$0xff]  ;;  %v115_v3 = vld [vmem:[%s5878_s0 + $0x2a8] sm:$0xff]  ;;  %v207_v28 = vpack.c.bf16 %v129_v25, %v128_v24  ;;  %v133_v34 = vld [vmem:[%s5878_s0 + $0x338] sm:$0xff] }
  0x34   :  { %3706 = vmatmul.mubr.msk.bf16.gmra.mxu0 %vm245_vm0, %v169_v40  ;;  %v96_v40 = vld [vmem:[%s5878_s0 + $0x210] sm:$0xff]  ;;  %v200_v5 = vpack.c.bf16 %v115_v3, %v114_v2  ;;  %v118_v8 = vld [vmem:[%s5878_s0 + $0x2c0] sm:$0xff]  ;;  %v119_v9 = vld [vmem:[%s5878_s0 + $0x2c8] sm:$0xff] }
  0x35   :  { %3709 = vmatprep.mubr.msk.bf16.mxu0 %vm245_vm0, %v170_v41  ;;  %v97_v41 = vld [vmem:[%s5878_s0 + $0x218] sm:$0xff]  ;;  %v202_v11 = vpack.c.bf16 %v119_v9, %v118_v8  ;;  %v122_v14 = vld [vmem:[%s5878_s0 + $0x2e0] sm:$0xff]  ;;  %v123_v15 = vld [vmem:[%s5878_s0 + $0x2e8] sm:$0xff] }
  0x36   :  { %v191_v44 = vpack.c.bf16 %v97_v41, %v96_v40  ;;  %v204_v17 = vpack.c.bf16 %v123_v15, %v122_v14  ;;  %v4940_v30 = vld [vmem:[%s5880_s2] ss:$0 sm:$0xff]  ;;  %v135_v37 = vld [vmem:[%s5878_s0 + $0x348] sm:$0xff] }
  0x37   :  { %v134_v36 = vld [vmem:[%s5878_s0 + $0x340] sm:$0xff]  ;;  %v139_v55 = vld [vmem:[%s5878_s0 + $0x368] sm:$0xff] }
  0x38   :  { %v138_v54 = vld [vmem:[%s5878_s0 + $0x360] sm:$0xff]  ;;  %v143_v9 = vld [vmem:[%s5878_s0 + $0x388] sm:$0xff] }
  0x39   :  { %v142_v8 = vld [vmem:[%s5878_s0 + $0x380] sm:$0xff] }
  0x3a   :  { %v214_v18 = vpack.c.bf16 %v143_v9, %v142_v8 }
  0x3c   :  { %3710 = vmatmul.mubr.msk.bf16.gmra.mxu0 %vm245_vm0, %v171_v46  ;;  %v100_v46 = vld [vmem:[%s5878_s0 + $0x230] sm:$0xff] }
  0x3d   :  { %3713 = vmatprep.mubr.msk.bf16.mxu0 %vm245_vm0, %v172_v47  ;;  %v101_v47 = vld [vmem:[%s5878_s0 + $0x238] sm:$0xff] }
  0x3e   :  { %v193_v50 = vpack.c.bf16 %v101_v47, %v100_v46 }
  0x44   :  { %3714 = vmatmul.mubr.msk.bf16.gmra.mxu0 %vm245_vm0, %v173_v52  ;;  %v104_v52 = vld [vmem:[%s5878_s0 + $0x250] sm:$0xff] }
  0x45   :  { %3717 = vmatprep.mubr.msk.bf16.mxu0 %vm245_vm0, %v174_v53  ;;  %v105_v53 = vld [vmem:[%s5878_s0 + $0x258] sm:$0xff] }
  0x46   :  { %v195_v56 = vpack.c.bf16 %v105_v53, %v104_v52  ;;  %v137_v52 = vld [vmem:[%s5878_s0 + $0x358] sm:$0xff] }
  0x4c   :  { %3718 = vmatmul.mubr.msk.bf16.gmra.mxu0 %vm245_vm0, %v175_v58  ;;  %v108_v58 = vld [vmem:[%s5878_s0 + $0x270] sm:$0xff] }
  0x4d   :  { %3721 = vmatprep.mubr.msk.bf16.mxu0 %vm245_vm0, %v176_v59  ;;  %v109_v59 = vld [vmem:[%s5878_s0 + $0x278] sm:$0xff] }
  0x4e   :  { %v197_v62 = vpack.c.bf16 %v109_v59, %v108_v58 }
  0x54   :  { %3722 = vmatmul.mubr.msk.bf16.gmra.mxu0 %vm245_vm0, %v177_v0  ;;  %v112_v0 = vld [vmem:[%s5878_s0 + $0x290] sm:$0xff] }
  0x55   :  { %3725 = vmatprep.mubr.msk.bf16.mxu0 %vm245_vm0, %v178_v1  ;;  %v113_v1 = vld [vmem:[%s5878_s0 + $0x298] sm:$0xff] }
  0x56   :  { %v199_v4 = vpack.c.bf16 %v113_v1, %v112_v0 }
  0x5c   :  { %3726 = vmatmul.mubr.msk.bf16.gmra.mxu0 %vm245_vm0, %v179_v6  ;;  %v116_v6 = vld [vmem:[%s5878_s0 + $0x2b0] sm:$0xff] }
  0x5d   :  { %3729 = vmatprep.mubr.msk.bf16.mxu0 %vm245_vm0, %v180_v7  ;;  %v117_v7 = vld [vmem:[%s5878_s0 + $0x2b8] sm:$0xff] }
  0x5e   :  { %v201_v10 = vpack.c.bf16 %v117_v7, %v116_v6  ;;  %v141_v6 = vld [vmem:[%s5878_s0 + $0x378] sm:$0xff] }
  0x64   :  { %3730 = vmatmul.mubr.msk.bf16.gmra.mxu0 %vm245_vm0, %v181_v12  ;;  %v120_v12 = vld [vmem:[%s5878_s0 + $0x2d0] sm:$0xff] }
  0x65   :  { %3733 = vmatprep.mubr.msk.bf16.mxu0 %vm245_vm0, %v182_v13  ;;  %v121_v13 = vld [vmem:[%s5878_s0 + $0x2d8] sm:$0xff] }
  0x66   :  { %v203_v16 = vpack.c.bf16 %v121_v13, %v120_v12 }
  0x6c   :  { %3734 = vmatmul.mubr.msk.bf16.gmra.mxu0 %vm245_vm0, %v183_v20  ;;  %v126_v20 = vld [vmem:[%s5878_s0 + $0x300] sm:$0xff] }
  0x6d   :  { %3737 = vmatprep.mubr.msk.bf16.mxu0 %vm245_vm0, %v184_v21  ;;  %v127_v21 = vld [vmem:[%s5878_s0 + $0x308] sm:$0xff] }
  0x6e   :  { %v206_v23 = vpack.c.bf16 %v127_v21, %v126_v20 }
  0x74   :  { %3738 = vmatmul.mubr.msk.bf16.gmra.mxu0 %vm245_vm0, %v185_v26  ;;  %v130_v26 = vld [vmem:[%s5878_s0 + $0x320] sm:$0xff] }
  0x75   :  { %3741 = vmatprep.mubr.msk.bf16.mxu0 %vm245_vm0, %v186_v27  ;;  %v131_v27 = vld [vmem:[%s5878_s0 + $0x328] sm:$0xff] }
  0x76   :  { %v208_v29 = vpack.c.bf16 %v131_v27, %v130_v26 }
  0x7c   :  { %3742 = vmatmul.mubr.msk.bf16.gmra.mxu0 %vm245_vm0, %v187_v32 }
  0x7d   :  { %3745 = vmatprep.mubr.msk.bf16.mxu0 %vm245_vm0, %v188_v33  ;;  %v132_v33 = vld [vmem:[%s5878_s0 + $0x330] sm:$0xff] }
  0x7e   :  { %v209_v41 = vpack.c.bf16 %v133_v34, %v132_v33 }
  0x84   :  { %3746 = vmatmul.mubr.msk.bf16.gmra.mxu0 %vm245_vm0, %v189_v38 }
  0x85   :  { %3749 = vmatprep.mubr.msk.bf16.mxu0 %vm245_vm0, %v190_v39 }
  0x8c   :  { %3750 = vmatmul.mubr.msk.bf16.gmra.mxu0 %vm245_vm0, %v191_v44  ;;  %v210_v44 = vpack.c.bf16 %v135_v37, %v134_v36  ;;  %v147_v36 = vld [vmem:[%s5878_s0 + $0x3a8] sm:$0xff] }
  0x8d   :  { %3753 = vmatprep.mubr.msk.bf16.mxu0 %vm245_vm0, %v192_v45 }
  0x94   :  { %3754 = vmatmul.mubr.msk.bf16.gmra.mxu0 %vm245_vm0, %v193_v50 }
  0x95   :  { %3757 = vmatprep.mubr.msk.bf16.mxu0 %vm245_vm0, %v194_v51  ;;  %v136_v51 = vld [vmem:[%s5878_s0 + $0x350] sm:$0xff] }
  0x96   :  { %v211_v59 = vpack.c.bf16 %v137_v52, %v136_v51 }
  0x9c   :  { %3758 = vmatmul.mubr.msk.bf16.gmra.mxu0 %vm245_vm0, %v195_v56 }
  0x9d   :  { %3761 = vmatprep.mubr.msk.bf16.mxu0 %vm245_vm0, %v196_v57 }
  0xa4   :  { %3762 = vmatmul.mubr.msk.bf16.gmra.mxu0 %vm245_vm0, %v197_v62  ;;  %v212_v62 = vpack.c.bf16 %v139_v55, %v138_v54 }
  0xa5   :  { %3765 = vmatprep.mubr.msk.bf16.mxu0 %vm245_vm0, %v198_v63 }
  0xac   :  { %3766 = vmatmul.mubr.msk.bf16.gmra.mxu0 %vm245_vm0, %v199_v4 }
  0xad   :  { %3769 = vmatprep.mubr.msk.bf16.mxu0 %vm245_vm0, %v200_v5  ;;  %v140_v5 = vld [vmem:[%s5878_s0 + $0x370] sm:$0xff] }
  0xae   :  { %v213_v14 = vpack.c.bf16 %v141_v6, %v140_v5  ;;  %v151_v5 = vld [vmem:[%s5878_s0 + $0x3c8] sm:$0xff] }
  0xb4   :  { %3770 = vmatmul.mubr.msk.bf16.gmra.mxu0 %vm245_vm0, %v201_v10 }
  0xb5   :  { %3773 = vmatprep.mubr.msk.bf16.mxu0 %vm245_vm0, %v202_v11 }
  0xbc   :  { %3774 = vmatmul.mubr.msk.bf16.gmra.mxu0 %vm245_vm0, %v203_v16 }
  0xbd   :  { %3777 = vmatprep.mubr.msk.bf16.mxu0 %vm245_vm0, %v204_v17 }
  0xc4   :  { %3778 = vmatmul.mubr.msk.bf16.gmra.mxu0 %vm245_vm0, %v205_v22 }
  0xc5   :  { %3781 = vmatprep.mubr.msk.bf16.mxu0 %vm245_vm0, %v206_v23 }
  0xcc   :  { %v3687_v31 = vpop.f32.mrf.mxu0  ;;  %3782 = vmatmul.mubr.msk.bf16.gmra.mxu0 %vm245_vm0, %v207_v28 }
  0xcd   :  { %v481_v32 = vadd.f32 %v3687_v31, %v4940_v30  ;;  %3785 = vmatprep.mubr.msk.bf16.mxu0 %vm245_vm0, %v208_v29  ;;  %v144_v31 = vld [vmem:[%s5878_s0 + $0x390] sm:$0xff] }
  0xce   :  { %v472_v35 = vpop.f32.mrf.mxu0 }
  0xcf   :  { %v985_v38 = vmul.f32 0.5, %v481_v32  ;;  %v473_v39 = vadd.f32 %v4940_v30, %v472_v35  ;;  %v145_v32 = vld [vmem:[%s5878_s0 + $0x398] sm:$0xff]  ;;  %v146_v35 = vld [vmem:[%s5878_s0 + $0x3a0] sm:$0xff] }
  0xd0   :  { %v3688_v40 = vpop.f32.mrf.mxu0 }
  0xd1   :  { %v983_v42 = vmul.f32 0.5, %v473_v39  ;;  %v484_v43 = vadd.f32 %v3688_v40, %v4940_v30  ;;  %3985 = vtanh.f32 %v985_v38 }
  0xd2   :  { %v475_v45 = vpop.f32.mrf.mxu0 }
  0xd3   :  { %v986_v46 = vmul.f32 0.5, %v484_v43  ;;  %v476_v47 = vadd.f32 %v4940_v30, %v475_v45  ;;  %3987 = vtanh.f32 %v983_v42 }
  0xd4   :  { %v3691_v48 = vpop.f32.mrf.mxu0  ;;  %3786 = vmatmul.mubr.msk.bf16.gmra.mxu0 %vm245_vm0, %v209_v41 }
  0xd5   :  { %3989 = vtanh.f32 %v986_v46  ;;  %v984_v49 = vmul.f32 0.5, %v476_v47  ;;  %v497_v50 = vadd.f32 %v3691_v48, %v4940_v30  ;;  %3789 = vmatprep.mubr.msk.bf16.mxu0 %vm245_vm0, %v210_v44  ;;  %v215_v44 = vpack.c.bf16 %v145_v32, %v144_v31  ;;  %v152_v32 = vld [vmem:[%s5878_s0 + $0x3d0] sm:$0xff] }
  0xd6   :  { %v488_v53 = vpop.f32.mrf.mxu0  ;;  %v216_v48 = vpack.c.bf16 %v147_v36, %v146_v35 }
  0xd7   :  { %3991 = vtanh.f32 %v984_v49  ;;  %v989_v56 = vmul.f32 0.5, %v497_v50  ;;  %v489_v57 = vadd.f32 %v4940_v30, %v488_v53 }
  0xd8   :  { %v3692_v58 = vpop.f32.mrf.mxu0 }
  0xd9   :  { %v987_v60 = vmul.f32 0.5, %v489_v57  ;;  %v500_v61 = vadd.f32 %v3692_v58, %v4940_v30  ;;  %3993 = vtanh.f32 %v989_v56 }
  0xda   :  { %v491_v63 = vpop.f32.mrf.mxu0 }
  0xdb   :  { %v990_v0 = vmul.f32 0.5, %v500_v61  ;;  %v492_v1 = vadd.f32 %v4940_v30, %v491_v63  ;;  %3995 = vtanh.f32 %v987_v60 }
  0xdc   :  { %v3695_v2 = vpop.f32.mrf.mxu0  ;;  %3790 = vmatmul.mubr.msk.bf16.gmra.mxu0 %vm245_vm0, %v211_v59 }
  0xdd   :  { %3997 = vtanh.f32 %v990_v0  ;;  %v988_v3 = vmul.f32 0.5, %v492_v1  ;;  %v513_v4 = vadd.f32 %v3695_v2, %v4940_v30  ;;  %3793 = vmatprep.mubr.msk.bf16.mxu0 %vm245_vm0, %v212_v62  ;;  %v148_v0 = vld [vmem:[%s5878_s0 + $0x3b0] sm:$0xff]  ;;  %v149_v1 = vld [vmem:[%s5878_s0 + $0x3b8] sm:$0xff] }
  0xde   :  { %v504_v7 = vpop.f32.mrf.mxu0  ;;  %v3986_v12 = vpop.eup %3985 }
  0xdf   :  { %3999 = vtanh.f32 %v988_v3  ;;  %v993_v10 = vmul.f32 0.5, %v513_v4  ;;  %v505_v11 = vadd.f32 %v4940_v30, %v504_v7  ;;  %v1241_v27 = vadd.f32 1.0, %v3986_v12  ;;  %v150_v4 = vld [vmem:[%s5878_s0 + $0x3c0] sm:$0xff] }
  0xe0   :  { %v3696_v13 = vpop.f32.mrf.mxu0  ;;  %v3988_v15 = vpop.eup %3987 }
  0xe1   :  { %v991_v16 = vmul.f32 0.5, %v505_v11  ;;  %v516_v17 = vadd.f32 %v3696_v13, %v4940_v30  ;;  %4001 = vtanh.f32 %v993_v10  ;;  %v1239_v26 = vadd.f32 1.0, %v3988_v15 }
  0xe2   :  { %v3990_v19 = vpop.eup %3989  ;;  %v507_v20 = vpop.f32.mrf.mxu0  ;;  %v1369_v46 = vmul.f32 0.5, %v1241_v27  ;;  %v217_v13 = vpack.c.bf16 %v149_v1, %v148_v0  ;;  %v156_v1 = vld [vmem:[%s5878_s0 + $0x3f0] sm:$0xff] }
  0xe3   :  { %v1242_v21 = vadd.f32 1.0, %v3990_v19  ;;  %v994_v22 = vmul.f32 0.5, %v516_v17  ;;  %v508_v23 = vadd.f32 %v4940_v30, %v507_v20  ;;  %4003 = vtanh.f32 %v991_v16 }
  0xe4   :  { %v3992_v24 = vpop.eup %3991  ;;  %v3699_v25 = vpop.f32.mrf.mxu0  ;;  %3794 = vmatmul.mubr.msk.bf16.gmra.mxu0 %vm245_vm0, %v213_v14  ;;  %v1367_v42 = vmul.f32 0.5, %v1239_v26  ;;  %v218_v16 = vpack.c.bf16 %v151_v5, %v150_v4 }
  0xe5   :  { %4005 = vtanh.f32 %v994_v22  ;;  %v992_v28 = vmul.f32 0.5, %v508_v23  ;;  %v529_v29 = vadd.f32 %v3699_v25, %v4940_v30  ;;  %3797 = vmatprep.mubr.msk.bf16.mxu0 %vm245_vm0, %v214_v18  ;;  %v1240_v34 = vadd.f32 1.0, %v3992_v24 }
  0xe6   :  { %v520_v33 = vpop.f32.mrf.mxu0  ;;  %v1370_v37 = vmul.f32 0.5, %v1242_v21  ;;  %v3994_v39 = vpop.eup %3993 }
  0xe7   :  { %4007 = vtanh.f32 %v992_v28  ;;  %v521_v38 = vadd.f32 %v4940_v30, %v520_v33  ;;  %v997_v40 = vmul.f32 0.5, %v529_v29  ;;  %v1368_v43 = vmul.f32 0.5, %v1240_v34  ;;  %v153_v33 = vld [vmem:[%s5878_s0 + $0x3d8] sm:$0xff] }
  0xe8   :  { %v3700_v41 = vpop.f32.mrf.mxu0  ;;  %v3996_v45 = vpop.eup %3995  ;;  %v1496_v55 = vpack.c.bf16 %v1370_v37, %v1369_v46  ;;  %v1245_v57 = vadd.f32 1.0, %v3994_v39  ;;  %v154_v37 = vld [vmem:[%s5878_s0 + $0x3e0] sm:$0xff]  ;;  %v219_v46 = vpack.c.bf16 %v153_v33, %v152_v32 }
  0xe9   :  { %v995_v47 = vmul.f32 0.5, %v521_v38  ;;  %v532_v50 = vadd.f32 %v3700_v41, %v4940_v30  ;;  %v1495_v52 = vpack.c.bf16 %v1368_v43, %v1367_v42  ;;  %v1243_v58 = vadd.f32 1.0, %v3996_v45  ;;  %v155_v38 = vld [vmem:[%s5878_s0 + $0x3e8] sm:$0xff] }
  0xea   :  { %v3998_v49 = vpop.eup %3997  ;;  %v523_v51 = vpop.f32.mrf.mxu0  ;;  %v1373_v9 = vmul.f32 0.5, %v1245_v57 }
  0xeb   :  { %v1246_v53 = vadd.f32 1.0, %v3998_v49  ;;  %4009 = vtanh.f32 %v995_v47  ;;  %v524_v54 = vadd.f32 %v4940_v30, %v523_v51  ;;  %v998_v59 = vmul.f32 0.5, %v532_v50  ;;  %3817 = vmatprep.mubr.msk.bf16.mxu1 %vm245_vm0, %v1495_v52 }
  0xec   :  { %v4000_v56 = vpop.eup %3999  ;;  %4011 = vtanh.f32 %v997_v40  ;;  %v3703_v60 = vpop.f32.mrf.mxu0  ;;  %3798 = vmatmul.mubr.msk.bf16.gmra.mxu0 %vm245_vm0, %v215_v44  ;;  %3818 = vmatmul.mubr.msk.bf16.vlgmr.msra.gmra.mxu1 %vm245_vm0, %v1496_v55  ;;  %v1371_v10 = vmul.f32 0.5, %v1243_v58  ;;  %v220_v50 = vpack.c.bf16 %v155_v38, %v154_v37 }
  0xed   :  { %v1244_v61 = vadd.f32 1.0, %v4000_v56  ;;  %v996_v62 = vmul.f32 0.5, %v524_v54  ;;  %v545_v63 = vadd.f32 %v3703_v60, %v4940_v30  ;;  %3801 = vmatprep.mubr.msk.bf16.mxu0 %vm245_vm0, %v216_v48  ;;  %v1374_v2 = vmul.f32 0.5, %v1246_v53 }
  0xee   :  { %4013 = vtanh.f32 %v998_v59  ;;  %v536_v3 = vpop.f32.mrf.mxu0  ;;  %v4002_v8 = vpop.eup %4001 }
  0xef   :  { %v1372_v6 = vmul.f32 0.5, %v1244_v61  ;;  %4015 = vtanh.f32 %v996_v62  ;;  %v1001_v7 = vmul.f32 0.5, %v545_v63  ;;  %v537_v11 = vadd.f32 %v4940_v30, %v536_v3 }
  0xf0   :  { %v3704_v12 = vpop.f32.mrf.mxu0  ;;  %v4004_v14 = vpop.eup %4003  ;;  %v1498_v21 = vpack.c.bf16 %v1374_v2, %v1373_v9  ;;  %v1249_v26 = vadd.f32 1.0, %v4002_v8  ;;  %v157_v2 = vld [vmem:[%s5878_s0 + $0x3f8] sm:$0xff] }
  0xf1   :  { %v548_v15 = vadd.f32 %v3704_v12, %v4940_v30  ;;  %v999_v18 = vmul.f32 0.5, %v537_v11  ;;  %v1497_v20 = vpack.c.bf16 %v1372_v6, %v1371_v10  ;;  %4017 = vtanh.f32 %v1001_v7 }
  0xf2   :  { %v4006_v17 = vpop.eup %4005  ;;  %v539_v19 = vpop.f32.mrf.mxu0  ;;  %v1247_v27 = vadd.f32 1.0, %v4004_v14  ;;  %v1377_v42 = vmul.f32 0.5, %v1249_v26  ;;  %v221_v12 = vpack.c.bf16 %v157_v2, %v156_v1 }
  0xf3   :  { %v1250_v22 = vadd.f32 1.0, %v4006_v17  ;;  %v1002_v23 = vmul.f32 0.5, %v548_v15  ;;  %v540_v24 = vadd.f32 %v4940_v30, %v539_v19  ;;  %4019 = vtanh.f32 %v999_v18  ;;  %3821 = vmatprep.mubr.msk.bf16.mxu1 %vm245_vm0, %v1497_v20 }
  0xf4   :  { %v4008_v25 = vpop.eup %4007  ;;  %v3707_v28 = vpop.f32.mrf.mxu0  ;;  %3802 = vmatmul.mubr.msk.bf16.gmra.mxu0 %vm245_vm0, %v217_v13  ;;  %3822 = vmatmul.mubr.msk.bf16.gmra.mxu1 %vm245_vm0, %v1498_v21  ;;  %v1375_v43 = vmul.f32 0.5, %v1247_v27 }
  0xf5   :  { %v1248_v29 = vadd.f32 1.0, %v4008_v25  ;;  %4021 = vtanh.f32 %v1002_v23  ;;  %v1000_v31 = vmul.f32 0.5, %v540_v24  ;;  %3805 = vmatprep.mubr.msk.bf16.mxu0 %vm245_vm0, %v218_v16  ;;  %v1378_v34 = vmul.f32 0.5, %v1250_v22 }
  0xf6   :  { %v561_v35 = vadd.f32 %v3707_v28, %v4940_v30  ;;  %v552_v36 = vpop.f32.mrf.mxu0 }
  0xf7   :  { %v1376_v39 = vmul.f32 0.5, %v1248_v29  ;;  %4023 = vtanh.f32 %v1000_v31  ;;  %v553_v40 = vadd.f32 %v4940_v30, %v552_v36  ;;  %v1500_v53 = vpack.c.bf16 %v1378_v34, %v1377_v42 }
  0xf8   :  { %v4010_v41 = vpop.eup %4009  ;;  %v1005_v44 = vmul.f32 0.5, %v561_v35  ;;  %v3708_v45 = vpop.f32.mrf.mxu0 }
  0xf9   :  { %v4012_v47 = vpop.eup %4011  ;;  %v1003_v48 = vmul.f32 0.5, %v553_v40  ;;  %v564_v49 = vadd.f32 %v3708_v45, %v4940_v30  ;;  %v1499_v52 = vpack.c.bf16 %v1376_v39, %v1375_v43  ;;  %v1251_v55 = vadd.f32 1.0, %v4010_v41 }
  0xfa   :  { %v555_v51 = vpop.f32.mrf.mxu0  ;;  %4025 = vtanh.f32 %v1005_v44  ;;  %v1253_v59 = vadd.f32 1.0, %v4012_v47 }
  0xfb   :  { %v4014_v54 = vpop.eup %4013  ;;  %v1006_v56 = vmul.f32 0.5, %v564_v49  ;;  %v556_v57 = vadd.f32 %v4940_v30, %v555_v51  ;;  %4027 = vtanh.f32 %v1003_v48  ;;  %3825 = vmatprep.mubr.msk.bf16.mxu1 %vm245_vm0, %v1499_v52  ;;  %v1379_v5 = vmul.f32 0.5, %v1251_v55 }
  0xfc   :  { %v4016_v58 = vpop.eup %4015  ;;  %v1254_v60 = vadd.f32 1.0, %v4014_v54  ;;  %v3711_v61 = vpop.f32.mrf.mxu0  ;;  %3806 = vmatmul.mubr.msk.bf16.gmra.mxu0 %vm245_vm0, %v219_v46  ;;  %3826 = vmatmul.mubr.msk.bf16.gmra.mxu1 %vm245_vm0, %v1500_v53  ;;  %v1381_v9 = vmul.f32 0.5, %v1253_v59 }
  0xfd   :  { %v1252_v62 = vadd.f32 1.0, %v4016_v58  ;;  %4029 = vtanh.f32 %v1006_v56  ;;  %v1004_v63 = vmul.f32 0.5, %v556_v57  ;;  %v577_v0 = vadd.f32 %v3711_v61, %v4940_v30  ;;  %3809 = vmatprep.mubr.msk.bf16.mxu0 %vm245_vm0, %v220_v50 }
  0xfe   :  { %v1382_v3 = vmul.f32 0.5, %v1254_v60  ;;  %v568_v4 = vpop.f32.mrf.mxu0  ;;  %v4018_v8 = vpop.eup %4017 }
  0xff   :  { %v1380_v6 = vmul.f32 0.5, %v1252_v62  ;;  %4031 = vtanh.f32 %v1004_v63  ;;  %v1009_v7 = vmul.f32 0.5, %v577_v0  ;;  %v569_v10 = vadd.f32 %v4940_v30, %v568_v4 }
 0x100   :  { %v3712_v11 = vpop.f32.mrf.mxu0  ;;  %v4020_v13 = vpop.eup %4019  ;;  %v1502_v20 = vpack.c.bf16 %v1382_v3, %v1381_v9  ;;  %v1257_v26 = vadd.f32 1.0, %v4018_v8 }
 0x101   :  { %v580_v14 = vadd.f32 %v3712_v11, %v4940_v30  ;;  %v1501_v15 = vpack.c.bf16 %v1380_v6, %v1379_v5  ;;  %v1255_v17 = vadd.f32 1.0, %v4020_v13  ;;  %v1007_v18 = vmul.f32 0.5, %v569_v10 }
 0x102   :  { %v4022_v16 = vpop.eup %4021  ;;  %v571_v19 = vpop.f32.mrf.mxu0  ;;  %4033 = vtanh.f32 %v1009_v7  ;;  %v1385_v40 = vmul.f32 0.5, %v1257_v26 }
 0x103   :  { %v1258_v21 = vadd.f32 1.0, %v4022_v16  ;;  %v1010_v22 = vmul.f32 0.5, %v580_v14  ;;  %v572_v23 = vadd.f32 %v4940_v30, %v571_v19  ;;  %3829 = vmatprep.mubr.msk.bf16.mxu1 %vm245_vm0, %v1501_v15  ;;  %4035 = vtanh.f32 %v1007_v18 }
 0x104   :  { %v4024_v24 = vpop.eup %4023  ;;  %v3715_v25 = vpop.f32.mrf.mxu0  ;;  %3810 = vmatmul.mubr.msk.bf16.gmra.mxu0 %vm245_vm0, %v221_v12  ;;  %3830 = vmatmul.mubr.msk.bf16.gmra.mxu1 %vm245_vm0, %v1502_v20  ;;  %v1383_v29 = vmul.f32 0.5, %v1255_v17 }
 0x105   :  { %v1256_v27 = vadd.f32 1.0, %v4024_v24  ;;  %4037 = vtanh.f32 %v1010_v22  ;;  %v1008_v28 = vmul.f32 0.5, %v572_v23  ;;  %v593_v31 = vadd.f32 %v3715_v25, %v4940_v30 }
 0x106   :  { %v584_v32 = vpop.f32.mrf.mxu0  ;;  %v1386_v33 = vmul.f32 0.5, %v1258_v21 }
 0x107   :  { %v1384_v34 = vmul.f32 0.5, %v1256_v27  ;;  %4039 = vtanh.f32 %v1008_v28  ;;  %v585_v35 = vadd.f32 %v4940_v30, %v584_v32  ;;  %v4026_v36 = vpop.eup %4025  ;;  %v1013_v37 = vmul.f32 0.5, %v593_v31 }
 0x108   :  { %v3716_v38 = vpop.f32.mrf.mxu0  ;;  %v4028_v39 = vpop.eup %4027  ;;  %v1504_v48 = vpack.c.bf16 %v1386_v33, %v1385_v40  ;;  %v1261_v50 = vadd.f32 1.0, %v4026_v36 }
 0x109   :  { %v1011_v41 = vmul.f32 0.5, %v585_v35  ;;  %v596_v42 = vadd.f32 %v3716_v38, %v4940_v30  ;;  %v1503_v43 = vpack.c.bf16 %v1384_v34, %v1383_v29  ;;  %4041 = vtanh.f32 %v1013_v37 }
 0x10a   :  { %v4030_v44 = vpop.eup %4029  ;;  %v587_v45 = vpop.f32.mrf.mxu0  ;;  %v1259_v51 = vadd.f32 1.0, %v4028_v39  ;;  %v1389_v63 = vmul.f32 0.5, %v1261_v50 }
 0x10b   :  { %v1262_v46 = vadd.f32 1.0, %v4030_v44  ;;  %v1014_v47 = vmul.f32 0.5, %v596_v42  ;;  %3833 = vmatprep.mubr.msk.bf16.mxu1 %vm245_vm0, %v1503_v43  ;;  %4043 = vtanh.f32 %v1011_v41  ;;  %v588_v52 = vadd.f32 %v4940_v30, %v587_v45 }
 0x10c   :  { %v4032_v49 = vpop.eup %4031  ;;  %v3719_v53 = vpop.f32.mrf.mxu0  ;;  %3834 = vmatmul.mubr.msk.bf16.gmra.mxu1 %vm245_vm0, %v1504_v48  ;;  %v1387_v0 = vmul.f32 0.5, %v1259_v51 }
 0x10d   :  { %v1260_v54 = vadd.f32 1.0, %v4032_v49  ;;  %4045 = vtanh.f32 %v1014_v47  ;;  %v609_v55 = vadd.f32 %v3719_v53, %v4940_v30  ;;  %v1390_v56 = vmul.f32 0.5, %v1262_v46 }
 0x10e   :  { %v1012_v57 = vmul.f32 0.5, %v588_v52  ;;  %v600_v58 = vpop.f32.mrf.mxu0 }
 0x10f   :  { %v1388_v59 = vmul.f32 0.5, %v1260_v54  ;;  %v1017_v60 = vmul.f32 0.5, %v609_v55  ;;  %v601_v61 = vadd.f32 %v4940_v30, %v600_v58  ;;  %v4034_v62 = vpop.eup %4033  ;;  %v1506_v9 = vpack.c.bf16 %v1390_v56, %v1389_v63 }
 0x110   :  { %4047 = vtanh.f32 %v1012_v57  ;;  %v3720_v1 = vpop.f32.mrf.mxu0  ;;  %v4036_v2 = vpop.eup %4035  ;;  %v1265_v15 = vadd.f32 1.0, %v4034_v62 }
 0x111   :  { %v1015_v3 = vmul.f32 0.5, %v601_v61  ;;  %v612_v4 = vadd.f32 %v3720_v1, %v4940_v30  ;;  %v1263_v6 = vadd.f32 1.0, %v4036_v2  ;;  %v1505_v8 = vpack.c.bf16 %v1388_v59, %v1387_v0 }
 0x112   :  { %v4038_v5 = vpop.eup %4037  ;;  %v603_v7 = vpop.f32.mrf.mxu0  ;;  %4049 = vtanh.f32 %v1017_v60  ;;  %v1393_v28 = vmul.f32 0.5, %v1265_v15 }
 0x113   :  { %v1266_v10 = vadd.f32 1.0, %v4038_v5  ;;  %v1018_v11 = vmul.f32 0.5, %v612_v4  ;;  %v604_v12 = vadd.f32 %v4940_v30, %v603_v7  ;;  %4051 = vtanh.f32 %v1015_v3  ;;  %3837 = vmatprep.mubr.msk.bf16.mxu1 %vm245_vm0, %v1505_v8 }
 0x114   :  { %v4040_v13 = vpop.eup %4039  ;;  %v3723_v14 = vpop.f32.mrf.mxu0  ;;  %3838 = vmatmul.mubr.msk.bf16.gmra.mxu1 %vm245_vm0, %v1506_v9  ;;  %v1391_v18 = vmul.f32 0.5, %v1263_v6 }
 0x115   :  { %v1264_v16 = vadd.f32 1.0, %v4040_v13  ;;  %4053 = vtanh.f32 %v1018_v11  ;;  %v1016_v17 = vmul.f32 0.5, %v604_v12  ;;  %v625_v19 = vadd.f32 %v3723_v14, %v4940_v30 }
 0x116   :  { %v616_v20 = vpop.f32.mrf.mxu0  ;;  %v1394_v21 = vmul.f32 0.5, %v1266_v10  ;;  %v4042_v24 = vpop.eup %4041 }
 0x117   :  { %v1392_v22 = vmul.f32 0.5, %v1264_v16  ;;  %4055 = vtanh.f32 %v1016_v17  ;;  %v617_v23 = vadd.f32 %v4940_v30, %v616_v20  ;;  %v1021_v25 = vmul.f32 0.5, %v625_v19 }
 0x118   :  { %v3724_v26 = vpop.f32.mrf.mxu0  ;;  %v4044_v27 = vpop.eup %4043  ;;  %v1508_v37 = vpack.c.bf16 %v1394_v21, %v1393_v28  ;;  %v1269_v42 = vadd.f32 1.0, %v4042_v24 }
 0x119   :  { %v1019_v29 = vmul.f32 0.5, %v617_v23  ;;  %v628_v31 = vadd.f32 %v3724_v26, %v4940_v30  ;;  %v1507_v32 = vpack.c.bf16 %v1392_v22, %v1391_v18  ;;  %4057 = vtanh.f32 %v1021_v25 }
 0x11a   :  { %v4046_v33 = vpop.eup %4045  ;;  %v619_v34 = vpop.f32.mrf.mxu0  ;;  %v1267_v38 = vadd.f32 1.0, %v4044_v27  ;;  %v1397_v55 = vmul.f32 0.5, %v1269_v42 }
 0x11b   :  { %v1270_v35 = vadd.f32 1.0, %v4046_v33  ;;  %v1022_v36 = vmul.f32 0.5, %v628_v31  ;;  %3841 = vmatprep.mubr.msk.bf16.mxu1 %vm245_vm0, %v1507_v32  ;;  %4059 = vtanh.f32 %v1019_v29  ;;  %v620_v39 = vadd.f32 %v4940_v30, %v619_v34 }
 0x11c   :  { %v3727_v40 = vpop.f32.mrf.mxu0  ;;  %3842 = vmatmul.mubr.msk.bf16.gmra.mxu1 %vm245_vm0, %v1508_v37  ;;  %v1395_v51 = vmul.f32 0.5, %v1267_v38 }
 0x11d   :  { %v4048_v41 = vpop.eup %4047  ;;  %4061 = vtanh.f32 %v1022_v36  ;;  %v641_v43 = vadd.f32 %v3727_v40, %v4940_v30  ;;  %v1020_v45 = vmul.f32 0.5, %v620_v39  ;;  %v1398_v47 = vmul.f32 0.5, %v1270_v35 }
 0x11e   :  { %v1268_v44 = vadd.f32 1.0, %v4048_v41  ;;  %v632_v46 = vpop.f32.mrf.mxu0 }
 0x11f   :  { %v1025_v48 = vmul.f32 0.5, %v641_v43  ;;  %v633_v49 = vadd.f32 %v4940_v30, %v632_v46  ;;  %v4050_v50 = vpop.eup %4049  ;;  %4063 = vtanh.f32 %v1020_v45  ;;  %v1510_v63 = vpack.c.bf16 %v1398_v47, %v1397_v55 }
 0x120   :  { %v1396_v52 = vmul.f32 0.5, %v1268_v44  ;;  %v3728_v53 = vpop.f32.mrf.mxu0  ;;  %v4052_v54 = vpop.eup %4051  ;;  %v1273_v4 = vadd.f32 1.0, %v4050_v50 }
 0x121   :  { %v1023_v56 = vmul.f32 0.5, %v633_v49  ;;  %v644_v58 = vadd.f32 %v3728_v53, %v4940_v30  ;;  %4065 = vtanh.f32 %v1025_v48  ;;  %v1271_v1 = vadd.f32 1.0, %v4052_v54 }
 0x122   :  { %v4054_v57 = vpop.eup %4053  ;;  %v635_v59 = vpop.f32.mrf.mxu0  ;;  %v1509_v60 = vpack.c.bf16 %v1396_v52, %v1395_v51  ;;  %v1401_v17 = vmul.f32 0.5, %v1273_v4 }
 0x123   :  { %v1274_v61 = vadd.f32 1.0, %v4054_v57  ;;  %v636_v62 = vadd.f32 %v4940_v30, %v635_v59  ;;  %4067 = vtanh.f32 %v1023_v56  ;;  %v1026_v2 = vmul.f32 0.5, %v644_v58 }
 0x124   :  { %v4056_v0 = vpop.eup %4055  ;;  %3845 = vmatprep.mubr.msk.bf16.mxu1 %vm245_vm0, %v1509_v60  ;;  %v3731_v3 = vpop.f32.mrf.mxu0  ;;  %v1399_v14 = vmul.f32 0.5, %v1271_v1 }
 0x125   :  { %v1272_v5 = vadd.f32 1.0, %v4056_v0  ;;  %v1024_v6 = vmul.f32 0.5, %v636_v62  ;;  %v657_v7 = vadd.f32 %v3731_v3, %v4940_v30  ;;  %3846 = vmatmul.mubr.msk.bf16.gmra.mxu1 %vm245_vm0, %v1510_v63  ;;  %v1402_v8 = vmul.f32 0.5, %v1274_v61 }
 0x126   :  { %4069 = vtanh.f32 %v1026_v2  ;;  %v648_v9 = vpop.f32.mrf.mxu0  ;;  %v4058_v13 = vpop.eup %4057 }
 0x127   :  { %v1400_v10 = vmul.f32 0.5, %v1272_v5  ;;  %4071 = vtanh.f32 %v1024_v6  ;;  %v1029_v11 = vmul.f32 0.5, %v657_v7  ;;  %v649_v12 = vadd.f32 %v4940_v30, %v648_v9 }
 0x128   :  { %v3732_v15 = vpop.f32.mrf.mxu0  ;;  %v4060_v16 = vpop.eup %4059  ;;  %v1512_v25 = vpack.c.bf16 %v1402_v8, %v1401_v17  ;;  %v1277_v31 = vadd.f32 1.0, %v4058_v13 }
 0x129   :  { %v1027_v18 = vmul.f32 0.5, %v649_v12  ;;  %v660_v19 = vadd.f32 %v3732_v15, %v4940_v30  ;;  %v1511_v22 = vpack.c.bf16 %v1400_v10, %v1399_v14  ;;  %4073 = vtanh.f32 %v1029_v11 }
 0x12a   :  { %v4062_v20 = vpop.eup %4061  ;;  %v651_v21 = vpop.f32.mrf.mxu0  ;;  %v1275_v26 = vadd.f32 1.0, %v4060_v16  ;;  %v1405_v44 = vmul.f32 0.5, %v1277_v31 }
 0x12b   :  { %v1278_v23 = vadd.f32 1.0, %v4062_v20  ;;  %v1030_v24 = vmul.f32 0.5, %v660_v19  ;;  %4075 = vtanh.f32 %v1027_v18  ;;  %v652_v27 = vadd.f32 %v4940_v30, %v651_v21  ;;  %3849 = vmatprep.mubr.msk.bf16.mxu1 %vm245_vm0, %v1511_v22 }
 0x12c   :  { %v3735_v28 = vpop.f32.mrf.mxu0  ;;  %v4064_v29 = vpop.eup %4063  ;;  %v1403_v39 = vmul.f32 0.5, %v1275_v26 }
 0x12d   :  { %4077 = vtanh.f32 %v1030_v24  ;;  %v673_v32 = vadd.f32 %v3735_v28, %v4940_v30  ;;  %3850 = vmatmul.mubr.msk.bf16.gmra.mxu1 %vm245_vm0, %v1512_v25  ;;  %v1276_v33 = vadd.f32 1.0, %v4064_v29  ;;  %v1028_v34 = vmul.f32 0.5, %v652_v27 }
 0x12e   :  { %v664_v35 = vpop.f32.mrf.mxu0  ;;  %v1406_v36 = vmul.f32 0.5, %v1278_v23  ;;  %v4066_v38 = vpop.eup %4065 }
 0x12f   :  { %v665_v37 = vadd.f32 %v4940_v30, %v664_v35  ;;  %v1404_v40 = vmul.f32 0.5, %v1276_v33  ;;  %4079 = vtanh.f32 %v1028_v34  ;;  %v1033_v41 = vmul.f32 0.5, %v673_v32 }
 0x130   :  { %v3736_v42 = vpop.f32.mrf.mxu0  ;;  %v4068_v43 = vpop.eup %4067  ;;  %v1281_v50 = vadd.f32 1.0, %v4066_v38  ;;  %v1514_v52 = vpack.c.bf16 %v1406_v36, %v1405_v44 }
 0x131   :  { %v1031_v45 = vmul.f32 0.5, %v665_v37  ;;  %v676_v46 = vadd.f32 %v3736_v42, %v4940_v30  ;;  %v1513_v48 = vpack.c.bf16 %v1404_v40, %v1403_v39  ;;  %v1279_v54 = vadd.f32 1.0, %v4068_v43 }
 0x132   :  { %v667_v47 = vpop.f32.mrf.mxu0  ;;  %v1409_v2 = vmul.f32 0.5, %v1281_v50 }
 0x133   :  { %v4070_v49 = vpop.eup %4069  ;;  %4081 = vtanh.f32 %v1031_v45  ;;  %v668_v51 = vadd.f32 %v4940_v30, %v667_v47  ;;  %v1034_v56 = vmul.f32 0.5, %v676_v46  ;;  %3853 = vmatprep.mubr.msk.bf16.mxu1 %vm245_vm0, %v1513_v48  ;;  %v1407_v3 = vmul.f32 0.5, %v1279_v54 }
 0x134   :  { %v4072_v53 = vpop.eup %4071  ;;  %v1282_v55 = vadd.f32 1.0, %v4070_v49  ;;  %4083 = vtanh.f32 %v1033_v41  ;;  %v3739_v57 = vpop.f32.mrf.mxu0 }
 0x135   :  { %v1280_v58 = vadd.f32 1.0, %v4072_v53  ;;  %v1032_v59 = vmul.f32 0.5, %v668_v51  ;;  %v689_v60 = vadd.f32 %v3739_v57, %v4940_v30  ;;  %3854 = vmatmul.mubr.msk.bf16.gmra.mxu1 %vm245_vm0, %v1514_v52  ;;  %4085 = vtanh.f32 %v1034_v56 }
 0x136   :  { %v1410_v61 = vmul.f32 0.5, %v1282_v55  ;;  %v680_v62 = vpop.f32.mrf.mxu0  ;;  %v4074_v1 = vpop.eup %4073 }
 0x137   :  { %v1408_v63 = vmul.f32 0.5, %v1280_v58  ;;  %4087 = vtanh.f32 %v1032_v59  ;;  %v1037_v0 = vmul.f32 0.5, %v689_v60  ;;  %v681_v4 = vadd.f32 %v4940_v30, %v680_v62 }
 0x138   :  { %v3740_v5 = vpop.f32.mrf.mxu0  ;;  %v4076_v6 = vpop.eup %4075  ;;  %v1516_v12 = vpack.c.bf16 %v1410_v61, %v1409_v2  ;;  %v1285_v19 = vadd.f32 1.0, %v4074_v1 }
 0x139   :  { %v692_v7 = vadd.f32 %v3740_v5, %v4940_v30  ;;  %v1035_v9 = vmul.f32 0.5, %v681_v4  ;;  %v1515_v11 = vpack.c.bf16 %v1408_v63, %v1407_v3  ;;  %4089 = vtanh.f32 %v1037_v0  ;;  %v5125_v5 = vld [vmem:[%s5880_s2] ss:$0 sm:$0xff] }
 0x13a   :  { %v4078_v8 = vpop.eup %4077  ;;  %v683_v10 = vpop.f32.mrf.mxu0  ;;  %v1283_v16 = vadd.f32 1.0, %v4076_v6  ;;  %v1413_v33 = vmul.f32 0.5, %v1285_v19 }
 0x13b   :  { %v1286_v13 = vadd.f32 1.0, %v4078_v8  ;;  %v1038_v14 = vmul.f32 0.5, %v692_v7  ;;  %v684_v15 = vadd.f32 %v4940_v30, %v683_v10  ;;  %4091 = vtanh.f32 %v1035_v9  ;;  %3857 = vmatprep.mubr.msk.bf16.mxu1 %vm245_vm0, %v1515_v11 }
 0x13c   :  { %v3743_v17 = vpop.f32.mrf.mxu0  ;;  %v4080_v18 = vpop.eup %4079  ;;  %v1411_v27 = vmul.f32 0.5, %v1283_v16 }
 0x13d   :  { %4093 = vtanh.f32 %v1038_v14  ;;  %v1036_v20 = vmul.f32 0.5, %v684_v15  ;;  %v705_v21 = vadd.f32 %v3743_v17, %v4940_v30  ;;  %3858 = vmatmul.mubr.msk.bf16.gmra.mxu1 %vm245_vm0, %v1516_v12  ;;  %v1284_v22 = vadd.f32 1.0, %v4080_v18 }
 0x13e   :  { %v696_v23 = vpop.f32.mrf.mxu0  ;;  %v1414_v24 = vmul.f32 0.5, %v1286_v13 }
 0x13f   :  { %4095 = vtanh.f32 %v1036_v20  ;;  %v697_v25 = vadd.f32 %v4940_v30, %v696_v23  ;;  %v1412_v28 = vmul.f32 0.5, %v1284_v22  ;;  %v1041_v29 = vmul.f32 0.5, %v705_v21 }
 0x140   :  { %v4082_v26 = vpop.eup %4081  ;;  %v3744_v31 = vpop.f32.mrf.mxu0  ;;  %v1518_v41 = vpack.c.bf16 %v1414_v24, %v1413_v33 }
 0x141   :  { %v4084_v32 = vpop.eup %4083  ;;  %v1039_v34 = vmul.f32 0.5, %v697_v25  ;;  %v708_v35 = vadd.f32 %v3744_v31, %v4940_v30  ;;  %v1517_v37 = vpack.c.bf16 %v1412_v28, %v1411_v27  ;;  %v1287_v39 = vadd.f32 1.0, %v4082_v26 }
 0x142   :  { %v699_v36 = vpop.f32.mrf.mxu0  ;;  %v4086_v38 = vpop.eup %4085  ;;  %v1289_v43 = vadd.f32 1.0, %v4084_v32 }
 0x143   :  { %4097 = vtanh.f32 %v1039_v34  ;;  %v700_v40 = vadd.f32 %v4940_v30, %v699_v36  ;;  %v1290_v44 = vadd.f32 1.0, %v4086_v38  ;;  %v1042_v45 = vmul.f32 0.5, %v708_v35  ;;  %3861 = vmatprep.mubr.msk.bf16.mxu1 %vm245_vm0, %v1517_v37 }
 0x144   :  { %v4088_v42 = vpop.eup %4087  ;;  %4099 = vtanh.f32 %v1041_v29  ;;  %v3747_v46 = vpop.f32.mrf.mxu0  ;;  %v1415_v52 = vmul.f32 0.5, %v1287_v39  ;;  %v1417_v56 = vmul.f32 0.5, %v1289_v43 }
 0x145   :  { %v1288_v47 = vadd.f32 1.0, %v4088_v42  ;;  %v1040_v48 = vmul.f32 0.5, %v700_v40  ;;  %v721_v49 = vadd.f32 %v3747_v46, %v4940_v30  ;;  %3862 = vmatmul.mubr.msk.bf16.gmra.mxu1 %vm245_vm0, %v1518_v41  ;;  %v1418_v50 = vmul.f32 0.5, %v1290_v44 }
 0x146   :  { %4101 = vtanh.f32 %v1042_v45  ;;  %v712_v51 = vpop.f32.mrf.mxu0  ;;  %v4090_v55 = vpop.eup %4089 }
 0x147   :  { %v1416_v53 = vmul.f32 0.5, %v1288_v47  ;;  %4103 = vtanh.f32 %v1040_v48  ;;  %v1045_v54 = vmul.f32 0.5, %v721_v49  ;;  %v713_v57 = vadd.f32 %v4940_v30, %v712_v51 }
 0x148   :  { %v3748_v58 = vpop.f32.mrf.mxu0  ;;  %v4092_v59 = vpop.eup %4091  ;;  %v1520_v2 = vpack.c.bf16 %v1418_v50, %v1417_v56  ;;  %v1293_v8 = vadd.f32 1.0, %v4090_v55 }
 0x149   :  { %v724_v60 = vadd.f32 %v3748_v58, %v4940_v30  ;;  %v1519_v61 = vpack.c.bf16 %v1416_v53, %v1415_v52  ;;  %v1291_v63 = vadd.f32 1.0, %v4092_v59  ;;  %v1043_v0 = vmul.f32 0.5, %v713_v57 }
 0x14a   :  { %v4094_v62 = vpop.eup %4093  ;;  %v715_v1 = vpop.f32.mrf.mxu0  ;;  %4105 = vtanh.f32 %v1045_v54  ;;  %v1421_v21 = vmul.f32 0.5, %v1293_v8 }
 0x14b   :  { %v1294_v3 = vadd.f32 1.0, %v4094_v62  ;;  %v1046_v4 = vmul.f32 0.5, %v724_v60  ;;  %v716_v6 = vadd.f32 %v5125_v5, %v715_v1  ;;  %3865 = vmatprep.mubr.msk.bf16.mxu1 %vm245_vm0, %v1519_v61  ;;  %4107 = vtanh.f32 %v1043_v0 }
 0x14c   :  { %v4096_v7 = vpop.eup %4095  ;;  %v3751_v30 = vpop.f32.mrf.mxu0  ;;  %v1419_v11 = vmul.f32 0.5, %v1291_v63 }
 0x14d   :  { %v1292_v9 = vadd.f32 1.0, %v4096_v7  ;;  %4109 = vtanh.f32 %v1046_v4  ;;  %v1044_v10 = vmul.f32 0.5, %v716_v6  ;;  %3866 = vmatmul.mubr.msk.bf16.gmra.mxu1 %vm245_vm0, %v1520_v2  ;;  %v737_v12 = vadd.f32 %v5125_v5, %v3751_v30 }
 0x14e   :  { %v728_v13 = vpop.f32.mrf.mxu0  ;;  %v1422_v14 = vmul.f32 0.5, %v1294_v3 }
 0x14f   :  { %v1420_v15 = vmul.f32 0.5, %v1292_v9  ;;  %4111 = vtanh.f32 %v1044_v10  ;;  %v729_v16 = vadd.f32 %v5125_v5, %v728_v13  ;;  %v1049_v18 = vmul.f32 0.5, %v737_v12 }
 0x150   :  { %v4098_v17 = vpop.eup %4097  ;;  %v3752_v19 = vpop.f32.mrf.mxu0  ;;  %v1522_v28 = vpack.c.bf16 %v1422_v14, %v1421_v21 }
 0x151   :  { %v4100_v20 = vpop.eup %4099  ;;  %v1047_v22 = vmul.f32 0.5, %v729_v16  ;;  %v1521_v23 = vpack.c.bf16 %v1420_v15, %v1419_v11  ;;  %v740_v24 = vadd.f32 %v5125_v5, %v3752_v19  ;;  %v1295_v27 = vadd.f32 1.0, %v4098_v17 }
 0x152   :  { %v731_v25 = vpop.f32.mrf.mxu0  ;;  %v1297_v32 = vadd.f32 1.0, %v4100_v20 }
 0x153   :  { %v4102_v26 = vpop.eup %4101  ;;  %4113 = vtanh.f32 %v1047_v22  ;;  %3869 = vmatprep.mubr.msk.bf16.mxu1 %vm245_vm0, %v1521_v23  ;;  %v732_v29 = vadd.f32 %v5125_v5, %v731_v25  ;;  %v1050_v34 = vmul.f32 0.5, %v740_v24  ;;  %v1423_v41 = vmul.f32 0.5, %v1295_v27 }
 0x154   :  { %v4104_v31 = vpop.eup %4103  ;;  %v1298_v33 = vadd.f32 1.0, %v4102_v26  ;;  %4115 = vtanh.f32 %v1049_v18  ;;  %v3755_v35 = vpop.f32.mrf.mxu0  ;;  %v1425_v45 = vmul.f32 0.5, %v1297_v32 }
 0x155   :  { %v1296_v36 = vadd.f32 1.0, %v4104_v31  ;;  %3870 = vmatmul.mubr.msk.bf16.gmra.mxu1 %vm245_vm0, %v1522_v28  ;;  %v1048_v37 = vmul.f32 0.5, %v732_v29  ;;  %v753_v38 = vadd.f32 %v5125_v5, %v3755_v35  ;;  %4117 = vtanh.f32 %v1050_v34 }
 0x156   :  { %v1426_v39 = vmul.f32 0.5, %v1298_v33  ;;  %v744_v40 = vpop.f32.mrf.mxu0 }
 0x157   :  { %v1424_v42 = vmul.f32 0.5, %v1296_v36  ;;  %4119 = vtanh.f32 %v1048_v37  ;;  %v1053_v43 = vmul.f32 0.5, %v753_v38  ;;  %v4106_v44 = vpop.eup %4105  ;;  %v745_v46 = vadd.f32 %v5125_v5, %v744_v40 }
 0x158   :  { %v3756_v47 = vpop.f32.mrf.mxu0  ;;  %v4108_v48 = vpop.eup %4107  ;;  %v1524_v53 = vpack.c.bf16 %v1426_v39, %v1425_v45  ;;  %v1301_v60 = vadd.f32 1.0, %v4106_v44 }
 0x159   :  { %v1523_v49 = vpack.c.bf16 %v1424_v42, %v1423_v41  ;;  %v756_v50 = vadd.f32 %v5125_v5, %v3756_v47  ;;  %4121 = vtanh.f32 %v1053_v43  ;;  %v1051_v52 = vmul.f32 0.5, %v745_v46 }
 0x15a   :  { %v4110_v51 = vpop.eup %4109  ;;  %v747_v54 = vpop.f32.mrf.mxu0  ;;  %v1299_v55 = vadd.f32 1.0, %v4108_v48  ;;  %v1429_v30 = vmul.f32 0.5, %v1301_v60 }
 0x15b   :  { %v1302_v56 = vadd.f32 1.0, %v4110_v51  ;;  %3873 = vmatprep.mubr.msk.bf16.mxu1 %vm245_vm0, %v1523_v49  ;;  %v1054_v57 = vmul.f32 0.5, %v756_v50  ;;  %v748_v58 = vadd.f32 %v5125_v5, %v747_v54  ;;  %4123 = vtanh.f32 %v1051_v52 }
 0x15c   :  { %v4112_v59 = vpop.eup %4111  ;;  %v3759_v61 = vpop.f32.mrf.mxu0  ;;  %v1427_v3 = vmul.f32 0.5, %v1299_v55 }
 0x15d   :  { %v1300_v62 = vadd.f32 1.0, %v4112_v59  ;;  %3874 = vmatmul.mubr.msk.bf16.gmra.mxu1 %vm245_vm0, %v1524_v53  ;;  %4125 = vtanh.f32 %v1054_v57  ;;  %v1052_v63 = vmul.f32 0.5, %v748_v58  ;;  %v1430_v0 = vmul.f32 0.5, %v1302_v56 }
 0x15e   :  { %v769_v1 = vadd.f32 %v5125_v5, %v3759_v61  ;;  %v760_v2 = vpop.f32.mrf.mxu0 }
 0x15f   :  { %v1428_v4 = vmul.f32 0.5, %v1300_v62  ;;  %4127 = vtanh.f32 %v1052_v63  ;;  %v761_v6 = vadd.f32 %v5125_v5, %v760_v2  ;;  %v1526_v14 = vpack.c.bf16 %v1430_v0, %v1429_v30 }
 0x160   :  { %v4114_v7 = vpop.eup %4113  ;;  %v1057_v8 = vmul.f32 0.5, %v769_v1  ;;  %v3760_v9 = vpop.f32.mrf.mxu0 }
 0x161   :  { %v4116_v10 = vpop.eup %4115  ;;  %v1055_v11 = vmul.f32 0.5, %v761_v6  ;;  %v1525_v12 = vpack.c.bf16 %v1428_v4, %v1427_v3  ;;  %v772_v13 = vadd.f32 %v5125_v5, %v3760_v9  ;;  %v1303_v17 = vadd.f32 1.0, %v4114_v7 }
 0x162   :  { %v763_v15 = vpop.f32.mrf.mxu0  ;;  %v4118_v16 = vpop.eup %4117  ;;  %4129 = vtanh.f32 %v1057_v8  ;;  %v1305_v21 = vadd.f32 1.0, %v4116_v10 }
 0x163   :  { %3877 = vmatprep.mubr.msk.bf16.mxu1 %vm245_vm0, %v1525_v12  ;;  %v1058_v18 = vmul.f32 0.5, %v772_v13  ;;  %v764_v19 = vadd.f32 %v5125_v5, %v763_v15  ;;  %v1306_v22 = vadd.f32 1.0, %v4118_v16  ;;  %4131 = vtanh.f32 %v1055_v11 }
 0x164   :  { %v4120_v20 = vpop.eup %4119  ;;  %v3763_v23 = vpop.f32.mrf.mxu0  ;;  %v1431_v31 = vmul.f32 0.5, %v1303_v17  ;;  %v1433_v34 = vmul.f32 0.5, %v1305_v21 }
 0x165   :  { %v1304_v24 = vadd.f32 1.0, %v4120_v20  ;;  %3878 = vmatmul.mubr.msk.bf16.gmra.mxu1 %vm245_vm0, %v1526_v14  ;;  %4133 = vtanh.f32 %v1058_v18  ;;  %v1056_v25 = vmul.f32 0.5, %v764_v19  ;;  %v785_v26 = vadd.f32 %v5125_v5, %v3763_v23 }
 0x166   :  { %v1434_v27 = vmul.f32 0.5, %v1306_v22  ;;  %v776_v28 = vpop.f32.mrf.mxu0  ;;  %v4122_v29 = vpop.eup %4121 }
 0x167   :  { %v1432_v32 = vmul.f32 0.5, %v1304_v24  ;;  %4135 = vtanh.f32 %v1056_v25  ;;  %v1061_v33 = vmul.f32 0.5, %v785_v26  ;;  %v777_v35 = vadd.f32 %v5125_v5, %v776_v28 }
 0x168   :  { %v3764_v36 = vpop.f32.mrf.mxu0  ;;  %v4124_v37 = vpop.eup %4123  ;;  %v1528_v44 = vpack.c.bf16 %v1434_v27, %v1433_v34  ;;  %v1309_v50 = vadd.f32 1.0, %v4122_v29 }
 0x169   :  { %v788_v38 = vadd.f32 %v5125_v5, %v3764_v36  ;;  %v1527_v39 = vpack.c.bf16 %v1432_v32, %v1431_v31  ;;  %v1307_v41 = vadd.f32 1.0, %v4124_v37  ;;  %v1059_v42 = vmul.f32 0.5, %v777_v35 }
 0x16a   :  { %v4126_v40 = vpop.eup %4125  ;;  %v779_v43 = vpop.f32.mrf.mxu0  ;;  %4137 = vtanh.f32 %v1061_v33  ;;  %v1437_v63 = vmul.f32 0.5, %v1309_v50 }
 0x16b   :  { %v1310_v45 = vadd.f32 1.0, %v4126_v40  ;;  %v1062_v46 = vmul.f32 0.5, %v788_v38  ;;  %v780_v47 = vadd.f32 %v5125_v5, %v779_v43  ;;  %3881 = vmatprep.mubr.msk.bf16.mxu1 %vm245_vm0, %v1527_v39  ;;  %4139 = vtanh.f32 %v1059_v42 }
 0x16c   :  { %v4128_v48 = vpop.eup %4127  ;;  %v3767_v49 = vpop.f32.mrf.mxu0  ;;  %v1435_v53 = vmul.f32 0.5, %v1307_v41 }
 0x16d   :  { %v1308_v51 = vadd.f32 1.0, %v4128_v48  ;;  %4141 = vtanh.f32 %v1062_v46  ;;  %v1060_v52 = vmul.f32 0.5, %v780_v47  ;;  %3882 = vmatmul.mubr.msk.bf16.gmra.mxu1 %vm245_vm0, %v1528_v44  ;;  %v801_v54 = vadd.f32 %v5125_v5, %v3767_v49 }
 0x16e   :  { %v792_v55 = vpop.f32.mrf.mxu0  ;;  %v1438_v56 = vmul.f32 0.5, %v1310_v45 }
 0x16f   :  { %v1436_v57 = vmul.f32 0.5, %v1308_v51  ;;  %4143 = vtanh.f32 %v1060_v52  ;;  %v793_v58 = vadd.f32 %v5125_v5, %v792_v55  ;;  %v4130_v59 = vpop.eup %4129  ;;  %v1065_v60 = vmul.f32 0.5, %v801_v54 }
 0x170   :  { %v3768_v61 = vpop.f32.mrf.mxu0  ;;  %v4132_v62 = vpop.eup %4131  ;;  %v1530_v30 = vpack.c.bf16 %v1438_v56, %v1437_v63  ;;  %v1313_v9 = vadd.f32 1.0, %v4130_v59 }
 0x171   :  { %v1063_v0 = vmul.f32 0.5, %v793_v58  ;;  %v804_v1 = vadd.f32 %v5125_v5, %v3768_v61  ;;  %v1529_v2 = vpack.c.bf16 %v1436_v57, %v1435_v53  ;;  %4145 = vtanh.f32 %v1065_v60 }
 0x172   :  { %v4134_v3 = vpop.eup %4133  ;;  %v795_v4 = vpop.f32.mrf.mxu0  ;;  %v1311_v10 = vadd.f32 1.0, %v4132_v62  ;;  %v1441_v22 = vmul.f32 0.5, %v1313_v9 }
 0x173   :  { %v1314_v6 = vadd.f32 1.0, %v4134_v3  ;;  %v1066_v7 = vmul.f32 0.5, %v804_v1  ;;  %3885 = vmatprep.mubr.msk.bf16.mxu1 %vm245_vm0, %v1529_v2  ;;  %4147 = vtanh.f32 %v1063_v0  ;;  %v796_v11 = vadd.f32 %v5125_v5, %v795_v4 }
 0x174   :  { %v4136_v8 = vpop.eup %4135  ;;  %v3771_v12 = vpop.f32.mrf.mxu0  ;;  %v1439_v23 = vmul.f32 0.5, %v1311_v10 }
 0x175   :  { %v1312_v13 = vadd.f32 1.0, %v4136_v8  ;;  %4149 = vtanh.f32 %v1066_v7  ;;  %v817_v14 = vadd.f32 %v5125_v5, %v3771_v12  ;;  %3886 = vmatmul.mubr.msk.bf16.gmra.mxu1 %vm245_vm0, %v1530_v30  ;;  %v1442_v15 = vmul.f32 0.5, %v1314_v6 }
 0x176   :  { %v1064_v16 = vmul.f32 0.5, %v796_v11  ;;  %v808_v17 = vpop.f32.mrf.mxu0 }
 0x177   :  { %v1440_v18 = vmul.f32 0.5, %v1312_v13  ;;  %v1069_v19 = vmul.f32 0.5, %v817_v14  ;;  %v809_v20 = vadd.f32 %v5125_v5, %v808_v17  ;;  %v4138_v21 = vpop.eup %4137  ;;  %v1532_v33 = vpack.c.bf16 %v1442_v15, %v1441_v22 }
 0x178   :  { %4151 = vtanh.f32 %v1064_v16  ;;  %v3772_v24 = vpop.f32.mrf.mxu0  ;;  %v4140_v25 = vpop.eup %4139  ;;  %v1317_v39 = vadd.f32 1.0, %v4138_v21 }
 0x179   :  { %v1067_v26 = vmul.f32 0.5, %v809_v20  ;;  %v820_v27 = vadd.f32 %v5125_v5, %v3772_v24  ;;  %v1315_v29 = vadd.f32 1.0, %v4140_v25  ;;  %v1531_v32 = vpack.c.bf16 %v1440_v18, %v1439_v23 }
 0x17a   :  { %v4142_v28 = vpop.eup %4141  ;;  %v811_v31 = vpop.f32.mrf.mxu0  ;;  %4153 = vtanh.f32 %v1069_v19  ;;  %v1445_v52 = vmul.f32 0.5, %v1317_v39 }
 0x17b   :  { %v1318_v34 = vadd.f32 1.0, %v4142_v28  ;;  %v1070_v35 = vmul.f32 0.5, %v820_v27  ;;  %v812_v36 = vadd.f32 %v5125_v5, %v811_v31  ;;  %4155 = vtanh.f32 %v1067_v26  ;;  %3889 = vmatprep.mubr.msk.bf16.mxu1 %vm245_vm0, %v1531_v32 }
 0x17c   :  { %v4144_v37 = vpop.eup %4143  ;;  %v3775_v38 = vpop.f32.mrf.mxu0  ;;  %v1443_v42 = vmul.f32 0.5, %v1315_v29 }
 0x17d   :  { %v1316_v40 = vadd.f32 1.0, %v4144_v37  ;;  %4157 = vtanh.f32 %v1070_v35  ;;  %v1068_v41 = vmul.f32 0.5, %v812_v36  ;;  %3890 = vmatmul.mubr.msk.bf16.gmra.mxu1 %vm245_vm0, %v1532_v33  ;;  %v833_v43 = vadd.f32 %v5125_v5, %v3775_v38 }
 0x17e   :  { %v824_v44 = vpop.f32.mrf.mxu0  ;;  %v1446_v45 = vmul.f32 0.5, %v1318_v34  ;;  %v4146_v48 = vpop.eup %4145 }
 0x17f   :  { %v1444_v46 = vmul.f32 0.5, %v1316_v40  ;;  %4159 = vtanh.f32 %v1068_v41  ;;  %v825_v47 = vadd.f32 %v5125_v5, %v824_v44  ;;  %v1073_v49 = vmul.f32 0.5, %v833_v43 }
 0x180   :  { %v3776_v50 = vpop.f32.mrf.mxu0  ;;  %v4148_v51 = vpop.eup %4147  ;;  %v1534_v60 = vpack.c.bf16 %v1446_v45, %v1445_v52  ;;  %v1321_v1 = vadd.f32 1.0, %v4146_v48 }
 0x181   :  { %v1071_v53 = vmul.f32 0.5, %v825_v47  ;;  %v836_v54 = vadd.f32 %v5125_v5, %v3776_v50  ;;  %v1533_v55 = vpack.c.bf16 %v1444_v46, %v1443_v42  ;;  %4161 = vtanh.f32 %v1073_v49 }
 0x182   :  { %v4150_v56 = vpop.eup %4149  ;;  %v827_v57 = vpop.f32.mrf.mxu0  ;;  %v1319_v61 = vadd.f32 1.0, %v4148_v51  ;;  %v1449_v13 = vmul.f32 0.5, %v1321_v1 }
 0x183   :  { %v1322_v58 = vadd.f32 1.0, %v4150_v56  ;;  %v1074_v59 = vmul.f32 0.5, %v836_v54  ;;  %3893 = vmatprep.mubr.msk.bf16.mxu1 %vm245_vm0, %v1533_v55  ;;  %4163 = vtanh.f32 %v1071_v53  ;;  %v828_v62 = vadd.f32 %v5125_v5, %v827_v57 }
 0x184   :  { %v3779_v63 = vpop.f32.mrf.mxu0  ;;  %v1447_v9 = vmul.f32 0.5, %v1319_v61 }
 0x185   :  { %v4152_v0 = vpop.eup %4151  ;;  %4165 = vtanh.f32 %v1074_v59  ;;  %v849_v2 = vadd.f32 %v5125_v5, %v3779_v63  ;;  %3894 = vmatmul.mubr.msk.bf16.gmra.mxu1 %vm245_vm0, %v1534_v60  ;;  %v1072_v4 = vmul.f32 0.5, %v828_v62  ;;  %v1450_v7 = vmul.f32 0.5, %v1322_v58 }
 0x186   :  { %v1320_v3 = vadd.f32 1.0, %v4152_v0  ;;  %v840_v6 = vpop.f32.mrf.mxu0 }
 0x187   :  { %v841_v30 = vadd.f32 %v5125_v5, %v840_v6  ;;  %v4154_v8 = vpop.eup %4153  ;;  %4167 = vtanh.f32 %v1072_v4  ;;  %v1077_v14 = vmul.f32 0.5, %v849_v2  ;;  %v1536_v22 = vpack.c.bf16 %v1450_v7, %v1449_v13 }
 0x188   :  { %v1448_v10 = vmul.f32 0.5, %v1320_v3  ;;  %v3780_v11 = vpop.f32.mrf.mxu0  ;;  %v4156_v12 = vpop.eup %4155  ;;  %v1325_v24 = vadd.f32 1.0, %v4154_v8 }
 0x189   :  { %v1075_v15 = vmul.f32 0.5, %v841_v30  ;;  %v852_v17 = vadd.f32 %v5125_v5, %v3780_v11  ;;  %v1323_v25 = vadd.f32 1.0, %v4156_v12 }
 0x18a   :  { %v4158_v16 = vpop.eup %4157  ;;  %v843_v18 = vpop.f32.mrf.mxu0  ;;  %v1535_v19 = vpack.c.bf16 %v1448_v10, %v1447_v9  ;;  %v1453_v41 = vmul.f32 0.5, %v1325_v24 }
 0x18b   :  { %v1326_v20 = vadd.f32 1.0, %v4158_v16  ;;  %v844_v21 = vadd.f32 %v5125_v5, %v843_v18  ;;  %4169 = vtanh.f32 %v1075_v15  ;;  %v1078_v26 = vmul.f32 0.5, %v852_v17 }
 0x18c   :  { %v4160_v23 = vpop.eup %4159  ;;  %3897 = vmatprep.mubr.msk.bf16.mxu1 %vm245_vm0, %v1535_v19  ;;  %v3783_v27 = vpop.f32.mrf.mxu0  ;;  %4171 = vtanh.f32 %v1077_v14  ;;  %v1451_v38 = vmul.f32 0.5, %v1323_v25 }
 0x18d   :  { %v1324_v28 = vadd.f32 1.0, %v4160_v23  ;;  %v1076_v29 = vmul.f32 0.5, %v844_v21  ;;  %v865_v31 = vadd.f32 %v5125_v5, %v3783_v27  ;;  %3898 = vmatmul.mubr.msk.bf16.gmra.mxu1 %vm245_vm0, %v1536_v22  ;;  %v1454_v32 = vmul.f32 0.5, %v1326_v20 }
 0x18e   :  { %4173 = vtanh.f32 %v1078_v26  ;;  %v856_v33 = vpop.f32.mrf.mxu0  ;;  %v4162_v37 = vpop.eup %4161 }
 0x18f   :  { %v1452_v34 = vmul.f32 0.5, %v1324_v28  ;;  %4175 = vtanh.f32 %v1076_v29  ;;  %v1081_v35 = vmul.f32 0.5, %v865_v31  ;;  %v857_v36 = vadd.f32 %v5125_v5, %v856_v33 }
 0x190   :  { %v3784_v39 = vpop.f32.mrf.mxu0  ;;  %v4164_v40 = vpop.eup %4163  ;;  %v1538_v49 = vpack.c.bf16 %v1454_v32, %v1453_v41  ;;  %v1329_v54 = vadd.f32 1.0, %v4162_v37 }
 0x191   :  { %v1079_v42 = vmul.f32 0.5, %v857_v36  ;;  %v868_v43 = vadd.f32 %v5125_v5, %v3784_v39  ;;  %v1537_v46 = vpack.c.bf16 %v1452_v34, %v1451_v38  ;;  %4177 = vtanh.f32 %v1081_v35 }
 0x192   :  { %v4166_v44 = vpop.eup %4165  ;;  %v859_v45 = vpop.f32.mrf.mxu0  ;;  %v1327_v50 = vadd.f32 1.0, %v4164_v40  ;;  %v1457_v1 = vmul.f32 0.5, %v1329_v54 }
 0x193   :  { %v1330_v47 = vadd.f32 1.0, %v4166_v44  ;;  %v1082_v48 = vmul.f32 0.5, %v868_v43  ;;  %4179 = vtanh.f32 %v1079_v42  ;;  %v860_v51 = vadd.f32 %v5125_v5, %v859_v45  ;;  %3901 = vmatprep.mubr.msk.bf16.mxu1 %vm245_vm0, %v1537_v46 }
 0x194   :  { %v3787_v52 = vpop.f32.mrf.mxu0  ;;  %v4168_v53 = vpop.eup %4167  ;;  %v1455_v61 = vmul.f32 0.5, %v1327_v50 }
 0x195   :  { %4181 = vtanh.f32 %v1082_v48  ;;  %v881_v55 = vadd.f32 %v5125_v5, %v3787_v52  ;;  %3902 = vmatmul.mubr.msk.bf16.gmra.mxu1 %vm245_vm0, %v1538_v49  ;;  %v1328_v56 = vadd.f32 1.0, %v4168_v53  ;;  %v1080_v57 = vmul.f32 0.5, %v860_v51 }
 0x196   :  { %v872_v58 = vpop.f32.mrf.mxu0  ;;  %v1458_v59 = vmul.f32 0.5, %v1330_v47 }
 0x197   :  { %v873_v60 = vadd.f32 %v5125_v5, %v872_v58  ;;  %v1456_v62 = vmul.f32 0.5, %v1328_v56  ;;  %4183 = vtanh.f32 %v1080_v57  ;;  %v1085_v2 = vmul.f32 0.5, %v881_v55 }
 0x198   :  { %v3788_v63 = vpop.f32.mrf.mxu0  ;;  %v4170_v0 = vpop.eup %4169  ;;  %v1540_v10 = vpack.c.bf16 %v1458_v59, %v1457_v1 }
 0x199   :  { %v1083_v3 = vmul.f32 0.5, %v873_v60  ;;  %v4172_v4 = vpop.eup %4171  ;;  %v884_v6 = vadd.f32 %v5125_v5, %v3788_v63  ;;  %v1539_v30 = vpack.c.bf16 %v1456_v62, %v1455_v61  ;;  %v1331_v12 = vadd.f32 1.0, %v4170_v0 }
 0x19a   :  { %v875_v7 = vpop.f32.mrf.mxu0  ;;  %v1333_v16 = vadd.f32 1.0, %v4172_v4 }
 0x19b   :  { %v4174_v8 = vpop.eup %4173  ;;  %4185 = vtanh.f32 %v1083_v3  ;;  %v876_v9 = vadd.f32 %v5125_v5, %v875_v7  ;;  %v1086_v14 = vmul.f32 0.5, %v884_v6  ;;  %3905 = vmatprep.mubr.msk.bf16.mxu1 %vm245_vm0, %v1539_v30  ;;  %v1459_v23 = vmul.f32 0.5, %v1331_v12 }
 0x19c   :  { %v4176_v11 = vpop.eup %4175  ;;  %v1334_v13 = vadd.f32 1.0, %v4174_v8  ;;  %v3791_v15 = vpop.f32.mrf.mxu0  ;;  %4187 = vtanh.f32 %v1085_v2  ;;  %v1461_v27 = vmul.f32 0.5, %v1333_v16 }
 0x19d   :  { %v1332_v17 = vadd.f32 1.0, %v4176_v11  ;;  %v1084_v18 = vmul.f32 0.5, %v876_v9  ;;  %3906 = vmatmul.mubr.msk.bf16.gmra.mxu1 %vm245_vm0, %v1540_v10  ;;  %4189 = vtanh.f32 %v1086_v14  ;;  %v897_v35 = vadd.f32 %v5125_v5, %v3791_v15 }
 0x19e   :  { %v888_v19 = vpop.f32.mrf.mxu0  ;;  %v1462_v20 = vmul.f32 0.5, %v1334_v13  ;;  %v4178_v22 = vpop.eup %4177 }
 0x19f   :  { %v1460_v21 = vmul.f32 0.5, %v1332_v17  ;;  %4191 = vtanh.f32 %v1084_v18  ;;  %v889_v24 = vadd.f32 %v5125_v5, %v888_v19  ;;  %v1337_v41 = vadd.f32 1.0, %v4178_v22 }
 0x1a0   :  { %v3792_v25 = vpop.f32.mrf.mxu0  ;;  %v4180_v26 = vpop.eup %4179  ;;  %v1542_v37 = vpack.c.bf16 %v1462_v20, %v1461_v27  ;;  %v1089_v47 = vmul.f32 0.5, %v897_v35 }
 0x1a1   :  { %v900_v28 = vadd.f32 %v5125_v5, %v3792_v25  ;;  %v1087_v31 = vmul.f32 0.5, %v889_v24  ;;  %v1541_v33 = vpack.c.bf16 %v1460_v21, %v1459_v23  ;;  %v1335_v38 = vadd.f32 1.0, %v4180_v26 }
 0x1a2   :  { %v4182_v29 = vpop.eup %4181  ;;  %v891_v32 = vpop.f32.mrf.mxu0  ;;  %v1465_v52 = vmul.f32 0.5, %v1337_v41 }
 0x1a3   :  { %v1338_v34 = vadd.f32 1.0, %v4182_v29  ;;  %v892_v36 = vadd.f32 %v5125_v5, %v891_v32  ;;  %3909 = vmatprep.mubr.msk.bf16.mxu1 %vm245_vm0, %v1541_v33  ;;  %4193 = vtanh.f32 %v1087_v31  ;;  %v1090_v42 = vmul.f32 0.5, %v900_v28 }
 0x1a4   :  { %v3795_v39 = vpop.f32.mrf.mxu0  ;;  %v4184_v40 = vpop.eup %4183  ;;  %v1463_v49 = vmul.f32 0.5, %v1335_v38 }
 0x1a5   :  { %v1088_v43 = vmul.f32 0.5, %v892_v36  ;;  %3910 = vmatmul.mubr.msk.bf16.gmra.mxu1 %vm245_vm0, %v1542_v37  ;;  %v1336_v44 = vadd.f32 1.0, %v4184_v40  ;;  %v1466_v46 = vmul.f32 0.5, %v1338_v34  ;;  %v913_v14 = vadd.f32 %v5125_v5, %v3795_v39 }
 0x1a6   :  { %v904_v45 = vpop.f32.mrf.mxu0 }
 0x1a7   :  { %4195 = vtanh.f32 %v1088_v43  ;;  %v1464_v50 = vmul.f32 0.5, %v1336_v44  ;;  %v1544_v58 = vpack.c.bf16 %v1466_v46, %v1465_v52  ;;  %v905_v7 = vadd.f32 %v5125_v5, %v904_v45 }
 0x1a8   :  { %v4186_v48 = vpop.eup %4185  ;;  %v3796_v51 = vpop.f32.mrf.mxu0  ;;  %4197 = vtanh.f32 %v1090_v42  ;;  %v1093_v27 = vmul.f32 0.5, %v913_v14 }
 0x1a9   :  { %v4188_v53 = vpop.eup %4187  ;;  %v1543_v55 = vpack.c.bf16 %v1464_v50, %v1463_v49  ;;  %v1339_v57 = vadd.f32 1.0, %v4186_v48  ;;  %4199 = vtanh.f32 %v1089_v47  ;;  %v916_v8 = vadd.f32 %v5125_v5, %v3796_v51  ;;  %v5233_v51 = vld [vmem:[%s5882_s4] ss:$0 sm:$0xff] }
 0x1aa   :  { %v907_v54 = vpop.f32.mrf.mxu0  ;;  %v4190_v56 = vpop.eup %4189  ;;  %v1341_v62 = vadd.f32 1.0, %v4188_v53  ;;  %v1091_v17 = vmul.f32 0.5, %v905_v7 }
 0x1ab   :  { %v1342_v60 = vadd.f32 1.0, %v4190_v56  ;;  %3913 = vmatprep.mubr.msk.bf16.mxu1 %vm245_vm0, %v1543_v55  ;;  %v908_v1 = vadd.f32 %v5125_v5, %v907_v54  ;;  %v1467_v3 = vmul.f32 0.5, %v1339_v57  ;;  %v1094_v21 = vmul.f32 0.5, %v916_v8 }
 0x1ac   :  { %v4192_v59 = vpop.eup %4191  ;;  %v3799_v61 = vpop.f32.mrf.mxu0  ;;  %v1469_v10 = vmul.f32 0.5, %v1341_v62 }
 0x1ad   :  { %v1340_v63 = vadd.f32 1.0, %v4192_v59  ;;  %v5197_v0 = vpop.f32.mrf.mxu1  ;;  %3914 = vmatmul.mubr.msk.bf16.gmra.mxu1 %vm245_vm0, %v1544_v58  ;;  %v1470_v4 = vmul.f32 0.5, %v1342_v60  ;;  %v1092_v15 = vmul.f32 0.5, %v908_v1  ;;  %v929_v33 = vadd.f32 %v5125_v5, %v3799_v61 }
 0x1ae   :  { %v920_v2 = vpop.f32.mrf.mxu0  ;;  %v1817_v60 = vadd.f32 %v5197_v0, %v5233_v51 }
 0x1af   :  { %v1468_v6 = vmul.f32 0.5, %v1340_v63  ;;  %v5202_v30 = vpop.f32.mrf.mxu1  ;;  %v1546_v19 = vpack.c.bf16 %v1470_v4, %v1469_v10  ;;  %4201 = vtanh.f32 %v1092_v15  ;;  %v921_v42 = vadd.f32 %v5125_v5, %v920_v2 }
 0x1b0   :  { %v3800_v9 = vpop.f32.mrf.mxu0  ;;  %v4194_v13 = vpop.eup %4193  ;;  %4203 = vtanh.f32 %v1091_v17  ;;  %v1097_v45 = vmul.f32 0.5, %v929_v33 }
 0x1b1   :  { %v5205_v11 = vpop.f32.mrf.mxu1  ;;  %v1545_v12 = vpack.c.bf16 %v1468_v6, %v1467_v3  ;;  %v1343_v23 = vadd.f32 1.0, %v4194_v13  ;;  %4205 = vtanh.f32 %v1094_v21  ;;  %v932_v39 = vadd.f32 %v5125_v5, %v3800_v9 }
 0x1b2   :  { %v923_v16 = vpop.f32.mrf.mxu0  ;;  %4207 = vtanh.f32 %v1093_v27  ;;  %v1095_v56 = vmul.f32 0.5, %v921_v42  ;;  %v1809_v3 = vadd.f32 %v5233_v51, %v5202_v30  ;;  %v2321_v9 = vmul.f32 0.5, %v1817_v60 }
 0x1b3   :  { %v5208_v18 = vpop.f32.mrf.mxu1  ;;  %3917 = vmatprep.mubr.msk.bf16.mxu1 %vm245_vm0, %v1545_v12  ;;  %v1471_v35 = vmul.f32 0.5, %v1343_v23  ;;  %v924_v37 = vadd.f32 %v5125_v5, %v923_v16  ;;  %v1098_v52 = vmul.f32 0.5, %v932_v39  ;;  %4209 = vtanh.f32 %v1097_v45 }
 0x1b4   :  { %v4196_v20 = vpop.eup %4195  ;;  %v3803_v22 = vpop.f32.mrf.mxu0  ;;  %v1820_v10 = vadd.f32 %v5205_v11, %v5233_v51  ;;  %v2319_v16 = vmul.f32 0.5, %v1809_v3 }
 0x1b5   :  { %v1344_v24 = vadd.f32 1.0, %v4196_v20  ;;  %v5211_v25 = vpop.f32.mrf.mxu1  ;;  %3918 = vmatmul.mubr.msk.bf16.gmra.mxu1 %vm245_vm0, %v1546_v19  ;;  %v4198_v26 = vpop.eup %4197  ;;  %v1096_v49 = vmul.f32 0.5, %v924_v37  ;;  %v945_v0 = vadd.f32 %v5125_v5, %v3803_v22 }
 0x1b6   :  { %v936_v28 = vpop.f32.mrf.mxu0  ;;  %v4200_v32 = vpop.eup %4199  ;;  %v1346_v36 = vadd.f32 1.0, %v4198_v26  ;;  %v1833_v17 = vadd.f32 %v5211_v25, %v5233_v51  ;;  %v2322_v11 = vmul.f32 0.5, %v1820_v10 }
 0x1b7   :  { %v1472_v29 = vmul.f32 0.5, %v1344_v24  ;;  %v5214_v31 = vpop.f32.mrf.mxu1  ;;  %v1345_v41 = vadd.f32 1.0, %v4200_v32  ;;  %v937_v53 = vadd.f32 %v5125_v5, %v936_v28  ;;  %4211 = vtanh.f32 %v1096_v49 }
 0x1b8   :  { %v3804_v34 = vpop.f32.mrf.mxu0  ;;  %v1474_v48 = vmul.f32 0.5, %v1346_v36  ;;  %4213 = vtanh.f32 %v1098_v52  ;;  %v1101_v23 = vmul.f32 0.5, %v945_v0  ;;  %v1825_v24 = vadd.f32 %v5233_v51, %v5214_v31 }
 0x1b9   :  { %v5218_v38 = vpop.f32.mrf.mxu1  ;;  %v1547_v44 = vpack.c.bf16 %v1472_v29, %v1471_v35  ;;  %v1473_v55 = vmul.f32 0.5, %v1345_v41  ;;  %v1099_v63 = vmul.f32 0.5, %v937_v53  ;;  %v948_v1 = vadd.f32 %v5125_v5, %v3804_v34 }
 0x1ba   :  { %v939_v40 = vpop.f32.mrf.mxu0  ;;  %4215 = vtanh.f32 %v1095_v56  ;;  %v2325_v32 = vmul.f32 0.5, %v1833_v17  ;;  %v1836_v33 = vadd.f32 %v5218_v38, %v5233_v51  ;;  %v2323_v41 = vmul.f32 0.5, %v1825_v24 }
 0x1bb   :  { %v5222_v43 = vpop.f32.mrf.mxu1  ;;  %v940_v46 = vadd.f32 %v5125_v5, %v939_v40  ;;  %3921 = vmatprep.mubr.msk.bf16.mxu1 %vm245_vm0, %v1547_v44  ;;  %v1548_v62 = vpack.c.bf16 %v1474_v48, %v1473_v55  ;;  %v1102_v14 = vmul.f32 0.5, %v948_v1 }
 0x1bc   :  { %v5225_v47 = vpop.f32.mrf.mxu0  ;;  %v4202_v2 = vpop.eup %4201  ;;  %v1828_v42 = vadd.f32 %v5233_v51, %v5222_v43  ;;  %v2326_v53 = vmul.f32 0.5, %v1836_v33 }
 0x1bd   :  { %v5227_v50 = vpop.f32.mrf.mxu1  ;;  %v1100_v58 = vmul.f32 0.5, %v940_v46  ;;  %3922 = vmatmul.mubr.msk.bf16.gmra.mxu1 %vm245_vm0, %v1548_v62  ;;  %v4204_v7 = vpop.eup %4203  ;;  %v1348_v30 = vadd.f32 1.0, %v4202_v2  ;;  %v961_v39 = vadd.f32 %v5125_v5, %v5225_v47  ;;  %v4498_v2 = vld [vmem:[%s5880_s2] ss:$0 sm:$0xff] }
 0x1be   :  { %v952_v54 = vpop.f32.mrf.mxu0  ;;  %v4206_v8 = vpop.eup %4205  ;;  %v1347_v21 = vadd.f32 1.0, %v4204_v7 }
 0x1bf   :  { %v5236_v57 = vpop.f32.mrf.mxu1  ;;  %4217 = vtanh.f32 %v1100_v58  ;;  %v953_v12 = vadd.f32 %v5125_v5, %v952_v54  ;;  %v4208_v15 = vpop.eup %4207  ;;  %v1350_v22 = vadd.f32 1.0, %v4206_v8  ;;  %v1476_v29 = vmul.f32 0.5, %v1348_v30 }
 0x1c0   :  { %v3808_v59 = vpop.f32.mrf.mxu0  ;;  %4219 = vtanh.f32 %v1099_v63  ;;  %v1349_v28 = vadd.f32 1.0, %v4208_v15  ;;  %v1475_v37 = vmul.f32 0.5, %v1347_v21  ;;  %v4210_v40 = vpop.eup %4209  ;;  %v1105_v47 = vmul.f32 0.5, %v961_v39 }
 0x1c1   :  { %v5240_v61 = vpop.f32.mrf.mxu1  ;;  %4221 = vtanh.f32 %v2321_v9  ;;  %v1103_v26 = vmul.f32 0.5, %v953_v12  ;;  %v964_v25 = vadd.f32 %v5125_v5, %v3808_v59  ;;  %v1478_v31 = vmul.f32 0.5, %v1350_v22 }
 0x1c2   :  { %v955_v6 = vpop.f32.mrf.mxu0  ;;  %4223 = vtanh.f32 %v1102_v14  ;;  %v1477_v46 = vmul.f32 0.5, %v1349_v28  ;;  %v1549_v49 = vpack.c.bf16 %v1476_v29, %v1475_v37  ;;  %v2324_v59 = vmul.f32 0.5, %v1828_v42 }
 0x1c3   :  { %v5246_v4 = vpop.f32.mrf.mxu1  ;;  %4225 = vtanh.f32 %v2319_v16  ;;  %v956_v34 = vadd.f32 %v5125_v5, %v955_v6  ;;  %v1106_v48 = vmul.f32 0.5, %v964_v25  ;;  %v1353_v8 = vadd.f32 1.0, %v4210_v40 }
 0x1c4   :  { %v5258_v20 = vpop.f32.mrf.mxu0  ;;  %4227 = vtanh.f32 %v1101_v23  ;;  %v4212_v38 = vpop.eup %4211  ;;  %3925 = vmatprep.mubr.msk.bf16.mxu1 %vm245_vm0, %v1549_v49  ;;  %v1550_v43 = vpack.c.bf16 %v1478_v31, %v1477_v46  ;;  %v1812_v12 = vadd.f32 %v5233_v51, %v5208_v18  ;;  %v1849_v37 = vadd.f32 %v5227_v50, %v5233_v51 }
 0x1c5   :  { %v5252_v13 = vpop.f32.mrf.mxu1  ;;  %4229 = vtanh.f32 %v1103_v26  ;;  %v1104_v44 = vmul.f32 0.5, %v956_v34  ;;  %v4214_v52 = vpop.eup %4213  ;;  %v1352_v58 = vadd.f32 1.0, %v4212_v38  ;;  %v977_v10 = vadd.f32 %v4498_v2, %v5258_v20 }
 0x1c6   :  { %v968_v36 = vpop.f32.mrf.mxu0  ;;  %4231 = vtanh.f32 %v2322_v11  ;;  %v1354_v62 = vadd.f32 1.0, %v4214_v52  ;;  %3926 = vmatmul.mubr.msk.bf16.gmra.mxu1 %vm245_vm0, %v1550_v43  ;;  %v1481_v29 = vmul.f32 0.5, %v1353_v8 }
 0x1c7   :  { %v5256_v19 = vpop.f32.mrf.mxu1  ;;  %4233 = vtanh.f32 %v2325_v32  ;;  %v4216_v5 = vpop.eup %4215  ;;  %v969_v3 = vadd.f32 %v4498_v2, %v968_v36  ;;  %v1480_v30 = vmul.f32 0.5, %v1352_v58  ;;  %v1109_v32 = vmul.f32 0.5, %v977_v10 }
 0x1c8   :  { %v3812_v54 = vpop.f32.mrf.mxu0  ;;  %4235 = vtanh.f32 %v1104_v44  ;;  %v1351_v1 = vadd.f32 1.0, %v4216_v5  ;;  %v1482_v17 = vmul.f32 0.5, %v1354_v62  ;;  %v2320_v36 = vmul.f32 0.5, %v1812_v12 }
 0x1c9   :  { %v5262_v27 = vpop.f32.mrf.mxu1  ;;  %4237 = vtanh.f32 %v2323_v41  ;;  %v980_v6 = vadd.f32 %v4498_v2, %v3812_v54  ;;  %v1107_v14 = vmul.f32 0.5, %v969_v3  ;;  %v2329_v5 = vmul.f32 0.5, %v1849_v37 }
 0x1ca   :  { %4239 = vtanh.f32 %v1106_v48  ;;  %v971_v7 = vpop.f32.mrf.mxu0  ;;  %v1479_v24 = vmul.f32 0.5, %v1351_v1  ;;  %v1552_v42 = vpack.c.bf16 %v1482_v17, %v1481_v29  ;;  %v1841_v1 = vadd.f32 %v5233_v51, %v5236_v57 }
 0x1cb   :  { %v5268_v35 = vpop.f32.mrf.mxu1  ;;  %4241 = vtanh.f32 %v2326_v53  ;;  %v1110_v22 = vmul.f32 0.5, %v980_v6  ;;  %v972_v23 = vadd.f32 %v4498_v2, %v971_v7  ;;  %v1868_v2 = vadd.f32 %v5262_v27, %v5233_v51 }
 0x1cc   :  { %v4218_v56 = vpop.eup %4217  ;;  %4243 = vtanh.f32 %v1105_v47  ;;  %v1551_v39 = vpack.c.bf16 %v1480_v30, %v1479_v24  ;;  %v1852_v12 = vadd.f32 %v5240_v61, %v5233_v51  ;;  %v1860_v57 = vadd.f32 %v5233_v51, %v5268_v35 }
 0x1cd   :  { %v3835_v45 = vpop.f32.mrf.mxu1  ;;  %v4220_v63 = vpop.eup %4219  ;;  %v1356_v9 = vadd.f32 1.0, %v4218_v56  ;;  %4245 = vtanh.f32 %v2324_v59  ;;  %v1108_v33 = vmul.f32 0.5, %v972_v23  ;;  %v1865_v59 = vadd.f32 %v5252_v13, %v5233_v51 }
 0x1ce   :  { %v4222_v16 = vpop.eup %4221  ;;  %v1355_v21 = vadd.f32 1.0, %v4220_v63  ;;  %4247 = vtanh.f32 %v1107_v14  ;;  %v1881_v26 = vadd.f32 %v3835_v45, %v5233_v51  ;;  %3929 = vmatprep.mubr.msk.bf16.mxu1 %vm245_vm0, %v1551_v39  ;;  %v1857_v13 = vadd.f32 %v5233_v51, %v5256_v19 }
 0x1cf   :  { %v5274_v55 = vpop.f32.mrf.mxu1  ;;  %v4224_v11 = vpop.eup %4223  ;;  %v1484_v25 = vmul.f32 0.5, %v1356_v9  ;;  %4249 = vtanh.f32 %v1110_v22  ;;  %v2577_v46 = vadd.f32 1.0, %v4222_v16  ;;  %3930 = vmatmul.mubr.msk.bf16.gmra.mxu1 %vm245_vm0, %v1552_v42  ;;  %v2334_v19 = vmul.f32 0.5, %v1868_v2 }
 0x1d0   :  { %v4226_v18 = vpop.eup %4225  ;;  %v1483_v44 = vmul.f32 0.5, %v1355_v21  ;;  %v1358_v45 = vadd.f32 1.0, %v4224_v11  ;;  %v2337_v48 = vmul.f32 0.5, %v1881_v26  ;;  %4251 = vtanh.f32 %v1108_v33 }
 0x1d1   :  { %v3836_v60 = vpop.f32.mrf.mxu1  ;;  %v4228_v34 = vpop.eup %4227  ;;  %4253 = vtanh.f32 %v1109_v32  ;;  %v5305_v63 = vmul.f32 0.5, %v2577_v46  ;;  %v2575_v7 = vadd.f32 1.0, %v4226_v18  ;;  %v2333_v21 = vmul.f32 0.5, %v1865_v59 }
 0x1d2   :  { %v1884_v20 = vadd.f32 %v3836_v60, %v5233_v51  ;;  %v4230_v41 = vpop.eup %4229  ;;  %v1357_v53 = vadd.f32 1.0, %v4228_v34  ;;  %v1553_v50 = vpack.c.bf16 %v1484_v25, %v1483_v44  ;;  %v1486_v58 = vmul.f32 0.5, %v1358_v45 }
 0x1d3   :  { %v5281_v0 = vpop.f32.mrf.mxu1  ;;  %v4232_v38 = vpop.eup %4231  ;;  %v1359_v47 = vadd.f32 1.0, %v4230_v41  ;;  %v5319_v11 = vmul.f32 0.5, %v1841_v1  ;;  %v5323_v18 = vmul.f32 0.5, %v2575_v7  ;;  %v5327_v35 = vadd.f32 %v5233_v51, %v5246_v4 }
 0x1d4   :  { %v2338_v31 = vmul.f32 0.5, %v1884_v20  ;;  %v4234_v52 = vpop.eup %4233  ;;  %3933 = vmatprep.mubr.msk.bf16.mxu1 %vm245_vm0, %v1553_v50  ;;  %v1485_v8 = vmul.f32 0.5, %v1357_v53  ;;  %v2578_v16 = vadd.f32 1.0, %v4232_v38  ;;  %v2331_v29 = vmul.f32 0.5, %v1857_v13 }
 0x1d5   :  { %v5286_v15 = vpop.f32.mrf.mxu1  ;;  %v4236_v54 = vpop.eup %4235  ;;  %v1487_v30 = vmul.f32 0.5, %v1359_v47  ;;  %v2581_v23 = vadd.f32 1.0, %v4234_v52  ;;  %v2330_v33 = vmul.f32 0.5, %v1852_v12  ;;  %v2332_v34 = vmul.f32 0.5, %v1860_v57 }
 0x1d6   :  { %4255 = vtanh.f32 %v2338_v31  ;;  %v4238_v56 = vpop.eup %4237  ;;  %v1360_v60 = vadd.f32 1.0, %v4236_v54  ;;  %v1554_v17 = vpack.c.bf16 %v1486_v58, %v1485_v8  ;;  %v5331_v37 = vmul.f32 0.5, %v2578_v16 }
 0x1d7   :  { %v5290_v28 = vpop.f32.mrf.mxu1  ;;  %4257 = vtanh.f32 %v2320_v36  ;;  %v4240_v62 = vpop.eup %4239  ;;  %v5334_v42 = vmul.f32 0.5, %v2581_v23  ;;  %v2579_v4 = vadd.f32 1.0, %v4238_v56 }
 0x1d8   :  { %4259 = vtanh.f32 %v2337_v48  ;;  %v4242_v6 = vpop.eup %4241  ;;  %v1488_v9 = vmul.f32 0.5, %v1360_v60  ;;  %v1362_v22 = vadd.f32 1.0, %v4240_v62  ;;  %3934 = vmatmul.mubr.msk.bf16.gmra.mxu1 %vm245_vm0, %v1554_v17 }
 0x1d9   :  { %v5294_v40 = vpop.f32.mrf.mxu1  ;;  %v4244_v10 = vpop.eup %4243  ;;  %4261 = vtanh.f32 %v2329_v5  ;;  %v2582_v25 = vadd.f32 1.0, %v4242_v6 }
 0x1da   :  { %v4246_v14 = vpop.eup %4245  ;;  %v1555_v24 = vpack.c.bf16 %v1488_v9, %v1487_v30  ;;  %v1361_v61 = vadd.f32 1.0, %v4244_v10  ;;  %4263 = vtanh.f32 %v2333_v21  ;;  %v1490_v31 = vmul.f32 0.5, %v1362_v22 }
 0x1db   :  { %v5297_v49 = vpop.f32.mrf.mxu1  ;;  %v4248_v20 = vpop.eup %4247  ;;  %v2580_v32 = vadd.f32 1.0, %v4246_v14  ;;  %4265 = vtanh.f32 %v2334_v19  ;;  %v5337_v50 = vmul.f32 0.5, %v2582_v25 }
 0x1dc   :  { %3937 = vmatprep.mubr.msk.bf16.mxu1 %vm245_vm0, %v1555_v24  ;;  %v4250_v41 = vpop.eup %4249  ;;  %v1363_v44 = vadd.f32 1.0, %v4248_v20  ;;  %v1489_v46 = vmul.f32 0.5, %v1361_v61  ;;  %4267 = vtanh.f32 %v2331_v29  ;;  %v5352_v24 = vmul.f32 0.5, %v2579_v4 }
 0x1dd   :  { %v5300_v43 = vpop.f32.mrf.mxu1  ;;  %v4252_v38 = vpop.eup %4251  ;;  %v5339_v54 = vmul.f32 0.5, %v2580_v32  ;;  %4269 = vtanh.f32 %v2332_v34  ;;  %v1366_v56 = vadd.f32 1.0, %v4250_v41  ;;  %v2834_v16 = vpack.c.bf16 %v5337_v50, %v5334_v42 }
 0x1de   :  { %v4254_v53 = vpop.eup %4253  ;;  %v1364_v5 = vadd.f32 1.0, %v4252_v38  ;;  %v1556_v59 = vpack.c.bf16 %v1490_v31, %v1489_v46  ;;  %v1491_v2 = vmul.f32 0.5, %v1363_v44  ;;  %v1913_v10 = vadd.f32 %v5300_v43, %v5233_v51 }
 0x1df   :  { %v5311_v3 = vpop.f32.mrf.mxu1  ;;  %v1365_v9 = vadd.f32 1.0, %v4254_v53  ;;  %v1494_v21 = vmul.f32 0.5, %v1366_v56  ;;  %v2328_v53 = vmul.f32 0.5, %v5327_v35 }
 0x1e0   :  { %v1492_v6 = vmul.f32 0.5, %v1364_v5  ;;  %3938 = vmatmul.mubr.msk.bf16.gmra.mxu1 %vm245_vm0, %v1556_v59  ;;  %v2345_v25 = vmul.f32 0.5, %v1913_v10 }
 0x1e1   :  { %v3844_v27 = vpop.f32.mrf.mxu1  ;;  %v1493_v29 = vmul.f32 0.5, %v1365_v9 }
 0x1e2   :  { %v1916_v60 = vadd.f32 %v3844_v27, %v5233_v51  ;;  %v1557_v27 = vpack.c.bf16 %v1492_v6, %v1491_v2 }
 0x1e3   :  { %v5321_v26 = vpop.f32.mrf.mxu1  ;;  %v4256_v58 = vpop.eup %4255  ;;  %v1558_v41 = vpack.c.bf16 %v1494_v21, %v1493_v29 }
 0x1e4   :  { %v4258_v1 = vpop.eup %4257  ;;  %v2594_v30 = vadd.f32 1.0, %v4256_v58  ;;  %v2346_v22 = vmul.f32 0.5, %v1916_v60  ;;  %3941 = vmatprep.mubr.msk.bf16.mxu1 %vm245_vm0, %v1557_v27  ;;  %v1908_v4 = vadd.f32 %v5233_v51, %v5321_v26  ;;  %v1905_v58 = vadd.f32 %v5233_v51, %v5311_v3 }
 0x1e5   :  { %v3847_v36 = vpop.f32.mrf.mxu1  ;;  %v4260_v13 = vpop.eup %4259  ;;  %v2576_v43 = vadd.f32 1.0, %v4258_v1  ;;  %v2832_v60 = vpack.c.bf16 %v5331_v37, %v5305_v63  ;;  %v1900_v27 = vadd.f32 %v5294_v40, %v5233_v51 }
 0x1e6   :  { %v1929_v39 = vadd.f32 %v3847_v36, %v5233_v51  ;;  %v5349_v17 = vpop.eup %4261  ;;  %v2593_v20 = vadd.f32 1.0, %v4260_v13  ;;  %v5355_v34 = vmul.f32 0.5, %v2594_v30  ;;  %v2344_v35 = vmul.f32 0.5, %v1908_v4 }
 0x1e7   :  { %v1920_v45 = vpop.f32.mrf.mxu1  ;;  %v5363_v38 = vmul.f32 0.5, %v2576_v43  ;;  %v2343_v30 = vmul.f32 0.5, %v1905_v58  ;;  %v2342_v4 = vmul.f32 0.5, %v1900_v27 }
 0x1e8   :  { %v2349_v48 = vmul.f32 0.5, %v1929_v39  ;;  %v1921_v52 = vadd.f32 %v5233_v51, %v1920_v45  ;;  %v2833_v39 = vpack.c.bf16 %v5339_v54, %v5352_v24  ;;  %v4264_v45 = vpop.eup %4263  ;;  %v5365_v46 = vmul.f32 0.5, %v2593_v20  ;;  %3942 = vmatmul.mubr.msk.bf16.gmra.mxu1 %vm245_vm0, %v1558_v41 }
 0x1e9   :  { %v3848_v47 = vpop.f32.mrf.mxu1  ;;  %v2831_v3 = vpack.c.bf16 %v5363_v38, %v5323_v18  ;;  %v2589_v13 = vadd.f32 1.0, %v4264_v45 }
 0x1ea   :  { %v2347_v62 = vmul.f32 0.5, %v1921_v52  ;;  %4271 = vtanh.f32 %v2349_v48  ;;  %v1932_v7 = vadd.f32 %v3848_v47, %v5233_v51  ;;  %v4266_v52 = vpop.eup %4265  ;;  %v2840_v56 = vpack.c.bf16 %v5355_v34, %v5365_v46 }
 0x1eb   :  { %v1923_v8 = vpop.f32.mrf.mxu1  ;;  %v4268_v26 = vpop.eup %4267  ;;  %v2590_v6 = vadd.f32 1.0, %v4266_v52  ;;  %v2717_v43 = vmul.f32 0.5, %v2589_v13 }
 0x1ec   :  { %4273 = vtanh.f32 %v2347_v62  ;;  %v1924_v12 = vadd.f32 %v5233_v51, %v1923_v8  ;;  %v2350_v57 = vmul.f32 0.5, %v1932_v7  ;;  %v4270_v62 = vpop.eup %4269  ;;  %v2587_v58 = vadd.f32 1.0, %v4268_v26 }
 0x1ed   :  { %v3851_v14 = vpop.f32.mrf.mxu1  ;;  %v2588_v41 = vadd.f32 1.0, %v4270_v62 }
 0x1ee   :  { %v2348_v23 = vmul.f32 0.5, %v1924_v12  ;;  %v1945_v19 = vadd.f32 %v3851_v14, %v5233_v51  ;;  %4275 = vtanh.f32 %v2350_v57  ;;  %v2718_v14 = vmul.f32 0.5, %v2590_v6 }
 0x1ef   :  { %v1936_v61 = vpop.f32.mrf.mxu1 }
 0x1f0   :  { %4277 = vtanh.f32 %v2348_v23  ;;  %v2353_v32 = vmul.f32 0.5, %v1945_v19  ;;  %v1937_v36 = vadd.f32 %v5233_v51, %v1936_v61 }
 0x1f1   :  { %4279 = vtanh.f32 %v2330_v33  ;;  %v3852_v31 = vpop.f32.mrf.mxu1 }
 0x1f2   :  { %4281 = vtanh.f32 %v2346_v22  ;;  %v1948_v44 = vadd.f32 %v3852_v31, %v5233_v51  ;;  %v2351_v33 = vmul.f32 0.5, %v1937_v36 }
 0x1f3   :  { %4283 = vtanh.f32 %v2353_v32  ;;  %v1939_v48 = vpop.f32.mrf.mxu1 }
 0x1f4   :  { %4285 = vtanh.f32 %v2345_v25  ;;  %v2354_v5 = vmul.f32 0.5, %v1948_v44  ;;  %v1940_v47 = vadd.f32 %v5233_v51, %v1939_v48  ;;  %v1897_v25 = vadd.f32 %v5286_v15, %v5233_v51 }
 0x1f5   :  { %4287 = vtanh.f32 %v2351_v33  ;;  %v3855_v59 = vpop.f32.mrf.mxu1 }
 0x1f6   :  { %4289 = vtanh.f32 %v2354_v5  ;;  %v2352_v1 = vmul.f32 0.5, %v1940_v47  ;;  %v1961_v2 = vadd.f32 %v3855_v59, %v5233_v51  ;;  %v2838_v5 = vpack.c.bf16 %v2718_v14, %v2717_v43 }
 0x1f7   :  { %4291 = vtanh.f32 %v5319_v11  ;;  %v1952_v7 = vpop.f32.mrf.mxu1  ;;  %v4272_v8 = vpop.eup %4271 }
 0x1f8   :  { %4293 = vtanh.f32 %v2352_v1  ;;  %v2357_v9 = vmul.f32 0.5, %v1961_v2  ;;  %v1953_v10 = vadd.f32 %v5233_v51, %v1952_v7  ;;  %v2605_v21 = vadd.f32 1.0, %v4272_v8 }
 0x1f9   :  { %v4274_v12 = vpop.eup %4273  ;;  %4295 = vtanh.f32 %v2328_v53  ;;  %v3856_v57 = vpop.f32.mrf.mxu1  ;;  %v2341_v1 = vmul.f32 0.5, %v1897_v25  ;;  %v2716_v7 = vmul.f32 0.5, %v2588_v41  ;;  %v1892_v8 = vadd.f32 %v5233_v51, %v5297_v49 }
 0x1fa   :  { %4297 = vtanh.f32 %v2344_v35  ;;  %v2355_v11 = vmul.f32 0.5, %v1953_v10  ;;  %v1964_v22 = vadd.f32 %v3856_v57, %v5233_v51  ;;  %v2603_v20 = vadd.f32 1.0, %v4274_v12 }
 0x1fb   :  { %4299 = vtanh.f32 %v2357_v9  ;;  %v1955_v23 = vpop.f32.mrf.mxu1  ;;  %v4276_v19 = vpop.eup %4275  ;;  %v2733_v48 = vmul.f32 0.5, %v2605_v21  ;;  %v1889_v49 = vadd.f32 %v5233_v51, %v5290_v28  ;;  %v2585_v28 = vadd.f32 1.0, %v5349_v17 }
 0x1fc   :  { %4301 = vtanh.f32 %v2355_v11  ;;  %v1956_v61 = vadd.f32 %v5233_v51, %v1955_v23  ;;  %v2606_v40 = vadd.f32 1.0, %v4276_v19  ;;  %v2358_v32 = vmul.f32 0.5, %v1964_v22 }
 0x1fd   :  { %v4278_v29 = vpop.eup %4277  ;;  %4303 = vtanh.f32 %v2343_v30  ;;  %v5387_v36 = vpop.f32.mrf.mxu1  ;;  %v2731_v15 = vmul.f32 0.5, %v2603_v20  ;;  %v2932_v30 = vsel %vm2906_vm1, %v2838_v5, 0  ;;  %v2715_v11 = vmul.f32 0.5, %v2587_v58 }
 0x1fe   :  { %v4280_v31 = vpop.eup %4279  ;;  %v2604_v44 = vadd.f32 1.0, %v4278_v29  ;;  %v2356_v45 = vmul.f32 0.5, %v1956_v61  ;;  %v2734_v52 = vmul.f32 0.5, %v2606_v40  ;;  %4305 = vtanh.f32 %v2358_v32 }
 0x1ff   :  { %v4282_v33 = vpop.eup %4281  ;;  %v5389_v53 = vpop.f32.mrf.mxu1  ;;  %v2586_v27 = vadd.f32 1.0, %v4280_v31  ;;  %v2340_v20 = vmul.f32 0.5, %v1892_v8  ;;  %v2837_v25 = vpack.c.bf16 %v2716_v7, %v2715_v11  ;;  %v2713_v8 = vmul.f32 0.5, %v2585_v28 }
 0x200   :  { %v4284_v47 = vpop.eup %4283  ;;  %v2732_v59 = vmul.f32 0.5, %v2604_v44  ;;  %4307 = vtanh.f32 %v2356_v45  ;;  %v2846_v62 = vpack.c.bf16 %v2734_v52, %v2733_v48  ;;  %v2602_v10 = vadd.f32 1.0, %v4282_v33 }
 0x201   :  { %v4286_v35 = vpop.eup %4285  ;;  %v5391_v2 = vpop.f32.mrf.mxu1  ;;  %4309 = vtanh.f32 %v2342_v4  ;;  %v2609_v12 = vadd.f32 1.0, %v4284_v47  ;;  %v2339_v33 = vmul.f32 0.5, %v1889_v49 }
 0x202   :  { %v4288_v6 = vpop.eup %4287  ;;  %v2845_v13 = vpack.c.bf16 %v2732_v59, %v2731_v15  ;;  %3945 = vmatprep.subr.msk.bf16.mxu0 %vm2906_vm1, %v2846_v62  ;;  %4311 = vtanh.f32 %v2341_v1  ;;  %v2601_v22 = vadd.f32 1.0, %v4286_v35  ;;  %v2730_v32 = vmul.f32 0.5, %v2602_v10 }
 0x203   :  { %v4290_v9 = vpop.eup %4289  ;;  %v5396_v26 = vpop.f32.mrf.mxu1  ;;  %3610 = vmatpush3.bf16.xpose.msra.mxu0 %v2932_v30  ;;  %v2607_v23 = vadd.f32 1.0, %v4288_v6  ;;  %v5406_v31 = vmul.f32 0.5, %v2609_v12  ;;  %v2714_v15 = vmul.f32 0.5, %v2586_v27  ;;  %4313 = vtanh.f32 %v2340_v20 }
 0x204   :  { %v4292_v57 = vpop.eup %4291  ;;  %v2610_v14 = vadd.f32 1.0, %v4290_v9  ;;  %3946 = vmatprep.subr.msk.bf16.mxu0 %vm2906_vm1, %v2845_v13  ;;  %v2729_v48 = vmul.f32 0.5, %v2601_v22  ;;  %v2929_v59 = vsel %vm2906_vm1, %v2837_v25, 0  ;;  %4315 = vtanh.f32 %v2339_v33 }
 0x205   :  { %v4294_v21 = vpop.eup %4293  ;;  %v5402_v19 = vpop.f32.mrf.mxu1  ;;  %v5413_v52 = vmul.f32 0.5, %v2607_v23  ;;  %v2836_v20 = vpack.c.bf16 %v2714_v15, %v2713_v8  ;;  %v2583_v25 = vadd.f32 1.0, %v4292_v57 }
 0x206   :  { %v4296_v43 = vpop.eup %4295  ;;  %v5404_v61 = vmul.f32 0.5, %v2610_v14  ;;  %v2608_v29 = vadd.f32 1.0, %v4294_v21  ;;  %v2844_v62 = vpack.c.bf16 %v2730_v32, %v2729_v48 }
 0x207   :  { %v4298_v40 = vpop.eup %4297  ;;  %v5408_v41 = vpop.f32.mrf.mxu1  ;;  %v2584_v10 = vadd.f32 1.0, %v4296_v43 }
 0x208   :  { %v4300_v4 = vpop.eup %4299  ;;  %v5411_v44 = vmul.f32 0.5, %v2608_v29  ;;  %v2848_v47 = vpack.c.bf16 %v5404_v61, %v5406_v31  ;;  %v2600_v35 = vadd.f32 1.0, %v4298_v40  ;;  %v1985_v42 = vadd.f32 %v5233_v51, %v5408_v41 }
 0x209   :  { %v4302_v45 = vpop.eup %4301  ;;  %v5415_v5 = vpop.f32.mrf.mxu1  ;;  %v2613_v1 = vadd.f32 1.0, %v4300_v4  ;;  %v2712_v4 = vmul.f32 0.5, %v2584_v10  ;;  %v2711_v10 = vmul.f32 0.5, %v2583_v25 }
 0x20a   :  { %v4304_v58 = vpop.eup %4303  ;;  %v2847_v6 = vpack.c.bf16 %v5411_v44, %v5413_v52  ;;  %v2611_v13 = vadd.f32 1.0, %v4302_v45  ;;  %v2728_v21 = vmul.f32 0.5, %v2600_v35 }
 0x20b   :  { %v5420_v17 = vpop.f32.mrf.mxu1  ;;  %v4306_v7 = vpop.eup %4305  ;;  %3612 = vmatpush3.bf16.xpose.msra.mxu0 %v2929_v59  ;;  %v2599_v12 = vadd.f32 1.0, %v4304_v58  ;;  %v5426_v49 = vmul.f32 0.5, %v2613_v1  ;;  %v1876_v59 = vadd.f32 %v5233_v51, %v5281_v0  ;;  %v1873_v0 = vadd.f32 %v5233_v51, %v5274_v55 }
 0x20c   :  { %v2614_v30 = vadd.f32 1.0, %v4306_v7  ;;  %3947 = vmatprep.subr.msk.bf16.mxu0 %vm2906_vm1, %v2844_v62  ;;  %v5430_v40 = vmul.f32 0.5, %v2611_v13  ;;  %v2926_v7 = vsel %vm2906_vm1, %v2836_v20, 0  ;;  %v2835_v20 = vpack.c.bf16 %v2712_v4, %v2711_v10 }
 0x20d   :  { %v4308_v9 = vpop.eup %4307  ;;  %v3867_v27 = vpop.f32.mrf.mxu1  ;;  %v2727_v28 = vmul.f32 0.5, %v2599_v12 }
 0x20e   :  { %v2612_v11 = vadd.f32 1.0, %v4308_v9  ;;  %v2009_v14 = vadd.f32 %v3867_v27, %v5233_v51  ;;  %v5428_v22 = vmul.f32 0.5, %v2614_v30  ;;  %v4310_v29 = vpop.eup %4309 }
 0x20f   :  { %v2000_v23 = vpop.f32.mrf.mxu1  ;;  %v4312_v58 = vpop.eup %4311  ;;  %v2598_v35 = vadd.f32 1.0, %v4310_v29  ;;  %v2843_v8 = vpack.c.bf16 %v2728_v21, %v2727_v28  ;;  %v2335_v29 = vmul.f32 0.5, %v1873_v0 }
 0x210   :  { %v5432_v43 = vmul.f32 0.5, %v2612_v11  ;;  %v2369_v32 = vmul.f32 0.5, %v2009_v14  ;;  %v2001_v45 = vadd.f32 %v5233_v51, %v2000_v23  ;;  %v2850_v48 = vpack.c.bf16 %v5428_v22, %v5426_v49  ;;  %v4314_v11 = vpop.eup %4313 }
 0x211   :  { %v3868_v33 = vpop.f32.mrf.mxu1  ;;  %v2597_v12 = vadd.f32 1.0, %v4312_v58  ;;  %v2336_v14 = vmul.f32 0.5, %v1876_v59  ;;  %v2726_v23 = vmul.f32 0.5, %v2598_v35  ;;  %v4316_v55 = vpop.eup %4315  ;;  %v2596_v28 = vadd.f32 1.0, %v4314_v11  ;;  %v5459_v59 = vld [vmem:[%s5883_s5] sm:$0x1] }
 0x212   :  { %4317 = vtanh.f32 %v2369_v32  ;;  %v2012_v57 = vadd.f32 %v3868_v33, %v5233_v51  ;;  %v2849_v15 = vpack.c.bf16 %v5432_v43, %v5430_v40  ;;  %v2367_v1 = vmul.f32 0.5, %v2001_v45  ;;  %3625 = vmatprep.mubr.msk.bf16.mxu0 %vm2906_vm1, %v5459_v59  ;;  %3643 = vmatprep.mubr.msk.bf16.mxu1 %vm2906_vm1, %v5459_v59 }
 0x213   :  { %v2003_v62 = vpop.f32.mrf.mxu1  ;;  %3614 = vmatpush3.bf16.xpose.msra.mxu0 %v2926_v7  ;;  %v2725_v25 = vmul.f32 0.5, %v2597_v12  ;;  %v2923_v33 = vsel %vm2906_vm1, %v2835_v20, 0  ;;  %v2595_v4 = vadd.f32 1.0, %v4316_v55  ;;  %v1993_v7 = vadd.f32 %v5402_v19, %v5233_v51 }
 0x214   :  { %v2370_v13 = vmul.f32 0.5, %v2012_v57  ;;  %v2004_v9 = vadd.f32 %v5233_v51, %v2003_v62  ;;  %4319 = vtanh.f32 %v2367_v1  ;;  %3948 = vmatprep.subr.msk.bf16.mxu0 %vm2906_vm1, %v2843_v8  ;;  %v1996_v57 = vadd.f32 %v5415_v5, %v5233_v51 }
 0x215   :  { %v5447_v30 = vpop.f32.mrf.mxu1  ;;  %v2842_v58 = vpack.c.bf16 %v2726_v23, %v2725_v25  ;;  %v2724_v62 = vmul.f32 0.5, %v2596_v28  ;;  %v1988_v11 = vadd.f32 %v5233_v51, %v5420_v17  ;;  %v2920_v23 = vsel %vm2906_vm1, %v2834_v16, 0 }
 0x216   :  { %4321 = vtanh.f32 %v2370_v13  ;;  %v2368_v27 = vmul.f32 0.5, %v2004_v9  ;;  %v2723_v13 = vmul.f32 0.5, %v2595_v4  ;;  %v2366_v9 = vmul.f32 0.5, %v1996_v57 }
 0x217   :  { %v5449_v21 = vpop.f32.mrf.mxu1  ;;  %v1980_v28 = vadd.f32 %v5391_v2, %v5233_v51  ;;  %v2364_v50 = vmul.f32 0.5, %v1988_v11 }
 0x218   :  { %4323 = vtanh.f32 %v2368_v27  ;;  %v2365_v27 = vmul.f32 0.5, %v1993_v7  ;;  %v2841_v19 = vpack.c.bf16 %v2724_v62, %v2723_v13 }
 0x219   :  { %v5451_v32 = vpop.f32.mrf.mxu1  ;;  %4325 = vtanh.f32 %v2336_v14 }
 0x21a   :  { %4327 = vtanh.f32 %v2335_v29 }
 0x21b   :  { %v5453_v45 = vpop.f32.mrf.mxu1  ;;  %3616 = vmatpush3.bf16.xpose.msra.mxu0 %v2923_v33  ;;  %4329 = vtanh.f32 %v2366_v9 }
 0x21c   :  { %3949 = vmatprep.subr.msk.bf16.mxu0 %vm2906_vm1, %v2842_v58  ;;  %4331 = vtanh.f32 %v2365_v27 }
 0x21d   :  { %v3875_v35 = vpop.f32.mrf.mxu1 }
 0x21f   :  { %v4318_v1 = vpop.eup %4317  ;;  %v5470_v8 = vpop.f32.mrf.mxu1 }
 0x220   :  { %v2625_v0 = vadd.f32 1.0, %v4318_v1 }
 0x221   :  { %v3876_v10 = vpop.f32.mrf.mxu1  ;;  %v4320_v5 = vpop.eup %4319 }
 0x222   :  { %v2623_v20 = vadd.f32 1.0, %v4320_v5  ;;  %v5483_v17 = vmul.f32 0.5, %v2625_v0  ;;  %v2044_v0 = vadd.f32 %v3876_v10, %v5233_v51 }
 0x223   :  { %v4322_v12 = vpop.eup %4321  ;;  %v5474_v14 = vpop.f32.mrf.mxu1  ;;  %3618 = vmatpush3.bf16.xpose.msra.mxu0 %v2920_v23  ;;  %v2362_v23 = vmul.f32 0.5, %v1980_v28 }
 0x224   :  { %v2626_v29 = vadd.f32 1.0, %v4322_v12  ;;  %3950 = vmatprep.subr.msk.bf16.mxu0 %vm2906_vm1, %v2841_v19  ;;  %v5490_v1 = vmul.f32 0.5, %v2623_v20  ;;  %v2917_v20 = vsel %vm2906_vm1, %v2833_v39, 0  ;;  %v2378_v24 = vmul.f32 0.5, %v2044_v0 }
 0x225   :  { %v4324_v25 = vpop.eup %4323  ;;  %v3879_v55 = vpop.f32.mrf.mxu1 }
 0x226   :  { %v5485_v33 = vmul.f32 0.5, %v2626_v29  ;;  %v2624_v58 = vadd.f32 1.0, %v4324_v25  ;;  %v2057_v16 = vadd.f32 %v3879_v55, %v5233_v51  ;;  %v4326_v57 = vpop.eup %4325  ;;  %v2363_v29 = vmul.f32 0.5, %v1985_v42 }
 0x227   :  { %v2048_v4 = vpop.f32.mrf.mxu1  ;;  %v4328_v5 = vpop.eup %4327  ;;  %v2592_v11 = vadd.f32 1.0, %v4326_v57  ;;  %v2041_v25 = vadd.f32 %v3875_v35, %v5233_v51 }
 0x228   :  { %v5492_v62 = vmul.f32 0.5, %v2624_v58  ;;  %v2049_v2 = vadd.f32 %v5233_v51, %v2048_v4  ;;  %v2856_v7 = vpack.c.bf16 %v5485_v33, %v5483_v17  ;;  %v2381_v13 = vmul.f32 0.5, %v2057_v16  ;;  %v5509_v58 = vld [vmem:[%s5882_s4] ss:$0 sm:$0xff] }
 0x229   :  { %v3880_v9 = vpop.f32.mrf.mxu1  ;;  %v2591_v55 = vadd.f32 1.0, %v4328_v5  ;;  %v2720_v35 = vmul.f32 0.5, %v2592_v11  ;;  %v2377_v16 = vmul.f32 0.5, %v2041_v25  ;;  %v1972_v46 = vadd.f32 %v5509_v58, %v5396_v26 }
 0x22a   :  { %v2379_v41 = vmul.f32 0.5, %v2049_v2  ;;  %v2060_v12 = vadd.f32 %v3880_v9, %v5233_v51  ;;  %v2855_v27 = vpack.c.bf16 %v5492_v62, %v5490_v1  ;;  %4333 = vtanh.f32 %v2381_v13 }
 0x22b   :  { %v2051_v19 = vpop.f32.mrf.mxu1  ;;  %4335 = vtanh.f32 %v2364_v50  ;;  %3620 = vmatpush3.bf16.xpose.msra.mxu0 %v2917_v20  ;;  %v1977_v51 = vadd.f32 %v5509_v58, %v5387_v36  ;;  %v2719_v34 = vmul.f32 0.5, %v2591_v55  ;;  %v4330_v36 = vpop.eup %4329  ;;  %v2036_v13 = vadd.f32 %v5509_v58, %v5474_v14 }
 0x22c   :  { %v2382_v10 = vmul.f32 0.5, %v2060_v12  ;;  %4337 = vtanh.f32 %v2379_v41  ;;  %v2052_v28 = vadd.f32 %v5509_v58, %v2051_v19  ;;  %3951 = vmatprep.subr.msk.bf16.mxu0 %vm2906_vm1, %v2840_v56  ;;  %v2914_v5 = vsel %vm2906_vm1, %v2832_v60, 0  ;;  %v4332_v26 = vpop.eup %4331 }
 0x22d   :  { %v3883_v54 = vpop.f32.mrf.mxu1  ;;  %v2361_v2 = vmul.f32 0.5, %v1977_v51  ;;  %v2839_v0 = vpack.c.bf16 %v2720_v35, %v2719_v34  ;;  %v2033_v11 = vadd.f32 %v5509_v58, %v5470_v8  ;;  %v2360_v14 = vmul.f32 0.5, %v1972_v46 }
 0x22e   :  { %4339 = vtanh.f32 %v2382_v10  ;;  %v2073_v39 = vadd.f32 %v5509_v58, %v3883_v54  ;;  %v2380_v42 = vmul.f32 0.5, %v2052_v28  ;;  %v2622_v19 = vadd.f32 1.0, %v4330_v36 }
 0x22f   :  { %4341 = vtanh.f32 %v2362_v23  ;;  %v2064_v50 = vpop.f32.mrf.mxu1  ;;  %v2376_v60 = vmul.f32 0.5, %v2036_v13  ;;  %v1969_v25 = vadd.f32 %v5509_v58, %v5389_v53  ;;  %v2621_v10 = vadd.f32 1.0, %v4332_v26 }
 0x230   :  { %4343 = vtanh.f32 %v2363_v29  ;;  %v2385_v4 = vmul.f32 0.5, %v2073_v39  ;;  %v2065_v57 = vadd.f32 %v5509_v58, %v2064_v50  ;;  %v2028_v8 = vadd.f32 %v5509_v58, %v5451_v32 }
 0x231   :  { %4345 = vtanh.f32 %v2380_v42  ;;  %v3884_v56 = vpop.f32.mrf.mxu1  ;;  %v2375_v54 = vmul.f32 0.5, %v2033_v11  ;;  %v2750_v35 = vmul.f32 0.5, %v2622_v19  ;;  %v2911_v53 = vsel %vm2906_vm1, %v2831_v3, 0 }
 0x232   :  { %4347 = vtanh.f32 %v2378_v24  ;;  %v2383_v9 = vmul.f32 0.5, %v2065_v57  ;;  %v2076_v41 = vadd.f32 %v5509_v58, %v3884_v56  ;;  %v2359_v34 = vmul.f32 0.5, %v1969_v25 }
 0x233   :  { %4349 = vtanh.f32 %v2385_v4  ;;  %v2067_v12 = vpop.f32.mrf.mxu1  ;;  %3622 = vmatpush3.bf16.xpose.msra.mxu0 %v2914_v5  ;;  %v2749_v46 = vmul.f32 0.5, %v2621_v10  ;;  %v2025_v56 = vadd.f32 %v5509_v58, %v5447_v30  ;;  %v2374_v13 = vmul.f32 0.5, %v2028_v8 }
 0x234   :  { %4351 = vtanh.f32 %v2377_v16  ;;  %v2068_v23 = vadd.f32 %v5509_v58, %v2067_v12  ;;  %3952 = vmatprep.subr.msk.bf16.mxu0 %vm2906_vm1, %v2839_v0  ;;  %v2386_v63 = vmul.f32 0.5, %v2076_v41  ;;  %v2020_v10 = vadd.f32 %v5509_v58, %v5453_v45 }
 0x235   :  { %4353 = vtanh.f32 %v2383_v9  ;;  %v3887_v37 = vpop.f32.mrf.mxu1  ;;  %v2854_v30 = vpack.c.bf16 %v2750_v35, %v2749_v46 }
 0x236   :  { %4355 = vtanh.f32 %v2361_v2  ;;  %v2384_v20 = vmul.f32 0.5, %v2068_v23  ;;  %v2089_v29 = vadd.f32 %v5509_v58, %v3887_v37 }
 0x237   :  { %4357 = vtanh.f32 %v2386_v63  ;;  %v2080_v55 = vpop.f32.mrf.mxu1  ;;  %v4334_v28 = vpop.eup %4333 }
 0x238   :  { %4359 = vtanh.f32 %v2384_v20  ;;  %v2389_v51 = vmul.f32 0.5, %v2089_v29  ;;  %v2081_v24 = vadd.f32 %v5509_v58, %v2080_v55  ;;  %v4336_v39 = vpop.eup %4335  ;;  %v2637_v32 = vadd.f32 1.0, %v4334_v28 }
 0x239   :  { %4361 = vtanh.f32 %v2360_v14  ;;  %v3888_v42 = vpop.f32.mrf.mxu1  ;;  %v4338_v50 = vpop.eup %4337  ;;  %v2620_v9 = vadd.f32 1.0, %v4336_v39  ;;  %v2373_v20 = vmul.f32 0.5, %v2025_v56  ;;  %v2980_v39 = vsel %vm2906_vm1, %v2854_v30, 0 }
 0x23a   :  { %4363 = vtanh.f32 %v2376_v60  ;;  %v2387_v16 = vmul.f32 0.5, %v2081_v24  ;;  %v2092_v4 = vadd.f32 %v5509_v58, %v3888_v42  ;;  %v2635_v5 = vadd.f32 1.0, %v4338_v50 }
 0x23b   :  { %v4340_v57 = vpop.eup %4339  ;;  %4365 = vtanh.f32 %v2389_v51  ;;  %v2083_v36 = vpop.f32.mrf.mxu1  ;;  %3624 = vmatpush3.bf16.xpose.msra.mxu0 %v2911_v53  ;;  %v2765_v26 = vmul.f32 0.5, %v2637_v32  ;;  %v2748_v51 = vmul.f32 0.5, %v2620_v9 }
 0x23c   :  { %v4342_v2 = vpop.eup %4341  ;;  %4367 = vtanh.f32 %v2375_v54  ;;  %v2638_v18 = vadd.f32 1.0, %v4340_v57  ;;  %v2390_v38 = vmul.f32 0.5, %v2092_v4  ;;  %v2084_v0 = vadd.f32 %v5509_v58, %v2083_v36 }
 0x23d   :  { %v4344_v3 = vpop.eup %4343  ;;  %4369 = vtanh.f32 %v2387_v16  ;;  %v5547_v41 = vpop.f32.mrf.mxu1  ;;  %v2763_v8 = vmul.f32 0.5, %v2635_v5  ;;  %v2017_v16 = vadd.f32 %v5509_v58, %v5449_v21 }
 0x23e   :  { %v4346_v12 = vpop.eup %4345  ;;  %v2766_v11 = vmul.f32 0.5, %v2638_v18  ;;  %4371 = vtanh.f32 %v2390_v38  ;;  %v2388_v19 = vmul.f32 0.5, %v2084_v0  ;;  %v2619_v60 = vadd.f32 1.0, %v4344_v3 }
 0x23f   :  { %v4348_v23 = vpop.eup %4347  ;;  %v2636_v14 = vadd.f32 1.0, %v4346_v12  ;;  %v5549_v63 = vpop.f32.mrf.mxu1  ;;  %4373 = vtanh.f32 %v2359_v34  ;;  %v2618_v34 = vadd.f32 1.0, %v4342_v2  ;;  %v2372_v18 = vmul.f32 0.5, %v2020_v10 }
 0x240   :  { %v4350_v37 = vpop.eup %4349  ;;  %v2862_v29 = vpack.c.bf16 %v2766_v11, %v2765_v26  ;;  %4375 = vtanh.f32 %v2388_v19  ;;  %v2634_v24 = vadd.f32 1.0, %v4348_v23  ;;  %v2747_v32 = vmul.f32 0.5, %v2619_v60 }
 0x241   :  { %v4352_v25 = vpop.eup %4351  ;;  %v2764_v55 = vmul.f32 0.5, %v2636_v14  ;;  %v5553_v28 = vpop.f32.mrf.mxu1  ;;  %4377 = vtanh.f32 %v2374_v13  ;;  %v2641_v53 = vadd.f32 1.0, %v4350_v37  ;;  %v2371_v11 = vmul.f32 0.5, %v2017_v16 }
 0x242   :  { %v4354_v54 = vpop.eup %4353  ;;  %3953 = vmatprep.subr.msk.bf16.mxu1 %vm2906_vm1, %v2862_v29  ;;  %3626 = vmatmul.mubr.msk.bf16.vlgmr.msra.gmra.mxu0 %vm2906_vm1, %v5459_v59  ;;  %4379 = vtanh.f32 %v2373_v20  ;;  %v2633_v4 = vadd.f32 1.0, %v4352_v25  ;;  %v2762_v38 = vmul.f32 0.5, %v2634_v24  ;;  %v2853_v9 = vpack.c.bf16 %v2748_v51, %v2747_v32 }
 0x243   :  { %v4356_v35 = vpop.eup %4355  ;;  %3628 = vmatpush3.bf16.xpose.msra.mxu1 %v2980_v39  ;;  %v2861_v42 = vpack.c.bf16 %v2764_v55, %v2763_v8  ;;  %v5557_v50 = vpop.f32.mrf.mxu1  ;;  %3661 = vmatprep.mubr.msk.bf16.mxu0 %vm2906_vm1, %v5459_v59  ;;  %v2639_v46 = vadd.f32 1.0, %v4354_v54  ;;  %v5568_v0 = vmul.f32 0.5, %v2641_v53  ;;  %v2746_v19 = vmul.f32 0.5, %v2618_v34 }
 0x244   :  { %v4358_v45 = vpop.eup %4357  ;;  %v2617_v2 = vadd.f32 1.0, %v4356_v35  ;;  %v2761_v30 = vmul.f32 0.5, %v2633_v4  ;;  %4381 = vtanh.f32 %v2372_v18  ;;  %v2977_v10 = vsel %vm2906_vm1, %v2853_v9, 0 }
 0x245   :  { %v4360_v57 = vpop.eup %4359  ;;  %v2642_v56 = vadd.f32 1.0, %v4358_v45  ;;  %3954 = vmatprep.subr.msk.bf16.mxu1 %vm2906_vm1, %v2861_v42  ;;  %v5566_v36 = vpop.f32.mrf.mxu1  ;;  %v5576_v37 = vmul.f32 0.5, %v2639_v46  ;;  %4383 = vtanh.f32 %v2371_v11 }
 0x246   :  { %v4362_v13 = vpop.eup %4361  ;;  %v2640_v3 = vadd.f32 1.0, %v4360_v57  ;;  %v2860_v8 = vpack.c.bf16 %v2762_v38, %v2761_v30  ;;  %v2745_v39 = vmul.f32 0.5, %v2617_v2 }
 0x247   :  { %v4364_v5 = vpop.eup %4363  ;;  %v5570_v21 = vmul.f32 0.5, %v2642_v56  ;;  %v5572_v12 = vpop.f32.mrf.mxu1  ;;  %v2616_v45 = vadd.f32 1.0, %v4362_v13 }
 0x248   :  { %v4366_v26 = vpop.eup %4365  ;;  %v5574_v23 = vmul.f32 0.5, %v2640_v3  ;;  %v2632_v25 = vadd.f32 1.0, %v4364_v5  ;;  %v2852_v56 = vpack.c.bf16 %v2746_v19, %v2745_v39 }
 0x249   :  { %v4368_v14 = vpop.eup %4367  ;;  %v5578_v60 = vpop.f32.mrf.mxu1  ;;  %v2864_v20 = vpack.c.bf16 %v5570_v21, %v5568_v0  ;;  %v2645_v54 = vadd.f32 1.0, %v4366_v26  ;;  %v2744_v30 = vmul.f32 0.5, %v2616_v45  ;;  %v5789_v0 = vld [vmem:[%s5882_s4] ss:$0 sm:$0xff] }
 0x24a   :  { %v4370_v29 = vpop.eup %4369  ;;  %v2863_v24 = vpack.c.bf16 %v5574_v23, %v5576_v37  ;;  %v2631_v35 = vadd.f32 1.0, %v4368_v14  ;;  %v2760_v57 = vmul.f32 0.5, %v2632_v25 }
 0x24b   :  { %v4372_v55 = vpop.eup %4371  ;;  %3630 = vmatpush3.bf16.xpose.msra.mxu1 %v2977_v10  ;;  %v5583_v51 = vpop.f32.mrf.mxu1  ;;  %v2643_v32 = vadd.f32 1.0, %v4370_v29  ;;  %v5591_v38 = vmul.f32 0.5, %v2645_v54 }
 0x24c   :  { %v2646_v53 = vadd.f32 1.0, %v4372_v55  ;;  %3955 = vmatprep.subr.msk.bf16.mxu1 %vm2906_vm1, %v2860_v8  ;;  %v4374_v42 = vpop.eup %4373  ;;  %v2759_v26 = vmul.f32 0.5, %v2631_v35  ;;  %v2974_v8 = vsel %vm2906_vm1, %v2852_v56, 0 }
 0x24d   :  { %v3899_v16 = vpop.f32.mrf.mxu1  ;;  %v4376_v4 = vpop.eup %4375  ;;  %v2615_v5 = vadd.f32 1.0, %v4374_v42  ;;  %v5594_v14 = vmul.f32 0.5, %v2643_v32 }
 0x24e   :  { %v5588_v34 = vmul.f32 0.5, %v2646_v53  ;;  %v2137_v46 = vadd.f32 %v5509_v58, %v3899_v16  ;;  %v4378_v18 = vpop.eup %4377  ;;  %v2644_v3 = vadd.f32 1.0, %v4376_v4  ;;  %v2859_v54 = vpack.c.bf16 %v2760_v57, %v2759_v26 }
 0x24f   :  { %v2128_v9 = vpop.f32.mrf.mxu1  ;;  %v4380_v13 = vpop.eup %4379  ;;  %v2630_v10 = vadd.f32 1.0, %v4378_v18  ;;  %v2743_v42 = vmul.f32 0.5, %v2615_v5 }
 0x250   :  { %v2401_v2 = vmul.f32 0.5, %v2137_v46  ;;  %v2129_v11 = vadd.f32 %v5509_v58, %v2128_v9  ;;  %v5596_v29 = vmul.f32 0.5, %v2644_v3  ;;  %v2866_v19 = vpack.c.bf16 %v5588_v34, %v5591_v38 }
 0x251   :  { %v3900_v25 = vpop.f32.mrf.mxu1  ;;  %v2629_v45 = vadd.f32 1.0, %v4380_v13  ;;  %v2758_v46 = vmul.f32 0.5, %v2630_v10  ;;  %v2851_v56 = vpack.c.bf16 %v2744_v30, %v2743_v42  ;;  %v4382_v18 = vpop.eup %4381  ;;  %v2124_v30 = vadd.f32 %v5509_v58, %v5578_v60 }
 0x252   :  { %v2399_v55 = vmul.f32 0.5, %v2129_v11  ;;  %4385 = vtanh.f32 %v2401_v2  ;;  %v2140_v39 = vadd.f32 %v5509_v58, %v3900_v25  ;;  %v2865_v53 = vpack.c.bf16 %v5596_v29, %v5594_v14  ;;  %v4384_v26 = vpop.eup %4383 }
 0x253   :  { %3632 = vmatpush3.bf16.xpose.msra.mxu1 %v2974_v8  ;;  %v2131_v35 = vpop.f32.mrf.mxu1  ;;  %v2757_v9 = vmul.f32 0.5, %v2629_v45  ;;  %v2628_v2 = vadd.f32 1.0, %v4382_v18  ;;  %v2971_v11 = vsel %vm2906_vm1, %v2851_v56, 0  ;;  %v2627_v8 = vadd.f32 1.0, %v4384_v26 }
 0x254   :  { %4387 = vtanh.f32 %v2399_v55  ;;  %3956 = vmatprep.subr.msk.bf16.mxu1 %vm2906_vm1, %v2859_v54  ;;  %v2132_v32 = vadd.f32 %v5509_v58, %v2131_v35  ;;  %v2402_v16 = vmul.f32 0.5, %v2140_v39  ;;  %v2121_v54 = vadd.f32 %v5509_v58, %v5566_v36 }
 0x255   :  { %v5606_v4 = vpop.f32.mrf.mxu1  ;;  %v2858_v13 = vpack.c.bf16 %v2758_v46, %v2757_v9  ;;  %v2756_v55 = vmul.f32 0.5, %v2628_v2  ;;  %v2755_v42 = vmul.f32 0.5, %v2627_v8  ;;  %v2105_v46 = vadd.f32 %v5509_v58, %v5547_v41 }
 0x256   :  { %v2400_v57 = vmul.f32 0.5, %v2132_v32  ;;  %4389 = vtanh.f32 %v2402_v16  ;;  %v2398_v32 = vmul.f32 0.5, %v2124_v30  ;;  %v2968_v60 = vsel %vm2906_vm1, %v2850_v48, 0 }
 0x257   :  { %v5608_v3 = vpop.f32.mrf.mxu1  ;;  %v2397_v56 = vmul.f32 0.5, %v2121_v54  ;;  %v2116_v26 = vadd.f32 %v5509_v58, %v5583_v51  ;;  %v2393_v8 = vmul.f32 0.5, %v2105_v46  ;;  %v2113_v48 = vadd.f32 %v5509_v58, %v5572_v12 }
 0x258   :  { %4391 = vtanh.f32 %v2400_v57  ;;  %v2857_v57 = vpack.c.bf16 %v2756_v55, %v2755_v42  ;;  %v2965_v46 = vsel %vm2906_vm1, %v2849_v15, 0  ;;  %v2153_v52 = vadd.f32 %v5509_v58, %v5606_v4 }
 0x259   :  { %v5610_v5 = vpop.f32.mrf.mxu1  ;;  %4393 = vtanh.f32 %v2398_v32  ;;  %v2396_v54 = vmul.f32 0.5, %v2116_v26  ;;  %v2108_v32 = vadd.f32 %v5509_v58, %v5553_v28  ;;  %v2395_v28 = vmul.f32 0.5, %v2113_v48 }
 0x25a   :  { %4395 = vtanh.f32 %v2397_v56  ;;  %v3013_v38 = vsel %vm2906_vm1, %v2865_v53, 0 }
 0x25b   :  { %3634 = vmatpush3.bf16.xpose.msra.mxu1 %v2971_v11  ;;  %v5613_v25 = vpop.f32.mrf.mxu1 }
 0x25c   :  { %3957 = vmatprep.subr.msk.bf16.mxu1 %vm2906_vm1, %v2858_v13 }
 0x25d   :  { %v3907_v10 = vpop.f32.mrf.mxu1 }
 0x25e   :  { %v2169_v15 = vadd.f32 %v5509_v58, %v3907_v10 }
 0x25f   :  { %v5620_v39 = vpop.f32.mrf.mxu1  ;;  %v4386_v35 = vpop.eup %4385 }
 0x260   :  { %v2657_v18 = vadd.f32 1.0, %v4386_v35 }
 0x261   :  { %v4388_v45 = vpop.eup %4387  ;;  %v3908_v16 = vpop.f32.mrf.mxu1 }
 0x262   :  { %v2655_v2 = vadd.f32 1.0, %v4388_v45  ;;  %v5634_v30 = vmul.f32 0.5, %v2657_v18  ;;  %v2172_v56 = vadd.f32 %v5509_v58, %v3908_v16 }
 0x263   :  { %3636 = vmatpush3.bf16.xpose.msra.mxu1 %v2968_v60  ;;  %v2163_v36 = vpop.f32.mrf.mxu1  ;;  %v4390_v9 = vpop.eup %4389 }
 0x264   :  { %3958 = vmatprep.subr.msk.bf16.mxu1 %vm2906_vm1, %v2857_v57  ;;  %v2658_v41 = vadd.f32 1.0, %v4390_v9  ;;  %v5638_v35 = vmul.f32 0.5, %v2655_v2  ;;  %v2394_v2 = vmul.f32 0.5, %v2108_v32  ;;  %v2164_v17 = vadd.f32 %v5509_v58, %v2163_v36 }
 0x265   :  { %v4392_v11 = vpop.eup %4391  ;;  %v3911_v13 = vpop.f32.mrf.mxu1  ;;  %v2161_v36 = vadd.f32 %v5509_v58, %v5620_v39  ;;  %v2097_v39 = vadd.f32 %v5509_v58, %v5549_v63 }
 0x266   :  { %v2656_v49 = vadd.f32 1.0, %v4392_v11  ;;  %v2185_v22 = vadd.f32 %v5509_v58, %v3911_v13  ;;  %v5636_v55 = vmul.f32 0.5, %v2658_v41  ;;  %v2410_v41 = vmul.f32 0.5, %v2172_v56 }
 0x267   :  { %v2176_v51 = vpop.f32.mrf.mxu1 }
 0x268   :  { %v5640_v42 = vmul.f32 0.5, %v2656_v49  ;;  %v2413_v45 = vmul.f32 0.5, %v2185_v22  ;;  %v2177_v12 = vadd.f32 %v5509_v58, %v2176_v51  ;;  %v2872_v57 = vpack.c.bf16 %v5636_v55, %v5634_v30  ;;  %v4394_v51 = vpop.eup %4393 }
 0x269   :  { %v3912_v60 = vpop.f32.mrf.mxu1  ;;  %v2409_v22 = vmul.f32 0.5, %v2169_v15  ;;  %v2654_v31 = vadd.f32 1.0, %v4394_v51  ;;  %v3010_v30 = vsel %vm2906_vm1, %v2864_v20, 0 }
 0x26a   :  { %4397 = vtanh.f32 %v2413_v45  ;;  %v2188_v18 = vadd.f32 %v5509_v58, %v3912_v60  ;;  %v2871_v9 = vpack.c.bf16 %v5640_v42, %v5638_v35  ;;  %v2411_v40 = vmul.f32 0.5, %v2177_v12  ;;  %v4396_v12 = vpop.eup %4395 }
 0x26b   :  { %4399 = vtanh.f32 %v2393_v8  ;;  %3638 = vmatpush3.bf16.xpose.msra.mxu1 %v2965_v46  ;;  %v2179_v43 = vpop.f32.mrf.mxu1  ;;  %v2100_v8 = vadd.f32 %v5509_v58, %v5557_v50  ;;  %v2962_v50 = vsel %vm2906_vm1, %v2848_v47, 0  ;;  %v2408_v60 = vmul.f32 0.5, %v2164_v17 }
 0x26c   :  { %4401 = vtanh.f32 %v2396_v54  ;;  %3959 = vmatprep.subr.msk.bf16.mxu1 %vm2906_vm1, %v2856_v7  ;;  %v2414_v16 = vmul.f32 0.5, %v2188_v18  ;;  %v2180_v26 = vadd.f32 %v5509_v58, %v2179_v43  ;;  %v2407_v43 = vmul.f32 0.5, %v2161_v36 }
 0x26d   :  { %4403 = vtanh.f32 %v2411_v40  ;;  %v3915_v11 = vpop.f32.mrf.mxu1  ;;  %v2392_v32 = vmul.f32 0.5, %v2100_v8  ;;  %v2653_v40 = vadd.f32 1.0, %v4396_v12 }
 0x26e   :  { %4405 = vtanh.f32 %v2414_v16  ;;  %v2412_v13 = vmul.f32 0.5, %v2180_v26  ;;  %v2201_v10 = vadd.f32 %v5509_v58, %v3915_v11  ;;  %v2959_v16 = vsel %vm2906_vm1, %v2847_v6, 0 }
 0x26f   :  { %4407 = vtanh.f32 %v2395_v28  ;;  %v2192_v49 = vpop.f32.mrf.mxu1  ;;  %v2156_v11 = vadd.f32 %v5509_v58, %v5610_v5  ;;  %v2781_v44 = vmul.f32 0.5, %v2653_v40 }
 0x270   :  { %4409 = vtanh.f32 %v2412_v13  ;;  %v2193_v33 = vadd.f32 %v5509_v58, %v2192_v49  ;;  %v2417_v7 = vmul.f32 0.5, %v2201_v10  ;;  %v2391_v10 = vmul.f32 0.5, %v2097_v39 }
 0x271   :  { %4411 = vtanh.f32 %v2394_v2  ;;  %v3916_v48 = vpop.f32.mrf.mxu1  ;;  %v2782_v2 = vmul.f32 0.5, %v2654_v31 }
 0x272   :  { %4413 = vtanh.f32 %v2410_v41  ;;  %v2415_v54 = vmul.f32 0.5, %v2193_v33  ;;  %v2204_v45 = vadd.f32 %v5509_v58, %v3916_v48 }
 0x273   :  { %4415 = vtanh.f32 %v2417_v7  ;;  %3640 = vmatpush3.bf16.xpose.msra.mxu1 %v2962_v50  ;;  %v2195_v46 = vpop.f32.mrf.mxu1  ;;  %v2870_v36 = vpack.c.bf16 %v2782_v2, %v2781_v44 }
 0x274   :  { %4417 = vtanh.f32 %v2409_v22  ;;  %3960 = vmatprep.subr.msk.bf16.mxu1 %vm2906_vm1, %v2855_v27  ;;  %v2418_v61 = vmul.f32 0.5, %v2204_v45  ;;  %v2196_v47 = vadd.f32 %v5509_v58, %v2195_v46  ;;  %v2406_v45 = vmul.f32 0.5, %v2156_v11 }
 0x275   :  { %4419 = vtanh.f32 %v2415_v54  ;;  %v3919_v56 = vpop.f32.mrf.mxu1  ;;  %v2145_v11 = vadd.f32 %v5509_v58, %v5608_v3 }
 0x276   :  { %4421 = vtanh.f32 %v2418_v61  ;;  %v2217_v18 = vadd.f32 %v5509_v58, %v3919_v56  ;;  %v2416_v15 = vmul.f32 0.5, %v2196_v47  ;;  %v2405_v47 = vmul.f32 0.5, %v2153_v52 }
 0x277   :  { %v4398_v28 = vpop.eup %4397  ;;  %4423 = vtanh.f32 %v2392_v32  ;;  %v2208_v1 = vpop.f32.mrf.mxu1 }
 0x278   :  { %v5681_v62 = vpop.eup %4399  ;;  %4425 = vtanh.f32 %v2408_v60  ;;  %v2421_v27 = vmul.f32 0.5, %v2217_v18  ;;  %v2209_v63 = vadd.f32 %v5509_v58, %v2208_v1  ;;  %v2669_v41 = vadd.f32 1.0, %v4398_v28 }
 0x279   :  { %v4402_v26 = vpop.eup %4401  ;;  %4427 = vtanh.f32 %v2416_v15  ;;  %v3920_v13 = vpop.f32.mrf.mxu1 }
 0x27a   :  { %v4404_v8 = vpop.eup %4403  ;;  %4429 = vtanh.f32 %v2421_v27  ;;  %v2419_v49 = vmul.f32 0.5, %v2209_v63  ;;  %v2220_v22 = vadd.f32 %v5509_v58, %v3920_v13  ;;  %v2652_v54 = vadd.f32 1.0, %v4402_v26 }
 0x27b   :  { %v4406_v17 = vpop.eup %4405  ;;  %4431 = vtanh.f32 %v2407_v43  ;;  %v2667_v6 = vadd.f32 1.0, %v4404_v8  ;;  %3642 = vmatpush3.bf16.xpose.msra.mxu1 %v2959_v16  ;;  %v2211_v33 = vpop.f32.mrf.mxu1  ;;  %v2797_v32 = vmul.f32 0.5, %v2669_v41  ;;  %v2148_v43 = vadd.f32 %v5509_v58, %v5613_v25 }
 0x27c   :  { %v4408_v7 = vpop.eup %4407  ;;  %v2670_v5 = vadd.f32 1.0, %v4406_v17  ;;  %4433 = vtanh.f32 %v2419_v49  ;;  %v2422_v48 = vmul.f32 0.5, %v2220_v22  ;;  %v2212_v51 = vadd.f32 %v5509_v58, %v2211_v33 }
 0x27d   :  { %v4410_v50 = vpop.eup %4409  ;;  %v2651_v31 = vadd.f32 1.0, %v4408_v7  ;;  %v2795_v39 = vmul.f32 0.5, %v2667_v6  ;;  %v2780_v1 = vmul.f32 0.5, %v2652_v54  ;;  %v3028_v16 = vsel %vm2906_vm1, %v2870_v36, 0  ;;  %v5702_v13 = vpop.f32.mrf.mxu1 }
 0x27e   :  { %v4412_v46 = vpop.eup %4411  ;;  %v2798_v12 = vmul.f32 0.5, %v2670_v5  ;;  %v2668_v60 = vadd.f32 1.0, %v4410_v50  ;;  %4435 = vtanh.f32 %v2422_v48  ;;  %v2420_v4 = vmul.f32 0.5, %v2212_v51 }
 0x27f   :  { %v4414_v61 = vpop.eup %4413  ;;  %4437 = vtanh.f32 %v2391_v10  ;;  %v2650_v2 = vadd.f32 1.0, %v4412_v46  ;;  %v2779_v8 = vmul.f32 0.5, %v2651_v31  ;;  %v2404_v17 = vmul.f32 0.5, %v2148_v43  ;;  %v5709_v33 = vpop.f32.mrf.mxu1 }
 0x280   :  { %v4416_v56 = vpop.eup %4415  ;;  %v2796_v18 = vmul.f32 0.5, %v2668_v60  ;;  %4439 = vtanh.f32 %v2420_v4  ;;  %v2878_v28 = vpack.c.bf16 %v2798_v12, %v2797_v32  ;;  %v2666_v27 = vadd.f32 1.0, %v4414_v61 }
 0x281   :  { %v4418_v40 = vpop.eup %4417  ;;  %4441 = vtanh.f32 %v2406_v45  ;;  %v2673_v41 = vadd.f32 1.0, %v4416_v56  ;;  %v2869_v7 = vpack.c.bf16 %v2780_v1, %v2779_v8  ;;  %v2778_v54 = vmul.f32 0.5, %v2650_v2  ;;  %v5720_v31 = vpop.f32.mrf.mxu1 }
 0x282   :  { %v4420_v15 = vpop.eup %4419  ;;  %3961 = vmatprep.subr.msk.bf16.mxu0 %vm2906_vm1, %v2878_v28  ;;  %v2877_v63 = vpack.c.bf16 %v2796_v18, %v2795_v39  ;;  %3644 = vmatmul.mubr.msk.bf16.vlgmr.msra.gmra.mxu1 %vm2906_vm1, %v5459_v59  ;;  %4443 = vtanh.f32 %v2405_v47  ;;  %v2665_v10 = vadd.f32 1.0, %v4418_v40  ;;  %v2794_v6 = vmul.f32 0.5, %v2666_v27 }
 0x283   :  { %v4422_v26 = vpop.eup %4421  ;;  %3646 = vmatpush3.bf16.xpose.msra.mxu0 %v3028_v16  ;;  %3679 = vmatprep.mubr.msk.bf16.mxu1 %vm2906_vm1, %v5459_v59  ;;  %v2671_v44 = vadd.f32 1.0, %v4420_v15  ;;  %v2649_v59 = vadd.f32 1.0, %v5681_v62  ;;  %v5712_v48 = vmul.f32 0.5, %v2673_v41  ;;  %v2403_v45 = vmul.f32 0.5, %v2145_v11  ;;  %v5730_v8 = vpop.f32.mrf.mxu1 }
 0x284   :  { %v4424_v25 = vpop.eup %4423  ;;  %v2674_v49 = vadd.f32 1.0, %v4422_v26  ;;  %3962 = vmatprep.subr.msk.bf16.mxu0 %vm2906_vm1, %v2877_v63  ;;  %v2793_v32 = vmul.f32 0.5, %v2665_v10  ;;  %4445 = vtanh.f32 %v2404_v17  ;;  %v3025_v62 = vsel %vm2906_vm1, %v2869_v7, 0 }
 0x285   :  { %v4426_v22 = vpop.eup %4425  ;;  %v5714_v46 = vmul.f32 0.5, %v2671_v44  ;;  %v2777_v39 = vmul.f32 0.5, %v2649_v59  ;;  %4447 = vtanh.f32 %v2403_v45  ;;  %v2648_v27 = vadd.f32 1.0, %v4424_v25 }
 0x286   :  { %v4428_v52 = vpop.eup %4427  ;;  %v5707_v3 = vmul.f32 0.5, %v2674_v49  ;;  %v2664_v4 = vadd.f32 1.0, %v4426_v22  ;;  %v2876_v47 = vpack.c.bf16 %v2794_v6, %v2793_v32  ;;  %v2896_v6 = vld [vmem:[#allocation2] sm:$0x1]  ;;  %v2233_v23 = vadd.f32 %v5789_v0, %v5702_v13 }
 0x287   :  { %v4430_v5 = vpop.eup %4429  ;;  %v2672_v51 = vadd.f32 1.0, %v4428_v52  ;;  %v2868_v16 = vpack.c.bf16 %v2778_v54, %v2777_v39  ;;  %v2776_v52 = vmul.f32 0.5, %v2648_v27  ;;  %v4524_v54 = vmov 0  }
 0x288   :  { %v4432_v50 = vpop.eup %4431  ;;  %v2880_v60 = vpack.c.bf16 %v5707_v3, %v5712_v48  ;;  %v2677_v61 = vadd.f32 1.0, %v4430_v5  ;;  %v2792_v26 = vmul.f32 0.5, %v2664_v4  ;;  %v3927_v5 = vpop.f32.mrf.mxu1  ;;  %3980 = vset.pattern.permute.xlu0 %v4524_v54  ;;  %v2902_v3 = vlaneseq }
 0x289   :  { %v4434_v36 = vpop.eup %4433  ;;  %v5716_v12 = vmul.f32 0.5, %v2672_v51  ;;  %v2663_v40 = vadd.f32 1.0, %v4432_v50  ;;  %v3022_v59 = vsel %vm2906_vm1, %v2868_v16, 0  ;;  %2899 = vperm.xlu0 %3980, %v2896_v6  }
 0x28a   :  { %v2675_v43 = vadd.f32 1.0, %v4434_v36  ;;  %v5726_v2 = vmul.f32 0.5, %v2677_v61  ;;  %v5741_v36 = vpop.f32.mrf.mxu1  ;;  %v2903_v48 = vshrl.u32 %v2902_v3, 7 }
 0x28b   :  { %v4436_v56 = vpop.eup %4435  ;;  %3648 = vmatpush3.bf16.xpose.msra.mxu0 %v3025_v62  ;;  %v2879_v18 = vpack.c.bf16 %v5716_v12, %v5714_v46  ;;  %v2791_v49 = vmul.f32 0.5, %v2663_v40  ;;  %v2241_v21 = vadd.f32 %v5789_v0, %v5741_v36 }
 0x28c   :  { %v4438_v28 = vpop.eup %4437  ;;  %v2678_v15 = vadd.f32 1.0, %v4436_v56  ;;  %3963 = vmatprep.subr.msk.bf16.mxu0 %vm2906_vm1, %v2876_v47  ;;  %v5732_v22 = vmul.f32 0.5, %v2675_v43  ;;  %v3928_v62 = vpop.f32.mrf.mxu1 }
 0x28d   :  { %v4440_v1 = vpop.eup %4439  ;;  %v2647_v10 = vadd.f32 1.0, %v4438_v28  ;;  %v2875_v51 = vpack.c.bf16 %v2792_v26, %v2791_v49 }
 0x28e   :  { %v4442_v63 = vpop.eup %4441  ;;  %v5728_v11 = vmul.f32 0.5, %v2678_v15  ;;  %v2676_v41 = vadd.f32 1.0, %v4440_v1  ;;  %v2243_v39 = vpop.f32.mrf.mxu1 }
 0x28f   :  { %v4444_v25 = vpop.eup %4443  ;;  %v2662_v7 = vadd.f32 1.0, %v4442_v63  ;;  %v2775_v45 = vmul.f32 0.5, %v2647_v10  ;;  %v2244_v55 = vadd.f32 %v5509_v58, %v2243_v39 }
 0x290   :  { %v5734_v17 = vmul.f32 0.5, %v2676_v41  ;;  %v2882_v44 = vpack.c.bf16 %v5728_v11, %v5726_v2  ;;  %v2661_v32 = vadd.f32 1.0, %v4444_v25  ;;  %v3931_v27 = vpop.f32.mrf.mxu1  ;;  %v3058_v2 = vsel %vm2906_vm1, %v2880_v60, 0 }
 0x291   :  { %v4446_v4 = vpop.eup %4445  ;;  %v2790_v61 = vmul.f32 0.5, %v2662_v7  ;;  %v2867_v47 = vpack.c.bf16 %v2776_v52, %v2775_v45  ;;  %v2265_v16 = vadd.f32 %v5509_v58, %v3931_v27  ;;  %v2428_v42 = vmul.f32 0.5, %v2244_v55 }
 0x292   :  { %v2881_v50 = vpack.c.bf16 %v5734_v17, %v5732_v22  ;;  %v2789_v56 = vmul.f32 0.5, %v2661_v32  ;;  %v4448_v28 = vpop.eup %4447  ;;  %v2660_v40 = vadd.f32 1.0, %v4446_v4  ;;  %v2256_v26 = vpop.f32.mrf.mxu1  ;;  %v2225_v55 = vadd.f32 %v5789_v0, %v5709_v33 }
 0x293   :  { %3650 = vmatpush3.bf16.xpose.msra.mxu0 %v3022_v59  ;;  %v3019_v43 = vsel %vm2906_vm1, %v2867_v47, 0  ;;  %v2659_v1 = vadd.f32 1.0, %v4448_v28  ;;  %v2433_v41 = vmul.f32 0.5, %v2265_v16  ;;  %v2257_v10 = vadd.f32 %v5509_v58, %v2256_v26 }
 0x294   :  { %3964 = vmatprep.subr.msk.bf16.mxu0 %vm2906_vm1, %v2875_v51  ;;  %v2874_v15 = vpack.c.bf16 %v2790_v61, %v2789_v56  ;;  %v2788_v63 = vmul.f32 0.5, %v2660_v40  ;;  %v3932_v25 = vpop.f32.mrf.mxu1  ;;  %v3016_v59 = vsel %vm2906_vm1, %v2866_v19, 0  ;;  %v2252_v56 = vadd.f32 %v5509_v58, %v3928_v62 }
 0x295   :  { %v2787_v49 = vmul.f32 0.5, %v2659_v1  ;;  %v2431_v52 = vmul.f32 0.5, %v2257_v10  ;;  %v2268_v6 = vadd.f32 %v5509_v58, %v3932_v25  ;;  %4449 = vtanh.f32 %v2433_v41 }
 0x296   :  { %v2259_v7 = vpop.f32.mrf.mxu1  ;;  %v2249_v28 = vadd.f32 %v5509_v58, %v3927_v5  ;;  %v2430_v27 = vmul.f32 0.5, %v2252_v56  ;;  %v2904_v60 = vsub.s32 0, %v2903_v48 }
 0x297   :  { %v2873_v51 = vpack.c.bf16 %v2788_v63, %v2787_v49  ;;  %4451 = vtanh.f32 %v2431_v52  ;;  %v2434_v54 = vmul.f32 0.5, %v2268_v6  ;;  %v2260_v45 = vadd.f32 %v5509_v58, %v2259_v7 }
 0x298   :  { %v5754_v32 = vpop.f32.mrf.mxu1  ;;  %v2429_v29 = vmul.f32 0.5, %v2249_v28  ;;  %v2236_v28 = vadd.f32 %v5789_v0, %v5720_v31 }
 0x299   :  { %4453 = vtanh.f32 %v2434_v54  ;;  %v2432_v4 = vmul.f32 0.5, %v2260_v45  ;;  %v3007_v45 = vsel %vm2906_vm1, %v2863_v24, 0 }
 0x29a   :  { %v5757_v61 = vpop.f32.mrf.mxu1  ;;  %v2426_v24 = vmul.f32 0.5, %v2236_v28 }
 0x29b   :  { %3652 = vmatpush3.bf16.xpose.msra.mxu0 %v3019_v43  ;;  %4455 = vtanh.f32 %v2432_v4 }
 0x29c   :  { %3965 = vmatprep.subr.msk.bf16.mxu0 %vm2906_vm1, %v2874_v15  ;;  %v5759_v47 = vpop.f32.mrf.mxu1  ;;  %4457 = vtanh.f32 %v2430_v27  ;;  %v5821_v27 = vld [vmem:[%s5883_s5] sm:$0x1]  ;;  %s4526_s5 = smov [#allocation3]  }
 0x29d   :  { %4459 = vtanh.f32 %v2429_v29  ;;  %v2228_v29 = vadd.f32 %v5789_v0, %v5730_v8  ;;  %v2423_v8 = vmul.f32 0.5, %v2225_v55  ;;  %s3331_s22 = sshll.u32 %s4526_s5, 4  ;;  %s3332_s22 = int_to_ptr.vmem [resolvable:$true] %s3331_s22 }
 0x29e   :  { %v5761_v34 = vpop.f32.mrf.mxu1  ;;  %s4502_s3 = scalar_lea.vmem %s3332_s22, 128  ;;  %p4507_p1 = scmp.lt.s32.totalorder %s3332_s22, %s3332_s22 }
 0x29f   :  { %p4503_p0 = scmp.ne.s32.totalorder %s3332_s22, %s4502_s3  ;;  %p4508_p2 = scmp.lt.s32.totalorder %s4502_s3, %s4502_s3 }
 0x2a0   :  { %v3939_v19 = vpop.f32.mrf.mxu1 }
 0x2a1   :  { %v2297_v4 = vadd.f32 %v5789_v0, %v3939_v19  ;;  %p4509_p3 = por %p4508_p2, %p4507_p1 }
 0x2a2   :  { %v5773_v40 = vpop.f32.mrf.mxu1  ;;  %v4450_v43 = vpop.eup %4449 }
 0x2a3   :  { %3654 = vmatpush3.bf16.xpose.msra.mxu0 %v3016_v59  ;;  %v2689_v53 = vadd.f32 1.0, %v4450_v43  ;;  %v2427_v59 = vmul.f32 0.5, %v2241_v21  ;;  %v2441_v37 = vmul.f32 0.5, %v2297_v4  ;;  %v2289_v13 = vadd.f32 %v5789_v0, %v5773_v40  ;;  %p4510_p4 = pnand %p4509_p3, %p4503_p0 }
 0x2a4   :  { %3966 = vmatprep.subr.msk.bf16.mxu0 %vm2906_vm1, %v2873_v51  ;;  %v4452_v15 = vpop.eup %4451  ;;  %v3940_v1 = vpop.f32.mrf.mxu1 }
 0x2a5   :  { %v5794_v20 = vmul.f32 0.5, %v2689_v53  ;;  %v2300_v6 = vadd.f32 %v5789_v0, %v3940_v1 }
 0x2a6   :  { %v4454_v14 = vpop.eup %4453  ;;  %v2291_v16 = vpop.f32.mrf.mxu1 }
 0x2a7   :  { %v2690_v62 = vadd.f32 1.0, %v4454_v14  ;;  %v2442_v43 = vmul.f32 0.5, %v2300_v6  ;;  %v2292_v19 = vadd.f32 %v5789_v0, %v2291_v16  ;;  %v2425_v14 = vmul.f32 0.5, %v2233_v23 }
 0x2a8   :  { %v4456_v5 = vpop.eup %4455  ;;  %v3943_v63 = vpop.f32.mrf.mxu1 }
 0x2a9   :  { %v5784_v26 = vmul.f32 0.5, %v2690_v62  ;;  %v2688_v41 = vadd.f32 1.0, %v4456_v5  ;;  %v2313_v58 = vadd.f32 %v5789_v0, %v3943_v63  ;;  %v4458_v1 = vpop.eup %4457  ;;  %v2440_v16 = vmul.f32 0.5, %v2292_v19 }
 0x2aa   :  { %v2304_v35 = vpop.f32.mrf.mxu1  ;;  %v4460_v31 = vpop.eup %4459  ;;  %v2686_v53 = vadd.f32 1.0, %v4458_v1  ;;  %v2439_v62 = vmul.f32 0.5, %v2289_v13  ;;  %v2424_v63 = vmul.f32 0.5, %v2228_v29  ;;  %v2273_v13 = vadd.f32 %v5789_v0, %v5757_v61 }
 0x2ab   :  { %3656 = vmatpush3.bf16.xpose.msra.mxu0 %v3013_v38  ;;  %v5798_v39 = vmul.f32 0.5, %v2688_v41  ;;  %v2445_v10 = vmul.f32 0.5, %v2313_v58  ;;  %v2305_v49 = vadd.f32 %v5789_v0, %v2304_v35  ;;  %v2888_v52 = vpack.c.bf16 %v5784_v26, %v5794_v20 }
 0x2ac   :  { %3967 = vmatprep.subr.msk.bf16.mxu0 %vm2906_vm1, %v2872_v57  ;;  %v2687_v57 = vadd.f32 1.0, %v4452_v15  ;;  %v3944_v25 = vpop.f32.mrf.mxu1  ;;  %v2284_v41 = vadd.f32 %v5789_v0, %v5759_v47  ;;  %v2814_v40 = vmul.f32 0.5, %v2686_v53 }
 0x2ad   :  { %4461 = vtanh.f32 %v2445_v10  ;;  %v2316_v36 = vadd.f32 %v5789_v0, %v3944_v25  ;;  %v2443_v51 = vmul.f32 0.5, %v2305_v49 }
 0x2ae   :  { %v2307_v54 = vpop.f32.mrf.mxu1  ;;  %4463 = vtanh.f32 %v2428_v42  ;;  %v2281_v42 = vadd.f32 %v5789_v0, %v5754_v32 }
 0x2af   :  { %v2446_v38 = vmul.f32 0.5, %v2316_v36  ;;  %v2308_v56 = vadd.f32 %v5789_v0, %v2307_v54  ;;  %4465 = vtanh.f32 %v2443_v51 }
 0x2b1   :  { %4467 = vtanh.f32 %v2446_v38  ;;  %v2444_v15 = vmul.f32 0.5, %v2308_v56  ;;  %v2437_v56 = vmul.f32 0.5, %v2281_v42 }
 0x2b2   :  { %4469 = vtanh.f32 %v2427_v59  ;;  %v2438_v59 = vmul.f32 0.5, %v2284_v41 }
 0x2b3   :  { %3658 = vmatpush3.bf16.xpose.msra.mxu0 %v3010_v30  ;;  %4471 = vtanh.f32 %v2444_v15 }
 0x2b4   :  { %3968 = vmatprep.subr.msk.bf16.mxu0 %vm2906_vm1, %v2871_v9  ;;  %v5796_v9 = vmul.f32 0.5, %v2687_v57  ;;  %4473 = vtanh.f32 %v2442_v43  ;;  %v2685_v57 = vadd.f32 1.0, %v4460_v31 }
 0x2b5   :  { %4475 = vtanh.f32 %v2441_v37  ;;  %v2276_v37 = vadd.f32 %v5789_v0, %v5761_v34 }
 0x2b6   :  { %v2887_v7 = vpack.c.bf16 %v5798_v39, %v5796_v9  ;;  %4477 = vtanh.f32 %v2426_v24  ;;  %v2813_v49 = vmul.f32 0.5, %v2685_v57 }
 0x2b7   :  { %4479 = vtanh.f32 %v2425_v14  ;;  %v2436_v34 = vmul.f32 0.5, %v2276_v37 }
 0x2b8   :  { %4481 = vtanh.f32 %v2440_v16 }
 0x2b9   :  { %4483 = vtanh.f32 %v2439_v62 }
 0x2ba   :  { %v4462_v30 = vpop.eup %4461  ;;  %4485 = vtanh.f32 %v2424_v63 }
 0x2bb   :  { %3660 = vmatpush3.bf16.xpose.msra.mxu0 %v3007_v45  ;;  %v4464_v5 = vpop.eup %4463  ;;  %v2701_v21 = vadd.f32 1.0, %v4462_v30  ;;  %v2886_v45 = vpack.c.bf16 %v2814_v40, %v2813_v49  ;;  %4487 = vtanh.f32 %v2423_v8 }
 0x2bc   :  { %v4466_v58 = vpop.eup %4465  ;;  %v2684_v36 = vadd.f32 1.0, %v4464_v5  ;;  %4489 = vtanh.f32 %v2438_v59  ;;  %v2435_v5 = vmul.f32 0.5, %v2273_v13 }
 0x2bd   :  { %v2699_v33 = vadd.f32 1.0, %v4466_v58  ;;  %v2829_v51 = vmul.f32 0.5, %v2701_v21  ;;  %v3076_v1 = vsel %vm2906_vm1, %v2886_v45, 0  ;;  %4491 = vtanh.f32 %v2437_v56 }
 0x2be   :  { %v4468_v35 = vpop.eup %4467  ;;  %v2812_v23 = vmul.f32 0.5, %v2684_v36  ;;  %4493 = vtanh.f32 %v2436_v34 }
 0x2bf   :  { %v4470_v10 = vpop.eup %4469  ;;  %v2702_v25 = vadd.f32 1.0, %v4468_v35  ;;  %v2827_v28 = vmul.f32 0.5, %v2699_v33  ;;  %4495 = vtanh.f32 %v2435_v5 }
 0x2c0   :  { %v4472_v6 = vpop.eup %4471  ;;  %v2683_v38 = vadd.f32 1.0, %v4470_v10 }
 0x2c1   :  { %v2830_v47 = vmul.f32 0.5, %v2702_v25  ;;  %v2700_v54 = vadd.f32 1.0, %v4472_v6  ;;  %v4474_v4 = vpop.eup %4473 }
 0x2c2   :  { %3662 = vmatmul.mubr.msk.bf16.vlgmr.msra.gmra.mxu0 %vm2906_vm1, %v5821_v27  ;;  %v4476_v15 = vpop.eup %4475  ;;  %v2698_v19 = vadd.f32 1.0, %v4474_v4  ;;  %v2811_v14 = vmul.f32 0.5, %v2683_v38 }
 0x2c3   :  { %v2828_v43 = vmul.f32 0.5, %v2700_v54  ;;  %v2894_v32 = vpack.c.bf16 %v2830_v47, %v2829_v51  ;;  %v4478_v24 = vpop.eup %4477  ;;  %v2697_v29 = vadd.f32 1.0, %v4476_v15 }
 0x2c4   :  { %v4480_v53 = vpop.eup %4479  ;;  %v2682_v16 = vadd.f32 1.0, %v4478_v24  ;;  %v2826_v30 = vmul.f32 0.5, %v2698_v19  ;;  %v2885_v55 = vpack.c.bf16 %v2812_v23, %v2811_v14  ;;  %v3064_v14 = vsel %vm2906_vm1, %v2882_v44, 0 }
 0x2c5   :  { %3969 = vmatprep.subr.msk.bf16.mxu1 %vm2906_vm1, %v2894_v32  ;;  %v2893_v31 = vpack.c.bf16 %v2828_v43, %v2827_v28  ;;  %v4482_v57 = vpop.eup %4481  ;;  %v2681_v62 = vadd.f32 1.0, %v4480_v53  ;;  %v2825_v63 = vmul.f32 0.5, %v2697_v29  ;;  %v3061_v29 = vsel %vm2906_vm1, %v2881_v50, 0 }
 0x2c6   :  { %3664 = vmatpush3.bf16.xpose.msra.mxu1 %v3076_v1  ;;  %v4484_v41 = vpop.eup %4483  ;;  %v2810_v58 = vmul.f32 0.5, %v2682_v16  ;;  %v2696_v21 = vadd.f32 1.0, %v4482_v57  ;;  %v3073_v35 = vsel %vm2906_vm1, %v2885_v55, 0  ;;  %v3055_v44 = vsel %vm2906_vm1, %v2879_v18, 0 }
 0x2c7   :  { %3970 = vmatprep.subr.msk.bf16.mxu1 %vm2906_vm1, %v2893_v31  ;;  %v4486_v40 = vpop.eup %4485  ;;  %v2892_v61 = vpack.c.bf16 %v2826_v30, %v2825_v63  ;;  %v2809_v8 = vmul.f32 0.5, %v2681_v62  ;;  %v2695_v42 = vadd.f32 1.0, %v4484_v41 }
 0x2c8   :  { %v4488_v0 = vpop.eup %4487  ;;  %v2680_v10 = vadd.f32 1.0, %v4486_v40  ;;  %v2824_v49 = vmul.f32 0.5, %v2696_v21 }
 0x2c9   :  { %v2884_v33 = vpack.c.bf16 %v2810_v58, %v2809_v8  ;;  %v4490_v25 = vpop.eup %4489  ;;  %v2679_v6 = vadd.f32 1.0, %v4488_v0  ;;  %v2823_v36 = vmul.f32 0.5, %v2695_v42 }
 0x2ca   :  { %v4492_v59 = vpop.eup %4491  ;;  %v2808_v51 = vmul.f32 0.5, %v2680_v10  ;;  %v2694_v47 = vadd.f32 1.0, %v4490_v25 }
 0x2cb   :  { %v3070_v54 = vsel %vm2906_vm1, %v2884_v33, 0  ;;  %v2891_v45 = vpack.c.bf16 %v2824_v49, %v2823_v36  ;;  %v2807_v4 = vmul.f32 0.5, %v2679_v6  ;;  %v2693_v38 = vadd.f32 1.0, %v4492_v59  ;;  %v4494_v43 = vpop.eup %4493 }
 0x2cc   :  { %v2822_v56 = vmul.f32 0.5, %v2694_v47  ;;  %v4496_v15 = vpop.eup %4495  ;;  %v2692_v23 = vadd.f32 1.0, %v4494_v43 }
 0x2cd   :  { %v2883_v28 = vpack.c.bf16 %v2808_v51, %v2807_v4  ;;  %v2821_v32 = vmul.f32 0.5, %v2693_v38  ;;  %v2691_v19 = vadd.f32 1.0, %v4496_v15 }
 0x2ce   :  { %3666 = vmatpush3.bf16.xpose.msra.mxu1 %v3073_v35  ;;  %v2820_v1 = vmul.f32 0.5, %v2692_v23 }
 0x2cf   :  { %3971 = vmatprep.subr.msk.bf16.mxu1 %vm2906_vm1, %v2892_v61  ;;  %v3067_v37 = vsel %vm2906_vm1, %v2883_v28, 0  ;;  %v2890_v24 = vpack.c.bf16 %v2822_v56, %v2821_v32  ;;  %v2819_v31 = vmul.f32 0.5, %v2691_v19 }
 0x2d1   :  { %v2889_v13 = vpack.c.bf16 %v2820_v1, %v2819_v31 }
 0x2d6   :  { %3668 = vmatpush3.bf16.xpose.msra.mxu1 %v3070_v54 }
 0x2d7   :  { %3972 = vmatprep.subr.msk.bf16.mxu1 %vm2906_vm1, %v2891_v45 }
 0x2de   :  { %3670 = vmatpush3.bf16.xpose.msra.mxu1 %v3067_v37 }
 0x2df   :  { %3973 = vmatprep.subr.msk.bf16.mxu1 %vm2906_vm1, %v2890_v24 }
 0x2e6   :  { %3672 = vmatpush3.bf16.xpose.msra.mxu1 %v3064_v14 }
 0x2e7   :  { %3974 = vmatprep.subr.msk.bf16.mxu1 %vm2906_vm1, %v2889_v13 }
 0x2ee   :  { %3674 = vmatpush3.bf16.xpose.msra.mxu1 %v3061_v29 }
 0x2ef   :  { %3975 = vmatprep.subr.msk.bf16.mxu1 %vm2906_vm1, %v2888_v52 }
 0x2f6   :  { %3676 = vmatpush3.bf16.xpose.msra.mxu1 %v3058_v2 }
 0x2f7   :  { %3976 = vmatprep.subr.msk.bf16.mxu1 %vm2906_vm1, %v2887_v7  ;;  %v4525_v7 = vmov 1966171168  }
 0x2f8   :  { %v3279_v53 = vunpack.c.l.s4 %v4525_v7 }
 0x2fa   :  { %v3280_v16 = vunpack.c.0.s8 %v3279_v53 }
 0x2fc   :  { %v3283_v46 = vsub.s32 %v3280_v16, %v2903_v48 }
 0x2fe   :  { %3678 = vmatpush3.bf16.xpose.msra.mxu1 %v3055_v44 }
 0x302   :  { %v3136_v11 = vpop.f32.mrf.mxu0 }
 0x304   :  { %v3138_v22 = vpop.f32.mrf.mxu0  ;;  %v2900_v26 = vpop.permute.xlu0 %2899 }
 0x305   :  { %3680 = vmatmul.mubr.msk.bf16.vlgmr.msra.gmra.mxu1 %vm2906_vm1, %v5821_v27  ;;  %v2905_v20 = vrot.slane %v2900_v26, %v2904_v60 }
 0x306   :  { %v3140_v17 = vpop.f32.mrf.mxu0 }
 0x307   :  { %v3137_v9 = vadd.f32 %v3136_v11, %v2905_v20  ;;  %v3139_v39 = vadd.f32 %v3138_v22, %v2905_v20 }
 0x308   :  { %v3141_v50 = vpop.f32.mrf.mxu0 }
 0x309   :  { %v3274_v52 = vcombine.low %v3137_v9, %v3139_v39 }
 0x30b   :  { %v3284_v62 = vrot.slane %v3274_v52, %v3283_v46 }
 0x342   :  { %v3177_v34 = vpop.f32.mrf.mxu1 }
 0x343   :  { %v3178_v12 = vadd.f32 %v3177_v34, %v2905_v20 }
 0x344   :  { %v3179_v18 = vpop.f32.mrf.mxu1 }
 0x345   :  { %v3180_v30 = vadd.f32 %v3179_v18, %v2905_v20 }
 0x346   :  { %v3181_v55 = vpop.f32.mrf.mxu1 }
 0x347   :  { %v3275_v57 = vcombine.low %v3178_v12, %v3180_v30 }
 0x348   :  { %v3182_v27 = vpop.f32.mrf.mxu1 }
 0x349   :  { %v3291_v5 = vrot.slane %v3275_v57, %v3283_v46 }
 0x34b   :  { %v3306_v63 = vcombine.low %v3284_v62, %v3291_v5 }
 0x34d   :  { %v3314_v47 = vrot.slane %v3306_v63, %v3283_v46 }
 0x382   :  { %v3218_v41 = vpop.f32.mrf.mxu0 }
 0x383   :  { %v3219_v58 = vadd.f32 %v3218_v41, %v2905_v20 }
 0x384   :  { %v3220_v40 = vpop.f32.mrf.mxu0 }
 0x385   :  { %v3221_v21 = vadd.f32 %v3220_v40, %v2905_v20 }
 0x386   :  { %v3222_v35 = vpop.f32.mrf.mxu0 }
 0x387   :  { %v3276_v61 = vcombine.low %v3219_v58, %v3221_v21 }
 0x388   :  { %v3223_v0 = vpop.f32.mrf.mxu0 }
 0x389   :  { %v3298_v36 = vrot.slane %v3276_v61, %v3283_v46 }
 0x3c5   :  { %v3259_v8 = vpop.f32.mrf.mxu1 }
 0x3c6   :  { %v3260_v10 = vadd.f32 %v3259_v8, %v2905_v20 }
 0x3c7   :  { %v3261_v42 = vpop.f32.mrf.mxu1 }
 0x3c8   :  { %v3262_v49 = vadd.f32 %v3261_v42, %v2905_v20 }
 0x3c9   :  { %v3263_v33 = vpop.f32.mrf.mxu1 }
 0x3ca   :  { %v3277_v25 = vcombine.low %v3260_v10, %v3262_v49 }
 0x3cb   :  { %v3264_v6 = vpop.f32.mrf.mxu1 }
 0x3cc   :  { %v3305_v59 = vrot.slane %v3277_v25, %v3283_v46 }
 0x3ce   :  { %v3307_v51 = vcombine.low %v3298_v36, %v3305_v59 }
 0x3d0   :  { %v3321_v54 = vrot.slane %v3307_v51, %v3283_v46 }
 0x3d2   :  { %v3322_v45 = vcombine.low %v3314_v47, %v3321_v54 }
 0x3d4   :  { %3324 = vst [vmem:[#allocation3] sm:$0xff] %v3322_v45 }
 0x3d5   :  { %4513 = shalt.err (!%p4510_p4)
}
 0x3d6   :  { %3334 = dma.vmem_to_hbm [thread:$0]  %s3332_s22, 128, %s5885_s7, [#allocation4]  }
 0x3d7   :  { %4522 = dma.done.wait [#allocation4], 128  }
 0x3d8   :  { %4523 = vsyncadd [#allocation4], 4294967168 }
 0x3d9   :  { %3338 = vsyncpa [#allocation4], 1 }

</bundles_post_ra>
